<compile_context>
chip_gen: v7x
topology: tpu7x:2x2x1
jax: 0.10.0
libtpu: 0.0.40
codegen_flags: <defaults>
</compile_context>

<pallas_src>
import functools

import jax
import jax.numpy as jnp
from jax.experimental import pallas as pl
from jax.experimental.pallas import tpu as pltpu

LANES = 128  # TPU vreg lane width; hidden dims padded to this.


def _round_up(n, m):
  return -(-n // m) * m


def _classifier_kernel(x_ref, w1_ref, w2_ref, w3r_ref, b_ref, out_ref):
  # Layer 1: Linear(F -> F) + ReLU.  Hidden width padded to 128 lanes; padded
  # columns of w1 / lanes of b1 are zero, so padded hidden lanes stay 0.
  h = jnp.dot(x_ref[...], w1_ref[...], preferred_element_type=jnp.float32)
  h = jnp.maximum(h + b_ref[0:1, :], 0.0)
  # Dropout(p=0.2) is identity in eval mode.
  # TODO(synk): training-mode Dropout would need pltpu.prng_seed/prng_random_bits.
  # Layer 2: Linear(F -> F//2) + ReLU (padded rows/cols of w2 are zero).
  h = jnp.dot(h, w2_ref[...], preferred_element_type=jnp.float32)
  h = jnp.maximum(h + b_ref[1:2, :], 0.0)
  # Layer 3: Linear(F//2 -> 1), packed lane-dense.  Each output row holds the
  # scores of 128 consecutive input rows: per-row dot with the single weight
  # column via broadcast multiply (VPU) + last-axis reduce (XLU).
  rows = out_ref.shape[0]            # tile // 128 (static)
  wp = h.shape[1]                    # padded hidden width (>= 128)
  h3 = h.reshape(rows, LANES, wp)
  scores = jnp.sum(h3 * w3r_ref[...], axis=-1)          # (rows, 128)
  # Bias + sigmoid on the packed block only (128x fewer EUP ops than per-tile).
  out_ref[...] = jax.nn.sigmoid(
      scores + b_ref[2:3, 0:LANES]).astype(out_ref.dtype)


def _num_tensorcores():
  """Best-effort TensorCore count per Pallas device (2 on v7x megacore)."""
  try:
    kind = (getattr(jax.devices()[0], "device_kind", "") or "").lower()
    if "v7" in kind:
      return 2
  except Exception:
    pass
  return 1


def _choose_tile(n_rows, tile_n, n_cores):
  """Row-tile size.

  Multiple of 128 (lane packing); when it does not cover all rows it is
  rounded to a multiple of 1024 so the packed output block's sublane dim is a
  multiple of 8.  On 2-TensorCore chips, aim for an even block count so the
  megacore split is balanced; on 1-TC chips use the largest single tile.
  """
  np128 = _round_up(max(n_rows, 1), LANES)
  tile = max(LANES, min(_round_up(tile_n, LANES), np128))
  if n_cores > 1 and np128 >= 2 * LANES:
    blocks = max(2, pl.cdiv(np128, tile))
    if blocks % 2:
      blocks += 1
    tile = max(LANES, _round_up(pl.cdiv(np128, blocks), LANES))
  if tile < np128:
    tile = min(_round_up(tile, 8 * LANES), np128)
  return tile


@functools.partial(jax.jit, static_argnames=("tile_n",))
def classifier_forward(logit, params, tile_n=2048):
  """Runs Classifier.forward on `logit` (N, F); returns sigmoid scores (N,)."""
  N, F = logit.shape
  tile = _choose_tile(N, tile_n, _num_tensorcores())
  n_blocks = pl.cdiv(N, tile)
  rows_per_block = tile // LANES

  # Small weight/bias tensors are passed as full, grid-invariant blocks.
  full = lambda shape: pl.BlockSpec(shape, lambda i: tuple(0 for _ in shape))

  out = pl.pallas_call(
      _classifier_kernel,
      out_shape=jax.ShapeDtypeStruct(
          (n_blocks * rows_per_block, LANES), jnp.float32),
      grid_spec=pltpu.PrefetchScalarGridSpec(
          num_scalar_prefetch=0,
          grid=(n_blocks,),
          in_specs=[
              # Row tile of logit; ragged last block reads unused garbage rows.
              pl.BlockSpec((tile, F), lambda i: (i, 0)),
              full(params["w1"].shape),     # (F,  Wp)
              full(params["w2"].shape),     # (Wp, Wp)
              full(params["w3r"].shape),    # (1,  Wp) layer-3 weight row
              full(params["b"].shape),      # (3,  Wp) stacked biases
          ],
          out_specs=pl.BlockSpec((rows_per_block, LANES), lambda i: (i, 0)),
      ),
      compiler_params=pltpu.CompilerParams(
          dimension_semantics=("parallel",)),
  )(logit, params["w1"], params["w2"], params["w3r"], params["b"])

  # Lane-dense packed scores: flatten and drop padded tail rows
  # (== torch's .squeeze().view(-1)).
  return out.reshape(-1)[:N]


def init_torch_params(key, in_features):
  """nn.Linear-style init, PyTorch weight layout (out, in) / bias (out,)."""
  F = in_features
  H = F // 2
  ks = jax.random.split(key, 6)

  def linear(kw, kb, fan_in, fan_out):
    lim = 1.0 / jnp.sqrt(fan_in)
    w = jax.random.uniform(kw, (fan_out, fan_in), jnp.float32, -lim, lim)
    b = jax.random.uniform(kb, (fan_out,), jnp.float32, -lim, lim)
    return w, b

  return (linear(ks[0], ks[1], F, F),
          linear(ks[2], ks[3], F, H),
          linear(ks[4], ks[5], H, 1))


def prepare_params(torch_params):
  """Transpose to (in, out), zero-pad hidden dims to 128 lanes, keep the
  layer-3 weight as a (1, Wp) row and stack biases into one (3, Wp) block."""
  (w1, b1), (w2, b2), (w3, b3) = torch_params
  F = w1.shape[1]
  Wp = max(_round_up(F, LANES), LANES)

  def pad2(a, rows, cols):
    return jnp.pad(a, ((0, rows - a.shape[0]), (0, cols - a.shape[1])))

  def padb(v):
    return jnp.pad(v, (0, Wp - v.shape[0]))

  # b3 is broadcast across all lanes so it adds correctly to packed scores.
  b3_row = jnp.full((Wp,), b3[0], jnp.float32)
  return {
      "w1": pad2(w1.T, F, Wp),            # (F,  Wp)
      "w2": pad2(w2.T, Wp, Wp),           # (Wp, Wp) zero-padded rows/cols
      "w3r": pad2(w3, 1, Wp),             # (1,  Wp) layer-3 weights as a row
      "b": jnp.stack([padb(b1), padb(b2), b3_row], axis=0),   # (3, Wp)
  }


def reference_forward(logit, torch_params):
  (w1, b1), (w2, b2), (w3, b3) = torch_params
  hi = jax.lax.Precision.HIGHEST
  h = jnp.maximum(jnp.dot(logit, w1.T, precision=hi) + b1, 0.0)
  h = jnp.maximum(jnp.dot(h, w2.T, precision=hi) + b2, 0.0)
  return jax.nn.sigmoid(jnp.dot(h, w3.T, precision=hi) + b3).reshape(-1)


if __name__ == "__main__":
  key = jax.random.PRNGKey(0)
  kx, kp, kf, ke = jax.random.split(key, 4)

  # N nodes of in_features=32 penultimate encoder outputs.  N is intentionally
  # NOT a multiple of the tile / 128 to exercise the ragged last block.
  N, F = 1500, 32
  logit = jax.random.normal(kx, (N, F), jnp.float32)
  # Unused forward() arguments (API parity with the PyTorch module):
  x_feat = jax.random.normal(kf, (N, F), jnp.float32)                 # noqa: F841
  edge_index = jax.random.randint(ke, (2, 4 * N), 0, N, jnp.int32)    # noqa: F841
  mask = jnp.ones((N,), jnp.bool_)                                    # noqa: F841

  torch_params = init_torch_params(kp, F)
  params = prepare_params(torch_params)

  scores = classifier_forward(logit, params, tile_n=1024)
  jax.block_until_ready(scores)

  ref = reference_forward(logit, torch_params)
  assert scores.shape == (N,)
  assert jnp.allclose(scores, ref, atol=1e-4, rtol=1e-4), "mismatch vs reference"

  print("KERNEL_OK")
</pallas_src>

<mosaic_0001>
module attributes {stable_mosaic.version = 11 : i64} {
  func.func @_classifier_kernel(%arg0: i32, %arg1: memref<1024x32xf32, #tpu.memory_space<vmem>>, %arg2: memref<32x128xf32, #tpu.memory_space<vmem>>, %arg3: memref<128x128xf32, #tpu.memory_space<vmem>>, %arg4: memref<1x128xf32, #tpu.memory_space<vmem>>, %arg5: memref<3x128xf32, #tpu.memory_space<vmem>>, %arg6: memref<8x128xf32, #tpu.memory_space<vmem>>) attributes {dimension_semantics = [#tpu.dimension_semantics<parallel>], iteration_bounds = array<i64: 2>, scalar_prefetch = 0 : i64, scratch_operands = 0 : i64, tpu.core_type = #tpu.core_type<tc>, window_params = [{transform_indices = @transform_0, window_bounds = array<i64: 1024, 32>}, {pipeline_mode = #tpu.pipeline_mode<synchronous>, transform_indices = @transform_1, window_bounds = array<i64: 32, 128>}, {pipeline_mode = #tpu.pipeline_mode<synchronous>, transform_indices = @transform_2, window_bounds = array<i64: 128, 128>}, {pipeline_mode = #tpu.pipeline_mode<synchronous>, transform_indices = @transform_3, window_bounds = array<i64: 1, 128>}, {pipeline_mode = #tpu.pipeline_mode<synchronous>, transform_indices = @transform_4, window_bounds = array<i64: 3, 128>}, {transform_indices = @transform_5, window_bounds = array<i64: 8, 128>}]} {
    %c0 = arith.constant 0 : index
    %c0_0 = arith.constant 0 : index
    %0 = vector.load %arg1[%c0, %c0_0] : memref<1024x32xf32, #tpu.memory_space<vmem>>, vector<1024x32xf32>
    %c0_1 = arith.constant 0 : index
    %c0_2 = arith.constant 0 : index
    %1 = vector.load %arg2[%c0_1, %c0_2] : memref<32x128xf32, #tpu.memory_space<vmem>>, vector<32x128xf32>
    %cst = arith.constant dense<0.000000e+00> : vector<1024x128xf32>
    %2 = tpu.matmul %0, %1, %cst {dimension_numbers = #tpu.dot_dimension_numbers<[1], [0], [0], [1], [0, 0, 1, 1], [], []>} : vector<1024x32xf32>, vector<32x128xf32>, vector<1024x128xf32> -> vector<1024x128xf32>
    %c0_3 = arith.constant 0 : index
    %c0_4 = arith.constant 0 : index
    %3 = vector.load %arg5[%c0_3, %c0_4] : memref<3x128xf32, #tpu.memory_space<vmem>>, vector<1x128xf32>
    %4 = vector.broadcast %3 : vector<1x128xf32> to vector<1024x128xf32>
    %5 = arith.addf %2, %4 : vector<1024x128xf32>
    %cst_5 = arith.constant 0.000000e+00 : f32
    %6 = vector.broadcast %cst_5 : f32 to vector<1024x128xf32>
    %7 = arith.maximumf %5, %6 : vector<1024x128xf32>
    %c0_6 = arith.constant 0 : index
    %c0_7 = arith.constant 0 : index
    %8 = vector.load %arg3[%c0_6, %c0_7] : memref<128x128xf32, #tpu.memory_space<vmem>>, vector<128x128xf32>
    %cst_8 = arith.constant dense<0.000000e+00> : vector<1024x128xf32>
    %9 = tpu.matmul %7, %8, %cst_8 {dimension_numbers = #tpu.dot_dimension_numbers<[1], [0], [0], [1], [0, 0, 1, 1], [], []>} : vector<1024x128xf32>, vector<128x128xf32>, vector<1024x128xf32> -> vector<1024x128xf32>
    %c1 = arith.constant 1 : index
    %c0_9 = arith.constant 0 : index
    %10 = vector.load %arg5[%c1, %c0_9] : memref<3x128xf32, #tpu.memory_space<vmem>>, vector<1x128xf32>
    %11 = vector.broadcast %10 : vector<1x128xf32> to vector<1024x128xf32>
    %12 = arith.addf %9, %11 : vector<1024x128xf32>
    %cst_10 = arith.constant 0.000000e+00 : f32
    %13 = vector.broadcast %cst_10 : f32 to vector<1024x128xf32>
    %14 = arith.maximumf %12, %13 : vector<1024x128xf32>
    %15 = vector.shape_cast %14 : vector<1024x128xf32> to vector<8x128x128xf32>
    %c0_11 = arith.constant 0 : index
    %c0_12 = arith.constant 0 : index
    %16 = vector.load %arg4[%c0_11, %c0_12] : memref<1x128xf32, #tpu.memory_space<vmem>>, vector<1x128xf32>
    %17 = vector.shape_cast %16 : vector<1x128xf32> to vector<1x1x128xf32>
    %18 = vector.broadcast %17 : vector<1x1x128xf32> to vector<8x128x128xf32>
    %19 = arith.mulf %15, %18 : vector<8x128x128xf32>
    %cst_13 = arith.constant dense<0.000000e+00> : vector<8x128xf32>
    %20 = vector.multi_reduction <add>, %19, %cst_13 [2] : vector<8x128x128xf32> to vector<8x128xf32>
    %c2 = arith.constant 2 : index
    %c0_14 = arith.constant 0 : index
    %21 = vector.load %arg5[%c2, %c0_14] : memref<3x128xf32, #tpu.memory_space<vmem>>, vector<1x128xf32>
    %22 = vector.broadcast %21 : vector<1x128xf32> to vector<8x128xf32>
    %23 = arith.addf %20, %22 : vector<8x128xf32>
    %24 = arith.negf %23 : vector<8x128xf32>
    %25 = math.exp %24 : vector<8x128xf32>
    %cst_15 = arith.constant 1.000000e+00 : f32
    %26 = vector.broadcast %cst_15 : f32 to vector<8x128xf32>
    %27 = arith.addf %26, %25 : vector<8x128xf32>
    %28 = arith.divf %26, %27 : vector<8x128xf32>
    %c0_16 = arith.constant 0 : index
    %c0_17 = arith.constant 0 : index
    %29 = vector.load %arg6[%c0_16, %c0_17] : memref<8x128xf32, #tpu.memory_space<vmem>>, vector<8x128xf32>
    tpu.vector_store %arg6[%c0_16, %c0_17], %28 {strides = array<i32>} : memref<8x128xf32, #tpu.memory_space<vmem>>, vector<8x128xf32>,
    return
  }
  func.func @transform_0(%arg0: i32) -> (i32, i32) {
    %c0_i32 = arith.constant 0 : i32
    %c0_i32_0 = arith.constant 0 : i32
    return %arg0, %c0_i32 : i32, i32
  }
  func.func @transform_1(%arg0: i32) -> (i32, i32) {
    %c0_i32 = arith.constant 0 : i32
    %c0_i32_0 = arith.constant 0 : i32
    %c0_i32_1 = arith.constant 0 : i32
    return %c0_i32, %c0_i32_0 : i32, i32
  }
  func.func @transform_2(%arg0: i32) -> (i32, i32) {
    %c0_i32 = arith.constant 0 : i32
    %c0_i32_0 = arith.constant 0 : i32
    %c0_i32_1 = arith.constant 0 : i32
    return %c0_i32, %c0_i32_0 : i32, i32
  }
  func.func @transform_3(%arg0: i32) -> (i32, i32) {
    %c0_i32 = arith.constant 0 : i32
    %c0_i32_0 = arith.constant 0 : i32
    %c0_i32_1 = arith.constant 0 : i32
    return %c0_i32, %c0_i32_0 : i32, i32
  }
  func.func @transform_4(%arg0: i32) -> (i32, i32) {
    %c0_i32 = arith.constant 0 : i32
    %c0_i32_0 = arith.constant 0 : i32
    %c0_i32_1 = arith.constant 0 : i32
    return %c0_i32, %c0_i32_0 : i32, i32
  }
  func.func @transform_5(%arg0: i32) -> (i32, i32) {
    %c0_i32 = arith.constant 0 : i32
    %c0_i32_0 = arith.constant 0 : i32
    return %arg0, %c0_i32 : i32, i32
  }
}

</mosaic_0001>

<bundles_post_ra>
// kernel: classifier_forward.1
= control target key start
LH: loop header
LB: loop body
LE: loop exit
PB: predicated region body
PF: predicated region fallthrough
CT: control target
= control target key end

     0   :  { %10 = vsyncpa [#allocation3], 0  ;;  %s8664_s0 = inlined_call_operand.vmem [shape: f32[1500,32], index: 0, kind: input, shape index: {}]   ;;  %s8665_s1 = inlined_call_operand.vmem [shape: f32[32,128], index: 1, kind: input, shape index: {}]   ;;  %s8666_s2 = inlined_call_operand.vmem [shape: f32[128,128], index: 2, kind: input, shape index: {}]   ;;  %s8667_s3 = inlined_call_operand.vmem [shape: f32[1,128], index: 3, kind: input, shape index: {}]   ;;  %s8668_s4 = inlined_call_operand.vmem [shape: f32[3,128], index: 4, kind: input, shape index: {}]   ;;  %s8669_s5 = inlined_call_operand.hbm [shape: f32[16,128], index: 5, kind: output, shape index: {}]  }
   0x1   :  { %12 = vsyncpa [#allocation3 + $0x1], 0  ;;  %s6773_s18 = smov 0   ;;  %s6775_s19 = smov 0  }
   0x2   :  { %s6777_s20 = smov 0   ;;  %s6779_s21 = smov 0  }
   0x3 LB: > { %s5090_s22 = sadd.s32 4294967295, %s6739_s21   ;;  %s5091_s23 = sadd.s32 4294967294, %s6739_s21   ;;  %s6739_s21 = sphi %s6779_s21, %s8865_s21   ;;  %s6735_s20 = sphi %s6777_s20, %s8864_s20   ;;  %s6731_s19 = sphi %s6775_s19, %s8863_s19   ;;  %s6727_s18 = sphi %s6773_s18, %s8862_s18  }
   0x4   : > { %s6796_s24 = sadd.s32 1, %s6739_s21   ;;  %s135_s25 = sadd.s32 1, %s6735_s20 }
   0x5   : > { %s132_s26 = ssub.s32 %s6739_s21, %s6796_s24  ;;  %p145_p0 = scmp.ne.s32.totalorder %s6735_s20, %s6731_s19 }
   0x6   : > { %p133_p1 = scmp.eq.s32.totalorder %s132_s26, 0  ;;  %p146_p2 = scmp.eq.s32.totalorder %s5090_s22, 1 }
   0x7   : > { %p151_p3 = scmp.ne.s32.totalorder %s6731_s19, %s6727_s18  ;;  %p152_p4 = scmp.eq.s32.totalorder %s5091_s23, 1 }
   0x8   : > { %s6806_s27 = scalar_select %p133_p1, %s6735_s20, %s135_s25  }
   0x9   : > { %p6808_p5 = por %p146_p2, %p145_p0  ;;  %p6812_p6 = por %p152_p4, %p151_p3 }
   0xa   : > { %p5094_p7 = scmp.ge.s32.totalorder %s6739_s21, 1  ;;  %p199_p8 = scmp.lt.s32.totalorder %s6739_s21, 3 }
   0xc   : > { %p200_p9 = pnand %p5094_p7, %p199_p8 }
   0xe   : > { %203 = sbr.rel (%p200_p9) target bundleno = 1963 (0x7ab), region = 40 }
  0x15   : > { %v373_v0 = vld [vmem:[%s8665_s1] sm:$0xff]  ;;  %v374_v1 = vld [vmem:[%s8665_s1 + $0x8] sm:$0xff]  ;;  %v375_v2 = vld [vmem:[%s8665_s1 + $0x10] sm:$0xff]  ;;  %s6827_s11 = sshll.u32 %s5090_s22, 7  ;;  %vm382_vm0 = vcmask 261120   ;;  %vm4349_vm1 = vcmask 130112  }
  0x16   : > { %v6062_v3 = vpack.c.bf16 %v374_v1, %v373_v0  ;;  %v376_v4 = vld [vmem:[%s8665_s1 + $0x18] sm:$0xff]  ;;  %p236_p10 = scmp.lt.s32.totalorder %s6827_s11, 187  ;;  %v1600_v5 = vld [vmem:[%s8666_s2] sm:$0xff]  ;;  %v1601_v6 = vld [vmem:[%s8666_s2 + $0x8] sm:$0xff]  ;;  %vm4356_vm2 = vcmask 195712   ;;  %vm4363_vm3 = vcmask 261312  }
  0x17   : > { %v6066_v7 = vpack.c.bf16 %v376_v4, %v375_v2  ;;  %v6070_v8 = vpack.c.bf16 %v1601_v6, %v1600_v5  ;;  %v1602_v9 = vld [vmem:[%s8666_s2 + $0x10] sm:$0xff]  ;;  %v1603_v10 = vld [vmem:[%s8666_s2 + $0x18] sm:$0xff]  ;;  %v1604_v12 = vld [vmem:[%s8666_s2 + $0x20] sm:$0xff]  ;;  %vm4370_vm4 = vcmask 326912   ;;  %vm4377_vm5 = vcmask 392512   ;;  %s6742_s15 = smov [#allocation2]  }
  0x18   : > { %6063 = vmatprep.subr.bf16.mxu0 %v6062_v3  ;;  %s237_s30 = scalar_select %p236_p10, %s6827_s11, 187  ;;  %v6074_v11 = vpack.c.bf16 %v1603_v10, %v1602_v9  ;;  %v1605_v13 = vld [vmem:[%s8666_s2 + $0x28] sm:$0xff]  ;;  %v1606_v16 = vld [vmem:[%s8666_s2 + $0x30] sm:$0xff]  ;;  %v1607_v17 = vld [vmem:[%s8666_s2 + $0x38] sm:$0xff]  ;;  %vm4384_vm6 = vcmask 458112   ;;  %vm4391_vm7 = vcmask 523712  }
  0x19   : > { %6065 = vmatpush3.bf16.msra.mxu0 %v6062_v3  ;;  %6102 = vmatprep.subr.bf16.mxu1 %v6070_v8  ;;  %v6078_v14 = vpack.c.bf16 %v1605_v13, %v1604_v12  ;;  %v6082_v20 = vpack.c.bf16 %v1607_v17, %v1606_v16  ;;  %v1608_v31 = vld [vmem:[%s8666_s2 + $0x40] sm:$0xff]  ;;  %v1609_v32 = vld [vmem:[%s8666_s2 + $0x48] sm:$0xff]  ;;  %v1610_v40 = vld [vmem:[%s8666_s2 + $0x50] sm:$0xff]  ;;  %vm4398_vm8 = vcmask 589312   ;;  %vm4405_vm9 = vcmask 654912   ;;  %s6681_s16 = sshll.u32 %s6742_s15, 4  ;;  %s6682_s16 = int_to_ptr.vmem [resolvable:$false] %s6681_s16 }
  0x1a   : > { %6067 = vmatprep.subr.bf16.mxu0 %v6066_v7  ;;  %s5097_s10 = sshll.u32 %s237_s30, 3  ;;  %6110 = vmatpush3.bf16.msra.mxu1 %v6070_v8  ;;  %v6086_v33 = vpack.c.bf16 %v1609_v32, %v1608_v31  ;;  %v1611_v41 = vld [vmem:[%s8666_s2 + $0x58] sm:$0xff]  ;;  %v1612_v59 = vld [vmem:[%s8666_s2 + $0x60] sm:$0xff]  ;;  %v1613_v60 = vld [vmem:[%s8666_s2 + $0x68] sm:$0xff]  ;;  %vm4412_vm10 = vcmask 720512   ;;  %vm8673_vm11 = vcmask 786112  }
  0x1b   : > { %s6855_s14 = scalar_lea.vmem %s8664_s0, %s5097_s10  ;;  %6103 = vmatprep.subr.bf16.mxu1 %v6074_v11  ;;  %v6090_v43 = vpack.c.bf16 %v1611_v41, %v1610_v40  ;;  %v6094_v62 = vpack.c.bf16 %v1613_v60, %v1612_v59  ;;  %vm8672_vm12 = vcmask 851712   ;;  %vm4433_vm13 = vcmask 917312   ;;  %s228_s30 = sand.u32 1, %s6731_s19  }
  0x1c   : > { %v245_v15 = vld [vmem:[%s6855_s14] sm:$0xff]  ;;  %v246_v18 = vld [vmem:[%s6855_s14 + $0x8] sm:$0xff]  ;;  %v247_v19 = vld [vmem:[%s6855_s14 + $0x10] sm:$0xff]  ;;  %vm4440_vm14 = vcmask 982912   ;;  %vm4447_vm15 = vcmask 1048512   ;;  %s8589_s6 = sshll.u32 %s228_s30, 3  ;;  %s8620_s10 = scalar_lea.hbm %s8669_s5, %s6827_s11 }
  0x1d   : > { %6069 = vmatpush3.bf16.msra.mxu0 %v6066_v7  ;;  %5646 = vmatprep.mubr.msk.f32.mxu0 %vm382_vm0, %v245_v15  ;;  %v248_v21 = vld [vmem:[%s6855_s14 + $0x18] sm:$0xff]  ;;  %v249_v22 = vld [vmem:[%s6855_s14 + $0x20] sm:$0xff]  ;;  %v250_v23 = vld [vmem:[%s6855_s14 + $0x28] sm:$0xff]  ;;  %s5019_s12 = scalar_lea.sflag [#allocation3], %s228_s30  ;;  %s6683_s17 = scalar_lea.vmem %s6682_s16, 256 }
  0x1e   : > { %6071 = vmatprep.subr.bf16.mxu0 %v6070_v8  ;;  %6111 = vmatpush3.bf16.msra.mxu1 %v6074_v11  ;;  %v251_v24 = vld [vmem:[%s6855_s14 + $0x30] sm:$0xff]  ;;  %v252_v25 = vld [vmem:[%s6855_s14 + $0x38] sm:$0xff]  ;;  %v253_v26 = vld [vmem:[%s6855_s14 + $0x40] sm:$0xff] }
  0x1f   : > { %6104 = vmatprep.subr.bf16.mxu1 %v6078_v14  ;;  %v254_v27 = vld [vmem:[%s6855_s14 + $0x48] sm:$0xff]  ;;  %v255_v28 = vld [vmem:[%s6855_s14 + $0x50] sm:$0xff]  ;;  %v256_v29 = vld [vmem:[%s6855_s14 + $0x58] sm:$0xff] }
  0x20   : > { %5647 = vmatmul.mubr.msk.f32.vlgmr.msra.gmra.mrb[0].mxu0 %vm382_vm0, %v246_v18  ;;  %v257_v30 = vld [vmem:[%s6855_s14 + $0x60] sm:$0xff]  ;;  %v258_v34 = vld [vmem:[%s6855_s14 + $0x68] sm:$0xff]  ;;  %v259_v35 = vld [vmem:[%s6855_s14 + $0x70] sm:$0xff] }
  0x21   : > { %5649 = vmatprep.mubr.msk.f32.mxu0 %vm382_vm0, %v247_v19  ;;  %6073 = vmatpush3.bf16.msra.mxu0 %v6070_v8  ;;  %v260_v36 = vld [vmem:[%s6855_s14 + $0x78] sm:$0xff]  ;;  %v261_v37 = vld [vmem:[%s6855_s14 + $0x80] sm:$0xff]  ;;  %v262_v38 = vld [vmem:[%s6855_s14 + $0x88] sm:$0xff] }
  0x22   : > { %6075 = vmatprep.subr.bf16.mxu0 %v6074_v11  ;;  %6112 = vmatpush3.bf16.msra.mxu1 %v6078_v14  ;;  %v263_v39 = vld [vmem:[%s6855_s14 + $0x90] sm:$0xff]  ;;  %v264_v42 = vld [vmem:[%s6855_s14 + $0x98] sm:$0xff]  ;;  %v265_v44 = vld [vmem:[%s6855_s14 + $0xa0] sm:$0xff] }
  0x23   : > { %6105 = vmatprep.subr.bf16.mxu1 %v6082_v20  ;;  %v266_v45 = vld [vmem:[%s6855_s14 + $0xa8] sm:$0xff]  ;;  %v267_v46 = vld [vmem:[%s6855_s14 + $0xb0] sm:$0xff]  ;;  %v268_v47 = vld [vmem:[%s6855_s14 + $0xb8] sm:$0xff] }
  0x24   : > { %5650 = vmatmul.mubr.msk.f32.gmra.mrb[2].mxu0 %vm382_vm0, %v248_v21  ;;  %v269_v48 = vld [vmem:[%s6855_s14 + $0xc0] sm:$0xff]  ;;  %v270_v49 = vld [vmem:[%s6855_s14 + $0xc8] sm:$0xff]  ;;  %v271_v50 = vld [vmem:[%s6855_s14 + $0xd0] sm:$0xff] }
  0x25   : > { %5652 = vmatprep.mubr.msk.f32.mxu0 %vm382_vm0, %v249_v22  ;;  %6077 = vmatpush3.bf16.msra.mxu0 %v6074_v11  ;;  %v272_v51 = vld [vmem:[%s6855_s14 + $0xd8] sm:$0xff]  ;;  %v273_v52 = vld [vmem:[%s6855_s14 + $0xe0] sm:$0xff]  ;;  %v274_v53 = vld [vmem:[%s6855_s14 + $0xe8] sm:$0xff] }
  0x26   : > { %6079 = vmatprep.subr.bf16.mxu0 %v6078_v14  ;;  %6113 = vmatpush3.bf16.msra.mxu1 %v6082_v20  ;;  %v275_v54 = vld [vmem:[%s6855_s14 + $0xf0] sm:$0xff]  ;;  %v276_v55 = vld [vmem:[%s6855_s14 + $0xf8] sm:$0xff]  ;;  %v277_v56 = vld [vmem:[%s6855_s14 + $0x100] sm:$0xff] }
  0x27   : > { %6106 = vmatprep.subr.bf16.mxu1 %v6086_v33  ;;  %v278_v57 = vld [vmem:[%s6855_s14 + $0x108] sm:$0xff]  ;;  %v279_v58 = vld [vmem:[%s6855_s14 + $0x110] sm:$0xff]  ;;  %v280_v61 = vld [vmem:[%s6855_s14 + $0x118] sm:$0xff] }
  0x28   : > { %5653 = vmatmul.mubr.msk.f32.gmra.mrb[4].mxu0 %vm382_vm0, %v250_v23  ;;  %v281_v63 = vld [vmem:[%s6855_s14 + $0x120] sm:$0xff]  ;;  %v282_v0 = vld [vmem:[%s6855_s14 + $0x128] sm:$0xff]  ;;  %v283_v1 = vld [vmem:[%s6855_s14 + $0x130] sm:$0xff] }
  0x29   : > { %5655 = vmatprep.mubr.msk.f32.mxu0 %vm382_vm0, %v251_v24  ;;  %6081 = vmatpush3.bf16.msra.mxu0 %v6078_v14  ;;  %v284_v2 = vld [vmem:[%s6855_s14 + $0x138] sm:$0xff]  ;;  %v285_v3 = vld [vmem:[%s6855_s14 + $0x140] sm:$0xff]  ;;  %v286_v4 = vld [vmem:[%s6855_s14 + $0x148] sm:$0xff] }
  0x2a   : > { %6083 = vmatprep.subr.bf16.mxu0 %v6082_v20  ;;  %6114 = vmatpush3.bf16.msra.mxu1 %v6086_v33  ;;  %v287_v5 = vld [vmem:[%s6855_s14 + $0x150] sm:$0xff]  ;;  %v288_v6 = vld [vmem:[%s6855_s14 + $0x158] sm:$0xff]  ;;  %v289_v7 = vld [vmem:[%s6855_s14 + $0x160] sm:$0xff] }
  0x2b   : > { %6107 = vmatprep.subr.bf16.mxu1 %v6090_v43  ;;  %v290_v8 = vld [vmem:[%s6855_s14 + $0x168] sm:$0xff]  ;;  %v291_v9 = vld [vmem:[%s6855_s14 + $0x170] sm:$0xff]  ;;  %v292_v10 = vld [vmem:[%s6855_s14 + $0x178] sm:$0xff] }
  0x2c   : > { %5656 = vmatmul.mubr.msk.f32.gmra.mrb[6].mxu0 %vm382_vm0, %v252_v25  ;;  %v293_v11 = vld [vmem:[%s6855_s14 + $0x180] sm:$0xff]  ;;  %v294_v12 = vld [vmem:[%s6855_s14 + $0x188] sm:$0xff]  ;;  %v295_v13 = vld [vmem:[%s6855_s14 + $0x190] sm:$0xff] }
  0x2d   : > { %5658 = vmatprep.mubr.msk.f32.mxu0 %vm382_vm0, %v253_v26  ;;  %6085 = vmatpush3.bf16.msra.mxu0 %v6082_v20  ;;  %v1614_v14 = vld [vmem:[%s8666_s2 + $0x70] sm:$0xff]  ;;  %v1615_v15 = vld [vmem:[%s8666_s2 + $0x78] sm:$0xff]  ;;  %v297_v18 = vld [vmem:[%s6855_s14 + $0x1a0] sm:$0xff] }
  0x2e   : > { %6087 = vmatprep.subr.bf16.mxu0 %v6086_v33  ;;  %6115 = vmatpush3.bf16.msra.mxu1 %v6090_v43  ;;  %v6098_v16 = vpack.c.bf16 %v1615_v15, %v1614_v14  ;;  %v296_v17 = vld [vmem:[%s6855_s14 + $0x198] sm:$0xff]  ;;  %v298_v19 = vld [vmem:[%s6855_s14 + $0x1a8] sm:$0xff]  ;;  %v299_v20 = vld [vmem:[%s6855_s14 + $0x1b0] sm:$0xff] }
  0x2f   : > { %6108 = vmatprep.subr.bf16.mxu1 %v6094_v62  ;;  %v300_v21 = vld [vmem:[%s6855_s14 + $0x1b8] sm:$0xff]  ;;  %v301_v22 = vld [vmem:[%s6855_s14 + $0x1c0] sm:$0xff]  ;;  %v302_v23 = vld [vmem:[%s6855_s14 + $0x1c8] sm:$0xff] }
  0x30   : > { %5659 = vmatmul.mubr.msk.f32.gmra.mrb[8].mxu0 %vm382_vm0, %v254_v27  ;;  %v303_v24 = vld [vmem:[%s6855_s14 + $0x1d0] sm:$0xff]  ;;  %v304_v25 = vld [vmem:[%s6855_s14 + $0x1d8] sm:$0xff]  ;;  %v305_v26 = vld [vmem:[%s6855_s14 + $0x1e0] sm:$0xff] }
  0x31   : > { %5661 = vmatprep.mubr.msk.f32.mxu0 %vm382_vm0, %v255_v28  ;;  %6089 = vmatpush3.bf16.msra.mxu0 %v6086_v33  ;;  %v306_v27 = vld [vmem:[%s6855_s14 + $0x1e8] sm:$0xff]  ;;  %v307_v28 = vld [vmem:[%s6855_s14 + $0x1f0] sm:$0xff]  ;;  %v312_v33 = vld [vmem:[%s6855_s14 + $0x218] sm:$0xff] }
  0x32   : > { %6091 = vmatprep.subr.bf16.mxu0 %v6090_v43  ;;  %6116 = vmatpush3.bf16.msra.mxu1 %v6094_v62  ;;  %v310_v31 = vld [vmem:[%s6855_s14 + $0x208] sm:$0xff]  ;;  %v311_v32 = vld [vmem:[%s6855_s14 + $0x210] sm:$0xff]  ;;  %v320_v41 = vld [vmem:[%s6855_s14 + $0x258] sm:$0xff] }
  0x33   : > { %6109 = vmatprep.subr.bf16.mxu1 %v6098_v16  ;;  %v319_v40 = vld [vmem:[%s6855_s14 + $0x250] sm:$0xff]  ;;  %v338_v59 = vld [vmem:[%s6855_s14 + $0x2e8] sm:$0xff] }
  0x34   : > { %5662 = vmatmul.mubr.msk.f32.gmra.mrb[10].mxu0 %vm382_vm0, %v256_v29  ;;  %v308_v29 = vld [vmem:[%s6855_s14 + $0x1f8] sm:$0xff]  ;;  %v339_v60 = vld [vmem:[%s6855_s14 + $0x2f0] sm:$0xff] }
  0x35   : > { %5664 = vmatprep.mubr.msk.f32.mxu0 %vm382_vm0, %v257_v30  ;;  %6093 = vmatpush3.bf16.msra.mxu0 %v6090_v43  ;;  %v309_v30 = vld [vmem:[%s6855_s14 + $0x200] sm:$0xff]  ;;  %v322_v43 = vld [vmem:[%s6855_s14 + $0x268] sm:$0xff]  ;;  %v355_v14 = vld [vmem:[%s6855_s14 + $0x370] sm:$0xff] }
  0x36   : > { %6095 = vmatprep.subr.bf16.mxu0 %v6094_v62  ;;  %6117 = vmatpush3.bf16.msra.mxu1 %v6098_v16 }
  0x38   : > { %5665 = vmatmul.mubr.msk.f32.gmra.mrb[12].mxu0 %vm382_vm0, %v258_v34  ;;  %v313_v34 = vld [vmem:[%s6855_s14 + $0x220] sm:$0xff] }
  0x39   : > { %5667 = vmatprep.mubr.msk.f32.mxu0 %vm382_vm0, %v259_v35  ;;  %6097 = vmatpush3.bf16.msra.mxu0 %v6094_v62  ;;  %v314_v35 = vld [vmem:[%s6855_s14 + $0x228] sm:$0xff]  ;;  %v341_v62 = vld [vmem:[%s6855_s14 + $0x300] sm:$0xff] }
  0x3a   : > { %6099 = vmatprep.subr.bf16.mxu0 %v6098_v16 }
  0x3c   : > { %5668 = vmatmul.mubr.msk.f32.gmra.mrb[14].mxu0 %vm382_vm0, %v260_v36  ;;  %v315_v36 = vld [vmem:[%s6855_s14 + $0x230] sm:$0xff] }
  0x3d   : > { %5670 = vmatprep.mubr.msk.f32.mxu0 %vm382_vm0, %v261_v37  ;;  %6101 = vmatpush3.bf16.msra.mxu0 %v6098_v16  ;;  %v316_v37 = vld [vmem:[%s6855_s14 + $0x238] sm:$0xff] }
  0x40   : > { %5671 = vmatmul.mubr.msk.f32.gmra.mrb[16].mxu0 %vm382_vm0, %v262_v38  ;;  %v317_v38 = vld [vmem:[%s6855_s14 + $0x240] sm:$0xff] }
  0x41   : > { %5673 = vmatprep.mubr.msk.f32.mxu0 %vm382_vm0, %v263_v39  ;;  %v318_v39 = vld [vmem:[%s6855_s14 + $0x248] sm:$0xff] }
  0x44   : > { %5674 = vmatmul.mubr.msk.f32.gmra.mrb[18].mxu0 %vm382_vm0, %v264_v42  ;;  %v321_v42 = vld [vmem:[%s6855_s14 + $0x260] sm:$0xff] }
  0x45   : > { %5676 = vmatprep.mubr.msk.f32.mxu0 %vm382_vm0, %v265_v44  ;;  %v323_v44 = vld [vmem:[%s6855_s14 + $0x270] sm:$0xff] }
  0x48   : > { %5677 = vmatmul.mubr.msk.f32.gmra.mrb[20].mxu0 %vm382_vm0, %v266_v45  ;;  %v324_v45 = vld [vmem:[%s6855_s14 + $0x278] sm:$0xff] }
  0x49   : > { %5679 = vmatprep.mubr.msk.f32.mxu0 %vm382_vm0, %v267_v46  ;;  %v325_v46 = vld [vmem:[%s6855_s14 + $0x280] sm:$0xff] }
  0x4c   : > { %5680 = vmatmul.mubr.msk.f32.gmra.mrb[22].mxu0 %vm382_vm0, %v268_v47  ;;  %v326_v47 = vld [vmem:[%s6855_s14 + $0x288] sm:$0xff] }
  0x4d   : > { %5682 = vmatprep.mubr.msk.f32.mxu0 %vm382_vm0, %v269_v48  ;;  %v327_v48 = vld [vmem:[%s6855_s14 + $0x290] sm:$0xff] }
  0x50   : > { %5683 = vmatmul.mubr.msk.f32.gmra.mrb[24].mxu0 %vm382_vm0, %v270_v49  ;;  %v328_v49 = vld [vmem:[%s6855_s14 + $0x298] sm:$0xff] }
  0x51   : > { %5685 = vmatprep.mubr.msk.f32.mxu0 %vm382_vm0, %v271_v50  ;;  %v329_v50 = vld [vmem:[%s6855_s14 + $0x2a0] sm:$0xff] }
  0x54   : > { %5686 = vmatmul.mubr.msk.f32.gmra.mrb[26].mxu0 %vm382_vm0, %v272_v51  ;;  %v330_v51 = vld [vmem:[%s6855_s14 + $0x2a8] sm:$0xff] }
  0x55   : > { %5688 = vmatprep.mubr.msk.f32.mxu0 %vm382_vm0, %v273_v52  ;;  %v331_v52 = vld [vmem:[%s6855_s14 + $0x2b0] sm:$0xff] }
  0x58   : > { %5689 = vmatmul.mubr.msk.f32.gmra.mrb[28].mxu0 %vm382_vm0, %v274_v53  ;;  %v332_v53 = vld [vmem:[%s6855_s14 + $0x2b8] sm:$0xff] }
  0x59   : > { %5691 = vmatprep.mubr.msk.f32.mxu0 %vm382_vm0, %v275_v54  ;;  %v333_v54 = vld [vmem:[%s6855_s14 + $0x2c0] sm:$0xff] }
  0x5c   : > { %5692 = vmatmul.mubr.msk.f32.gmra.mrb[30].mxu0 %vm382_vm0, %v276_v55  ;;  %v334_v55 = vld [vmem:[%s6855_s14 + $0x2c8] sm:$0xff] }
  0x5d   : > { %5694 = vmatprep.mubr.msk.f32.mxu0 %vm382_vm0, %v277_v56  ;;  %v335_v56 = vld [vmem:[%s6855_s14 + $0x2d0] sm:$0xff] }
  0x60   : > { %5695 = vmatmul.mubr.msk.f32.gmra.mrb[32].mxu0 %vm382_vm0, %v278_v57  ;;  %v336_v57 = vld [vmem:[%s6855_s14 + $0x2d8] sm:$0xff] }
  0x61   : > { %5697 = vmatprep.mubr.msk.f32.mxu0 %vm382_vm0, %v279_v58  ;;  %v337_v58 = vld [vmem:[%s6855_s14 + $0x2e0] sm:$0xff] }
  0x64   : > { %5698 = vmatmul.mubr.msk.f32.gmra.mrb[34].mxu0 %vm382_vm0, %v280_v61  ;;  %v340_v61 = vld [vmem:[%s6855_s14 + $0x2f8] sm:$0xff] }
  0x65   : > { %5700 = vmatprep.mubr.msk.f32.mxu0 %vm382_vm0, %v281_v63  ;;  %v342_v63 = vld [vmem:[%s6855_s14 + $0x308] sm:$0xff] }
  0x68   : > { %5701 = vmatmul.mubr.msk.f32.gmra.mrb[36].mxu0 %vm382_vm0, %v282_v0  ;;  %v343_v0 = vld [vmem:[%s6855_s14 + $0x310] sm:$0xff] }
  0x69   : > { %5703 = vmatprep.mubr.msk.f32.mxu0 %vm382_vm0, %v283_v1  ;;  %v344_v1 = vld [vmem:[%s6855_s14 + $0x318] sm:$0xff] }
  0x6c   : > { %5704 = vmatmul.mubr.msk.f32.gmra.mrb[38].mxu0 %vm382_vm0, %v284_v2  ;;  %v345_v2 = vld [vmem:[%s6855_s14 + $0x320] sm:$0xff] }
  0x6d   : > { %5706 = vmatprep.mubr.msk.f32.mxu0 %vm382_vm0, %v285_v3  ;;  %v346_v3 = vld [vmem:[%s6855_s14 + $0x328] sm:$0xff] }
  0x70   : > { %5707 = vmatmul.mubr.msk.f32.gmra.mrb[40].mxu0 %vm382_vm0, %v286_v4  ;;  %v347_v4 = vld [vmem:[%s6855_s14 + $0x330] sm:$0xff] }
  0x71   : > { %5709 = vmatprep.mubr.msk.f32.mxu0 %vm382_vm0, %v287_v5  ;;  %v348_v5 = vld [vmem:[%s6855_s14 + $0x338] sm:$0xff] }
  0x74   : > { %5710 = vmatmul.mubr.msk.f32.gmra.mrb[42].mxu0 %vm382_vm0, %v288_v6  ;;  %v349_v6 = vld [vmem:[%s6855_s14 + $0x340] sm:$0xff] }
  0x75   : > { %5712 = vmatprep.mubr.msk.f32.mxu0 %vm382_vm0, %v289_v7  ;;  %v350_v7 = vld [vmem:[%s6855_s14 + $0x348] sm:$0xff] }
  0x78   : > { %5713 = vmatmul.mubr.msk.f32.gmra.mrb[44].mxu0 %vm382_vm0, %v290_v8  ;;  %v351_v8 = vld [vmem:[%s6855_s14 + $0x350] sm:$0xff] }
  0x79   : > { %5715 = vmatprep.mubr.msk.f32.mxu0 %vm382_vm0, %v291_v9  ;;  %v352_v9 = vld [vmem:[%s6855_s14 + $0x358] sm:$0xff] }
  0x7c   : > { %5716 = vmatmul.mubr.msk.f32.gmra.mrb[46].mxu0 %vm382_vm0, %v292_v10  ;;  %v353_v10 = vld [vmem:[%s6855_s14 + $0x360] sm:$0xff] }
  0x7d   : > { %5718 = vmatprep.mubr.msk.f32.mxu0 %vm382_vm0, %v293_v11 }
  0x80   : > { %5719 = vmatmul.mubr.msk.f32.gmra.mrb[48].mxu0 %vm382_vm0, %v294_v12 }
  0x81   : > { %5721 = vmatprep.mubr.msk.f32.mxu0 %vm382_vm0, %v295_v13  ;;  %v354_v13 = vld [vmem:[%s6855_s14 + $0x368] sm:$0xff] }
  0x84   : > { %5722 = vmatmul.mubr.msk.f32.gmra.mrb[50].mxu0 %vm382_vm0, %v296_v17  ;;  %v356_v17 = vld [vmem:[%s6855_s14 + $0x378] sm:$0xff] }
  0x85   : > { %5724 = vmatprep.mubr.msk.f32.mxu0 %vm382_vm0, %v297_v18  ;;  %v357_v18 = vld [vmem:[%s6855_s14 + $0x380] sm:$0xff] }
  0x88   : > { %5725 = vmatmul.mubr.msk.f32.gmra.mrb[52].mxu0 %vm382_vm0, %v298_v19 }
  0x89   : > { %5727 = vmatprep.mubr.msk.f32.mxu0 %vm382_vm0, %v299_v20 }
  0x8c   : > { %5728 = vmatmul.mubr.msk.f32.gmra.mrb[54].mxu0 %vm382_vm0, %v300_v21  ;;  %v358_v21 = vld [vmem:[%s6855_s14 + $0x388] sm:$0xff] }
  0x8d   : > { %5730 = vmatprep.mubr.msk.f32.mxu0 %vm382_vm0, %v301_v22  ;;  %v359_v22 = vld [vmem:[%s6855_s14 + $0x390] sm:$0xff] }
  0x90   : > { %5731 = vmatmul.mubr.msk.f32.gmra.mrb[56].mxu0 %vm382_vm0, %v302_v23  ;;  %v7130_v23 = vld [vmem:[%s8668_s4] ss:$0 sm:$0xff] }
  0x91   : > { %5733 = vmatprep.mubr.msk.f32.mxu0 %vm382_vm0, %v303_v24 }
  0x94   : > { %5734 = vmatmul.mubr.msk.f32.gmra.mrb[58].mxu0 %vm382_vm0, %v304_v25 }
  0x95   : > { %5736 = vmatprep.mubr.msk.f32.mxu0 %vm382_vm0, %v305_v26 }
  0x98   : > { %5737 = vmatmul.mubr.msk.f32.gmra.mrb[60].mxu0 %vm382_vm0, %v306_v27  ;;  %v360_v27 = vld [vmem:[%s6855_s14 + $0x398] sm:$0xff] }
  0x99   : > { %5739 = vmatprep.mubr.msk.f32.mxu0 %vm382_vm0, %v307_v28 }
  0x9c   : > { %5740 = vmatmul.mubr.msk.f32.gmra.mrb[62].mxu0 %vm382_vm0, %v308_v29  ;;  %v361_v29 = vld [vmem:[%s6855_s14 + $0x3a0] sm:$0xff] }
  0x9d   : > { %5742 = vmatprep.mubr.msk.f32.mxu0 %vm382_vm0, %v309_v30 }
  0xa0   : > { %5743 = vmatmul.mubr.msk.f32.gmra.mrb[64].mxu0 %vm382_vm0, %v310_v31 }
  0xa1   : > { %5745 = vmatprep.mubr.msk.f32.mxu0 %vm382_vm0, %v311_v32 }
  0xa4   : > { %5746 = vmatmul.mubr.msk.f32.gmra.mrb[66].mxu0 %vm382_vm0, %v312_v33 }
  0xa5   : > { %5748 = vmatprep.mubr.msk.f32.mxu0 %vm382_vm0, %v313_v34 }
  0xa8   : > { %5749 = vmatmul.mubr.msk.f32.gmra.mrb[68].mxu0 %vm382_vm0, %v314_v35 }
  0xa9   : > { %5751 = vmatprep.mubr.msk.f32.mxu0 %vm382_vm0, %v315_v36  ;;  %v362_v36 = vld [vmem:[%s6855_s14 + $0x3a8] sm:$0xff] }
  0xac   : > { %5752 = vmatmul.mubr.msk.f32.gmra.mrb[70].mxu0 %vm382_vm0, %v316_v37  ;;  %v363_v37 = vld [vmem:[%s6855_s14 + $0x3b0] sm:$0xff] }
  0xad   : > { %5754 = vmatprep.mubr.msk.f32.mxu0 %vm382_vm0, %v317_v38 }
  0xb0   : > { %5755 = vmatmul.mubr.msk.f32.gmra.mrb[72].mxu0 %vm382_vm0, %v318_v39 }
  0xb1   : > { %5757 = vmatprep.mubr.msk.f32.mxu0 %vm382_vm0, %v319_v40 }
  0xb4   : > { %5758 = vmatmul.mubr.msk.f32.gmra.mrb[74].mxu0 %vm382_vm0, %v320_v41 }
  0xb5   : > { %5760 = vmatprep.mubr.msk.f32.mxu0 %vm382_vm0, %v321_v42 }
  0xb8   : > { %5761 = vmatmul.mubr.msk.f32.gmra.mrb[76].mxu0 %vm382_vm0, %v322_v43 }
  0xb9   : > { %5763 = vmatprep.mubr.msk.f32.mxu0 %vm382_vm0, %v323_v44  ;;  %v364_v44 = vld [vmem:[%s6855_s14 + $0x3b8] sm:$0xff] }
  0xbc   : > { %5764 = vmatmul.mubr.msk.f32.gmra.mrb[78].mxu0 %vm382_vm0, %v324_v45  ;;  %v365_v45 = vld [vmem:[%s6855_s14 + $0x3c0] sm:$0xff] }
  0xbd   : > { %5766 = vmatprep.mubr.msk.f32.mxu0 %vm382_vm0, %v325_v46 }
  0xc0   : > { %5767 = vmatmul.mubr.msk.f32.gmra.mrb[80].mxu0 %vm382_vm0, %v326_v47 }
  0xc1   : > { %5769 = vmatprep.mubr.msk.f32.mxu0 %vm382_vm0, %v327_v48 }
  0xc4   : > { %5770 = vmatmul.mubr.msk.f32.gmra.mrb[82].mxu0 %vm382_vm0, %v328_v49 }
  0xc5   : > { %5772 = vmatprep.mubr.msk.f32.mxu0 %vm382_vm0, %v329_v50 }
  0xc8   : > { %5773 = vmatmul.mubr.msk.f32.gmra.mrb[84].mxu0 %vm382_vm0, %v330_v51 }
  0xc9   : > { %5775 = vmatprep.mubr.msk.f32.mxu0 %vm382_vm0, %v331_v52  ;;  %v366_v52 = vld [vmem:[%s6855_s14 + $0x3c8] sm:$0xff] }
  0xcc   : > { %5776 = vmatmul.mubr.msk.f32.gmra.mrb[86].mxu0 %vm382_vm0, %v332_v53  ;;  %v367_v53 = vld [vmem:[%s6855_s14 + $0x3d0] sm:$0xff] }
  0xcd   : > { %5778 = vmatprep.mubr.msk.f32.mxu0 %vm382_vm0, %v333_v54 }
  0xd0   : > { %5779 = vmatmul.mubr.msk.f32.gmra.mrb[88].mxu0 %vm382_vm0, %v334_v55 }
  0xd1   : > { %5781 = vmatprep.mubr.msk.f32.mxu0 %vm382_vm0, %v335_v56 }
  0xd4   : > { %5782 = vmatmul.mubr.msk.f32.gmra.mrb[90].mxu0 %vm382_vm0, %v336_v57 }
  0xd5   : > { %5784 = vmatprep.mubr.msk.f32.mxu0 %vm382_vm0, %v337_v58 }
  0xd8   : > { %5785 = vmatmul.mubr.msk.f32.gmra.mrb[92].mxu0 %vm382_vm0, %v338_v59 }
  0xd9   : > { %5787 = vmatprep.mubr.msk.f32.mxu0 %vm382_vm0, %v339_v60  ;;  %v368_v60 = vld [vmem:[%s6855_s14 + $0x3d8] sm:$0xff] }
  0xdc   : > { %5788 = vmatmul.mubr.msk.f32.gmra.mrb[94].mxu0 %vm382_vm0, %v340_v61  ;;  %v369_v61 = vld [vmem:[%s6855_s14 + $0x3e0] sm:$0xff] }
  0xdd   : > { %5790 = vmatprep.mubr.msk.f32.mxu0 %vm382_vm0, %v341_v62 }
  0xe0   : > { %5791 = vmatmul.mubr.msk.f32.gmra.mrb[96].mxu0 %vm382_vm0, %v342_v63 }
  0xe1   : > { %5793 = vmatprep.mubr.msk.f32.mxu0 %vm382_vm0, %v343_v0 }
  0xe4   : > { %5794 = vmatmul.mubr.msk.f32.gmra.mrb[98].mxu0 %vm382_vm0, %v344_v1 }
  0xe5   : > { %5796 = vmatprep.mubr.msk.f32.mxu0 %vm382_vm0, %v345_v2 }
  0xe8   : > { %5797 = vmatmul.mubr.msk.f32.gmra.mrb[100].mxu0 %vm382_vm0, %v346_v3 }
  0xe9   : > { %5799 = vmatprep.mubr.msk.f32.mxu0 %vm382_vm0, %v347_v4  ;;  %v370_v4 = vld [vmem:[%s6855_s14 + $0x3e8] sm:$0xff] }
  0xec   : > { %5800 = vmatmul.mubr.msk.f32.gmra.mrb[102].mxu0 %vm382_vm0, %v348_v5  ;;  %v371_v5 = vld [vmem:[%s6855_s14 + $0x3f0] sm:$0xff] }
  0xed   : > { %5802 = vmatprep.mubr.msk.f32.mxu0 %vm382_vm0, %v349_v6 }
  0xf0   : > { %5803 = vmatmul.mubr.msk.f32.gmra.mrb[104].mxu0 %vm382_vm0, %v350_v7 }
  0xf1   : > { %5805 = vmatprep.mubr.msk.f32.mxu0 %vm382_vm0, %v351_v8 }
  0xf3   : > { %v7103_v11 = vpop.f32.mrb[0].mxu0 }
  0xf4   : > { %v7105_v12 = vpop.f32.mrb[1].mxu0  ;;  %5806 = vmatmul.mubr.msk.f32.gmra.mrb[106].mxu0 %vm382_vm0, %v352_v9 }
  0xf5   : > { %5808 = vmatprep.mubr.msk.f32.mxu0 %vm382_vm0, %v353_v10  ;;  %v834_v6 = vadd.f32 %v7130_v23, %v7105_v12 }
  0xf7   : > { %v7111_v15 = vpop.f32.mrb[2].mxu0 }
  0xf8   : > { %v7113_v16 = vpop.f32.mrb[3].mxu0  ;;  %5809 = vmatmul.mubr.msk.f32.gmra.mrb[108].mxu0 %vm382_vm0, %v354_v13 }
  0xf9   : > { %5811 = vmatprep.mubr.msk.f32.mxu0 %vm382_vm0, %v355_v14  ;;  %v844_v12 = vadd.f32 %v7130_v23, %v7113_v16 }
  0xfb   : > { %v7119_v19 = vpop.f32.mrb[4].mxu0 }
  0xfc   : > { %v7121_v20 = vpop.f32.mrb[5].mxu0  ;;  %5812 = vmatmul.mubr.msk.f32.gmra.mrb[110].mxu0 %vm382_vm0, %v356_v17  ;;  %v372_v17 = vld [vmem:[%s6855_s14 + $0x3f8] sm:$0xff]  ;;  %s230_s14 = scalar_lea.vmem [#allocation2], %s8589_s6 }
  0xfd   : > { %5814 = vmatprep.mubr.msk.f32.mxu0 %vm382_vm0, %v357_v18  ;;  %v839_v18 = vadd.f32 %v7103_v11, %v7130_v23  ;;  %s5032_s7 = sshll.u32 %s230_s14, 4  ;;  %s8622_s7 = int_to_ptr.vmem [resolvable:$true] %s5032_s7 }
  0xfe   : > { %s6677_s13 = scalar_lea.vmem %s8622_s7, 128  ;;  %p6684_p0 = scmp.lt.s32.totalorder %s8622_s7, %s6682_s16 }
  0xff   : > { %v5657_v24 = vpop.f32.mrb[6].mxu0  ;;  %v1473_v16 = vmax.f32 %v839_v18, 0.0  ;;  %p6678_p11 = scmp.ne.s32.totalorder %s8622_s7, %s6677_s13  ;;  %p6685_p1 = scmp.lt.s32.totalorder %s6683_s17, %s6677_s13 }
 0x100   : > { %v869_v25 = vadd.f32 %v5657_v24, %v7130_v23  ;;  %v863_v26 = vpop.f32.mrb[7].mxu0  ;;  %5815 = vmatmul.mubr.msk.f32.gmra.mrb[112].mxu0 %vm382_vm0, %v358_v21  ;;  %v1472_v21 = vmax.f32 %v834_v6, 0.0 }
 0x101   : > { %5817 = vmatprep.mubr.msk.f32.mxu0 %vm382_vm0, %v359_v22  ;;  %v864_v28 = vadd.f32 %v7130_v23, %v863_v26  ;;  %p6679_p12 = pnand %p6678_p11, %p6808_p5  ;;  %p6686_p2 = por %p6685_p1, %p6684_p0 }
 0x102   : > { %v1479_v32 = vmax.f32 %v869_v25, 0.0  ;;  %v7182_v25 = vld [vmem:[%s8668_s4 + $0x2] ss:$0 sm:$0xff] }
 0x103   : > { %v5660_v30 = vpop.f32.mrb[8].mxu0  ;;  %v1478_v31 = vmax.f32 %v864_v28, 0.0  ;;  %2856 = vbcast.lane.b32.xlu1 %v7182_v25, 264  ;;  %2852 = vbcast.lane.b32.xlu0 %v7182_v25, 256  ;;  %p6680_p13 = pneg %p6679_p12 }
 0x104   : > { %v879_v33 = vadd.f32 %v5660_v30, %v7130_v23  ;;  %v873_v34 = vpop.f32.mrb[9].mxu0  ;;  %5818 = vmatmul.mubr.msk.f32.gmra.mrb[114].mxu0 %vm382_vm0, %v360_v27 }
 0x105   : > { %v874_v35 = vadd.f32 %v7130_v23, %v873_v34  ;;  %5879 = vmatprep.mubr.f32.mxu1 %v1478_v31  ;;  %5820 = vmatprep.mubr.msk.f32.mxu0 %vm382_vm0, %v361_v29  ;;  %v849_v29 = vadd.f32 %v7111_v15, %v7130_v23  ;;  %v1474_v31 = vmax.f32 %v844_v12, 0.0  ;;  %p6687_p3 = pnand %p6686_p2, %p6680_p13 }
 0x106   : > { %5880 = vmatmul.mubr.f32.vlgmr.msra.gmra.mrb[0].mxu1 %v1479_v32  ;;  %v1481_v40 = vmax.f32 %v879_v33, 0.0  ;;  %v854_v32 = vadd.f32 %v7130_v23, %v7121_v20 }
 0x107   : > { %v1480_v38 = vmax.f32 %v874_v35, 0.0  ;;  %v5663_v39 = vpop.f32.mrb[10].mxu0  ;;  %2860 = vbcast.lane.b32.xlu1 %v7182_v25, 272  ;;  %v1475_v15 = vmax.f32 %v849_v29, 0.0  ;;  %2868 = vbcast.lane.b32.xlu0 %v7182_v25, 288 }
 0x108   : > { %v889_v41 = vadd.f32 %v5663_v39, %v7130_v23  ;;  %v883_v42 = vpop.f32.mrb[11].mxu0  ;;  %5821 = vmatmul.mubr.msk.f32.gmra.mrb[116].mxu0 %vm382_vm0, %v362_v36  ;;  %v1476_v20 = vmax.f32 %v854_v32, 0.0 }
 0x109   : > { %v884_v43 = vadd.f32 %v7130_v23, %v883_v42  ;;  %5882 = vmatprep.mubr.f32.mxu1 %v1480_v38  ;;  %5823 = vmatprep.mubr.msk.f32.mxu0 %vm382_vm0, %v363_v37  ;;  %v859_v38 = vadd.f32 %v7119_v19, %v7130_v23 }
 0x10a   : > { %5883 = vmatmul.mubr.f32.gmra.mrb[2].mxu1 %v1481_v40  ;;  %v1483_v48 = vmax.f32 %v889_v41, 0.0 }
 0x10b   : > { %v1482_v46 = vmax.f32 %v884_v43, 0.0  ;;  %v5666_v47 = vpop.f32.mrb[12].mxu0  ;;  %2864 = vbcast.lane.b32.xlu1 %v7182_v25, 280  ;;  %2876 = vbcast.lane.b32.xlu0 %v7182_v25, 304 }
 0x10c   : > { %v899_v49 = vadd.f32 %v5666_v47, %v7130_v23  ;;  %v893_v50 = vpop.f32.mrb[13].mxu0  ;;  %5824 = vmatmul.mubr.msk.f32.gmra.mrb[118].mxu0 %vm382_vm0, %v364_v44 }
 0x10d   : > { %v894_v51 = vadd.f32 %v7130_v23, %v893_v50  ;;  %5885 = vmatprep.mubr.f32.mxu1 %v1482_v46  ;;  %5826 = vmatprep.mubr.msk.f32.mxu0 %vm382_vm0, %v365_v45  ;;  %v1477_v45 = vmax.f32 %v859_v38, 0.0 }
 0x10e   : > { %5886 = vmatmul.mubr.f32.gmra.mrb[4].mxu1 %v1483_v48  ;;  %v1485_v56 = vmax.f32 %v899_v49, 0.0 }
 0x10f   : > { %v1484_v54 = vmax.f32 %v894_v51, 0.0  ;;  %v5669_v55 = vpop.f32.mrb[14].mxu0  ;;  %2872 = vbcast.lane.b32.xlu1 %v7182_v25, 296  ;;  %2884 = vbcast.lane.b32.xlu0 %v7182_v25, 320 }
 0x110   : > { %v909_v57 = vadd.f32 %v5669_v55, %v7130_v23  ;;  %v903_v58 = vpop.f32.mrb[15].mxu0  ;;  %5827 = vmatmul.mubr.msk.f32.gmra.mrb[120].mxu0 %vm382_vm0, %v366_v52 }
 0x111   : > { %v904_v59 = vadd.f32 %v7130_v23, %v903_v58  ;;  %5888 = vmatprep.mubr.f32.mxu1 %v1484_v54  ;;  %5829 = vmatprep.mubr.msk.f32.mxu0 %vm382_vm0, %v367_v53 }
 0x112   : > { %5889 = vmatmul.mubr.f32.gmra.mrb[6].mxu1 %v1485_v56  ;;  %v1487_v0 = vmax.f32 %v909_v57, 0.0 }
 0x113   : > { %v1486_v62 = vmax.f32 %v904_v59, 0.0  ;;  %v5672_v63 = vpop.f32.mrb[16].mxu0  ;;  %2880 = vbcast.lane.b32.xlu1 %v7182_v25, 312  ;;  %2892 = vbcast.lane.b32.xlu0 %v7182_v25, 336 }
 0x114   : > { %v919_v1 = vadd.f32 %v5672_v63, %v7130_v23  ;;  %v913_v2 = vpop.f32.mrb[17].mxu0  ;;  %5830 = vmatmul.mubr.msk.f32.gmra.mrb[122].mxu0 %vm382_vm0, %v368_v60 }
 0x115   : > { %v914_v3 = vadd.f32 %v7130_v23, %v913_v2  ;;  %5891 = vmatprep.mubr.f32.mxu1 %v1486_v62  ;;  %5832 = vmatprep.mubr.msk.f32.mxu0 %vm382_vm0, %v369_v61 }
 0x116   : > { %5892 = vmatmul.mubr.f32.gmra.mrb[8].mxu1 %v1487_v0  ;;  %v1489_v9 = vmax.f32 %v919_v1, 0.0 }
 0x117   : > { %v1488_v7 = vmax.f32 %v914_v3, 0.0  ;;  %v5675_v8 = vpop.f32.mrb[18].mxu0  ;;  %2888 = vbcast.lane.b32.xlu1 %v7182_v25, 328  ;;  %2900 = vbcast.lane.b32.xlu0 %v7182_v25, 352 }
 0x118   : > { %v929_v10 = vadd.f32 %v5675_v8, %v7130_v23  ;;  %v923_v13 = vpop.f32.mrb[19].mxu0  ;;  %5833 = vmatmul.mubr.msk.f32.gmra.mrb[124].mxu0 %vm382_vm0, %v370_v4 }
 0x119   : > { %v924_v14 = vadd.f32 %v7130_v23, %v923_v13  ;;  %5894 = vmatprep.mubr.f32.mxu1 %v1488_v7  ;;  %5835 = vmatprep.mubr.msk.f32.mxu0 %vm382_vm0, %v371_v5 }
 0x11a   : > { %5895 = vmatmul.mubr.f32.gmra.mrb[10].mxu1 %v1489_v9  ;;  %v1491_v26 = vmax.f32 %v929_v10, 0.0 }
 0x11b   : > { %v1490_v22 = vmax.f32 %v924_v14, 0.0  ;;  %v5678_v24 = vpop.f32.mrb[20].mxu0  ;;  %2896 = vbcast.lane.b32.xlu1 %v7182_v25, 344  ;;  %2908 = vbcast.lane.b32.xlu0 %v7182_v25, 368 }
 0x11c   : > { %v939_v27 = vadd.f32 %v5678_v24, %v7130_v23  ;;  %v933_v28 = vpop.f32.mrb[21].mxu0  ;;  %5836 = vmatmul.mubr.msk.f32.gmra.mrb[126].mxu0 %vm382_vm0, %v372_v17  ;;  %vm5002_vm0 = vcmask 1041409  }
 0x11d   : > { %v934_v11 = vadd.f32 %v7130_v23, %v933_v28  ;;  %5870 = vmatprep.mubr.f32.mxu0 %v1472_v21  ;;  %5897 = vmatprep.mubr.f32.mxu1 %v1490_v22 }
 0x11e   : > { %v1493_v30 = vmax.f32 %v939_v27, 0.0  ;;  %5898 = vmatmul.mubr.f32.gmra.mrb[12].mxu1 %v1491_v26 }
 0x11f   : > { %v1492_v33 = vmax.f32 %v934_v11, 0.0  ;;  %v5681_v34 = vpop.f32.mrb[22].mxu0  ;;  %2904 = vbcast.lane.b32.xlu1 %v7182_v25, 360 }
 0x120   : > { %v949_v35 = vadd.f32 %v5681_v34, %v7130_v23  ;;  %v943_v36 = vpop.f32.mrb[23].mxu0  ;;  %5871 = vmatmul.mubr.f32.vlgmr.msra.gmra.mrb[128].mxu0 %v1473_v16 }
 0x121   : > { %v944_v37 = vadd.f32 %v7130_v23, %v943_v36  ;;  %5873 = vmatprep.mubr.f32.mxu0 %v1474_v31  ;;  %5900 = vmatprep.mubr.f32.mxu1 %v1492_v33 }
 0x122   : > { %v1495_v39 = vmax.f32 %v949_v35, 0.0  ;;  %5901 = vmatmul.mubr.f32.gmra.mrb[14].mxu1 %v1493_v30 }
 0x123   : > { %v1494_v40 = vmax.f32 %v944_v37, 0.0  ;;  %v5684_v41 = vpop.f32.mrb[24].mxu0  ;;  %2912 = vbcast.lane.b32.xlu1 %v7182_v25, 376 }
 0x124   : > { %v959_v42 = vadd.f32 %v5684_v41, %v7130_v23  ;;  %v953_v43 = vpop.f32.mrb[25].mxu0  ;;  %5874 = vmatmul.mubr.f32.gmra.mrb[130].mxu0 %v1475_v15 }
 0x125   : > { %v954_v44 = vadd.f32 %v7130_v23, %v953_v43  ;;  %5876 = vmatprep.mubr.f32.mxu0 %v1476_v20  ;;  %5903 = vmatprep.mubr.f32.mxu1 %v1494_v40 }
 0x126   : > { %v1497_v46 = vmax.f32 %v959_v42, 0.0  ;;  %5904 = vmatmul.mubr.f32.gmra.mrb[16].mxu1 %v1495_v39 }
 0x127   : > { %v1496_v19 = vmax.f32 %v954_v44, 0.0  ;;  %v5687_v47 = vpop.f32.mrb[26].mxu0 }
 0x128   : > { %v969_v48 = vadd.f32 %v5687_v47, %v7130_v23  ;;  %v963_v49 = vpop.f32.mrb[27].mxu0  ;;  %5877 = vmatmul.mubr.f32.gmra.mrb[132].mxu0 %v1477_v45 }
 0x129   : > { %v964_v50 = vadd.f32 %v7130_v23, %v963_v49  ;;  %5906 = vmatprep.mubr.f32.mxu1 %v1496_v19 }
 0x12a   : > { %v1499_v51 = vmax.f32 %v969_v48, 0.0  ;;  %5907 = vmatmul.mubr.f32.gmra.mrb[18].mxu1 %v1497_v46 }
 0x12b   : > { %v1498_v52 = vmax.f32 %v964_v50, 0.0  ;;  %v5690_v53 = vpop.f32.mrb[28].mxu0 }
 0x12c   : > { %v979_v54 = vadd.f32 %v5690_v53, %v7130_v23  ;;  %v973_v55 = vpop.f32.mrb[29].mxu0 }
 0x12d   : > { %v974_v56 = vadd.f32 %v7130_v23, %v973_v55  ;;  %5909 = vmatprep.mubr.f32.mxu1 %v1498_v52 }
 0x12e   : > { %v1501_v57 = vmax.f32 %v979_v54, 0.0  ;;  %5910 = vmatmul.mubr.f32.gmra.mrb[20].mxu1 %v1499_v51 }
 0x12f   : > { %v1500_v58 = vmax.f32 %v974_v56, 0.0  ;;  %v5693_v59 = vpop.f32.mrb[30].mxu0 }
 0x130   : > { %v989_v60 = vadd.f32 %v5693_v59, %v7130_v23  ;;  %v983_v61 = vpop.f32.mrb[31].mxu0 }
 0x131   : > { %v984_v62 = vadd.f32 %v7130_v23, %v983_v61  ;;  %5912 = vmatprep.mubr.f32.mxu1 %v1500_v58 }
 0x132   : > { %v1503_v63 = vmax.f32 %v989_v60, 0.0  ;;  %5913 = vmatmul.mubr.f32.gmra.mrb[22].mxu1 %v1501_v57 }
 0x133   : > { %v1502_v0 = vmax.f32 %v984_v62, 0.0  ;;  %v5696_v1 = vpop.f32.mrb[32].mxu0 }
 0x134   : > { %v999_v2 = vadd.f32 %v5696_v1, %v7130_v23  ;;  %v993_v3 = vpop.f32.mrb[33].mxu0 }
 0x135   : > { %v994_v4 = vadd.f32 %v7130_v23, %v993_v3  ;;  %5915 = vmatprep.mubr.f32.mxu1 %v1502_v0 }
 0x136   : > { %v1505_v5 = vmax.f32 %v999_v2, 0.0  ;;  %5916 = vmatmul.mubr.f32.gmra.mrb[24].mxu1 %v1503_v63 }
 0x137   : > { %v1504_v6 = vmax.f32 %v994_v4, 0.0  ;;  %v5699_v7 = vpop.f32.mrb[34].mxu0 }
 0x138   : > { %v1009_v8 = vadd.f32 %v5699_v7, %v7130_v23  ;;  %v1003_v9 = vpop.f32.mrb[35].mxu0 }
 0x139   : > { %v1004_v10 = vadd.f32 %v7130_v23, %v1003_v9  ;;  %5918 = vmatprep.mubr.f32.mxu1 %v1504_v6 }
 0x13a   : > { %v1507_v13 = vmax.f32 %v1009_v8, 0.0  ;;  %5919 = vmatmul.mubr.f32.gmra.mrb[26].mxu1 %v1505_v5 }
 0x13b   : > { %v1506_v14 = vmax.f32 %v1004_v10, 0.0  ;;  %v5702_v17 = vpop.f32.mrb[36].mxu0 }
 0x13c   : > { %v1019_v18 = vadd.f32 %v5702_v17, %v7130_v23  ;;  %v1013_v21 = vpop.f32.mrb[37].mxu0 }
 0x13d   : > { %v1014_v12 = vadd.f32 %v7130_v23, %v1013_v21  ;;  %5921 = vmatprep.mubr.f32.mxu1 %v1506_v14 }
 0x13e   : > { %v1509_v22 = vmax.f32 %v1019_v18, 0.0  ;;  %5922 = vmatmul.mubr.f32.gmra.mrb[28].mxu1 %v1507_v13 }
 0x13f   : > { %v1508_v24 = vmax.f32 %v1014_v12, 0.0  ;;  %v5705_v26 = vpop.f32.mrb[38].mxu0 }
 0x140   : > { %v1029_v27 = vadd.f32 %v5705_v26, %v7130_v23  ;;  %v1023_v28 = vpop.f32.mrb[39].mxu0 }
 0x141   : > { %v1024_v11 = vadd.f32 %v7130_v23, %v1023_v28  ;;  %5924 = vmatprep.mubr.f32.mxu1 %v1508_v24 }
 0x142   : > { %v1511_v16 = vmax.f32 %v1029_v27, 0.0  ;;  %5925 = vmatmul.mubr.f32.gmra.mrb[30].mxu1 %v1509_v22 }
 0x143   : > { %v1510_v29 = vmax.f32 %v1024_v11, 0.0  ;;  %v5708_v30 = vpop.f32.mrb[40].mxu0 }
 0x144   : > { %v1039_v31 = vadd.f32 %v5708_v30, %v7130_v23  ;;  %v1033_v25 = vpop.f32.mrb[41].mxu0 }
 0x145   : > { %v1034_v32 = vadd.f32 %v7130_v23, %v1033_v25  ;;  %5927 = vmatprep.mubr.f32.mxu1 %v1510_v29 }
 0x146   : > { %v1513_v33 = vmax.f32 %v1039_v31, 0.0  ;;  %5928 = vmatmul.mubr.f32.gmra.mrb[32].mxu1 %v1511_v16 }
 0x147   : > { %v1512_v34 = vmax.f32 %v1034_v32, 0.0  ;;  %v5711_v35 = vpop.f32.mrb[42].mxu0 }
 0x148   : > { %v1049_v36 = vadd.f32 %v5711_v35, %v7130_v23  ;;  %v1043_v37 = vpop.f32.mrb[43].mxu0 }
 0x149   : > { %v1044_v15 = vadd.f32 %v7130_v23, %v1043_v37  ;;  %5930 = vmatprep.mubr.f32.mxu1 %v1512_v34 }
 0x14a   : > { %v1515_v38 = vmax.f32 %v1049_v36, 0.0  ;;  %5931 = vmatmul.mubr.f32.gmra.mrb[34].mxu1 %v1513_v33 }
 0x14b   : > { %v1514_v39 = vmax.f32 %v1044_v15, 0.0  ;;  %v5714_v20 = vpop.f32.mrb[44].mxu0 }
 0x14c   : > { %v1059_v40 = vadd.f32 %v5714_v20, %v7130_v23  ;;  %v1053_v41 = vpop.f32.mrb[45].mxu0 }
 0x14d   : > { %v1054_v42 = vadd.f32 %v7130_v23, %v1053_v41  ;;  %5933 = vmatprep.mubr.f32.mxu1 %v1514_v39 }
 0x14e   : > { %v1517_v43 = vmax.f32 %v1059_v40, 0.0  ;;  %5934 = vmatmul.mubr.f32.gmra.mrb[36].mxu1 %v1515_v38 }
 0x14f   : > { %v1516_v44 = vmax.f32 %v1054_v42, 0.0  ;;  %v5717_v45 = vpop.f32.mrb[46].mxu0 }
 0x150   : > { %v1069_v46 = vadd.f32 %v5717_v45, %v7130_v23  ;;  %v1063_v19 = vpop.f32.mrb[47].mxu0 }
 0x151   : > { %v1064_v47 = vadd.f32 %v7130_v23, %v1063_v19  ;;  %5936 = vmatprep.mubr.f32.mxu1 %v1516_v44 }
 0x152   : > { %v1519_v48 = vmax.f32 %v1069_v46, 0.0  ;;  %5937 = vmatmul.mubr.f32.gmra.mrb[38].mxu1 %v1517_v43 }
 0x153   : > { %v1518_v49 = vmax.f32 %v1064_v47, 0.0  ;;  %v5720_v50 = vpop.f32.mrb[48].mxu0 }
 0x154   : > { %v1079_v51 = vadd.f32 %v5720_v50, %v7130_v23  ;;  %v1073_v52 = vpop.f32.mrb[49].mxu0 }
 0x155   : > { %v1074_v53 = vadd.f32 %v7130_v23, %v1073_v52  ;;  %5939 = vmatprep.mubr.f32.mxu1 %v1518_v49 }
 0x156   : > { %v1521_v54 = vmax.f32 %v1079_v51, 0.0  ;;  %5940 = vmatmul.mubr.f32.gmra.mrb[40].mxu1 %v1519_v48 }
 0x157   : > { %v1520_v55 = vmax.f32 %v1074_v53, 0.0  ;;  %v5723_v56 = vpop.f32.mrb[50].mxu0 }
 0x158   : > { %v1089_v57 = vadd.f32 %v5723_v56, %v7130_v23  ;;  %v1083_v58 = vpop.f32.mrb[51].mxu0 }
 0x159   : > { %v1084_v59 = vadd.f32 %v7130_v23, %v1083_v58  ;;  %5942 = vmatprep.mubr.f32.mxu1 %v1520_v55 }
 0x15a   : > { %v1523_v60 = vmax.f32 %v1089_v57, 0.0  ;;  %5943 = vmatmul.mubr.f32.gmra.mrb[42].mxu1 %v1521_v54 }
 0x15b   : > { %v1522_v61 = vmax.f32 %v1084_v59, 0.0  ;;  %v5726_v62 = vpop.f32.mrb[52].mxu0 }
 0x15c   : > { %v1099_v63 = vadd.f32 %v5726_v62, %v7130_v23  ;;  %v1093_v0 = vpop.f32.mrb[53].mxu0 }
 0x15d   : > { %v1094_v1 = vadd.f32 %v7130_v23, %v1093_v0  ;;  %5945 = vmatprep.mubr.f32.mxu1 %v1522_v61 }
 0x15e   : > { %v1525_v2 = vmax.f32 %v1099_v63, 0.0  ;;  %5946 = vmatmul.mubr.f32.gmra.mrb[44].mxu1 %v1523_v60 }
 0x15f   : > { %v1524_v3 = vmax.f32 %v1094_v1, 0.0  ;;  %v5729_v4 = vpop.f32.mrb[54].mxu0 }
 0x160   : > { %v1109_v5 = vadd.f32 %v5729_v4, %v7130_v23  ;;  %v1103_v6 = vpop.f32.mrb[55].mxu0 }
 0x161   : > { %v1104_v7 = vadd.f32 %v7130_v23, %v1103_v6  ;;  %5948 = vmatprep.mubr.f32.mxu1 %v1524_v3 }
 0x162   : > { %v1527_v8 = vmax.f32 %v1109_v5, 0.0  ;;  %5949 = vmatmul.mubr.f32.gmra.mrb[46].mxu1 %v1525_v2 }
 0x163   : > { %v1526_v9 = vmax.f32 %v1104_v7, 0.0  ;;  %v5732_v10 = vpop.f32.mrb[56].mxu0 }
 0x164   : > { %v1119_v13 = vadd.f32 %v5732_v10, %v7130_v23  ;;  %v1113_v14 = vpop.f32.mrb[57].mxu0 }
 0x165   : > { %v1114_v17 = vadd.f32 %v7130_v23, %v1113_v14  ;;  %5951 = vmatprep.mubr.f32.mxu1 %v1526_v9 }
 0x166   : > { %v1529_v18 = vmax.f32 %v1119_v13, 0.0  ;;  %5952 = vmatmul.mubr.f32.gmra.mrb[48].mxu1 %v1527_v8 }
 0x167   : > { %v1528_v21 = vmax.f32 %v1114_v17, 0.0  ;;  %v5735_v12 = vpop.f32.mrb[58].mxu0 }
 0x168   : > { %v1129_v22 = vadd.f32 %v5735_v12, %v7130_v23  ;;  %v1123_v24 = vpop.f32.mrb[59].mxu0 }
 0x169   : > { %v1124_v26 = vadd.f32 %v7130_v23, %v1123_v24  ;;  %5954 = vmatprep.mubr.f32.mxu1 %v1528_v21 }
 0x16a   : > { %v1531_v27 = vmax.f32 %v1129_v22, 0.0  ;;  %5955 = vmatmul.mubr.f32.gmra.mrb[50].mxu1 %v1529_v18 }
 0x16b   : > { %v1530_v28 = vmax.f32 %v1124_v26, 0.0  ;;  %v5738_v11 = vpop.f32.mrb[60].mxu0 }
 0x16c   : > { %v1139_v16 = vadd.f32 %v5738_v11, %v7130_v23  ;;  %v1133_v29 = vpop.f32.mrb[61].mxu0 }
 0x16d   : > { %v1134_v30 = vadd.f32 %v7130_v23, %v1133_v29  ;;  %5957 = vmatprep.mubr.f32.mxu1 %v1530_v28 }
 0x16e   : > { %v1533_v31 = vmax.f32 %v1139_v16, 0.0  ;;  %5958 = vmatmul.mubr.f32.gmra.mrb[52].mxu1 %v1531_v27 }
 0x16f   : > { %v1532_v25 = vmax.f32 %v1134_v30, 0.0  ;;  %v5741_v32 = vpop.f32.mrb[62].mxu0 }
 0x170   : > { %v1149_v33 = vadd.f32 %v5741_v32, %v7130_v23  ;;  %v1143_v34 = vpop.f32.mrb[63].mxu0 }
 0x171   : > { %v1144_v35 = vadd.f32 %v7130_v23, %v1143_v34  ;;  %5960 = vmatprep.mubr.f32.mxu1 %v1532_v25 }
 0x172   : > { %v1535_v36 = vmax.f32 %v1149_v33, 0.0  ;;  %5961 = vmatmul.mubr.f32.gmra.mrb[54].mxu1 %v1533_v31 }
 0x173   : > { %v1534_v37 = vmax.f32 %v1144_v35, 0.0  ;;  %v5744_v15 = vpop.f32.mrb[64].mxu0 }
 0x174   : > { %v1159_v38 = vadd.f32 %v5744_v15, %v7130_v23  ;;  %v1153_v39 = vpop.f32.mrb[65].mxu0 }
 0x175   : > { %v1154_v20 = vadd.f32 %v7130_v23, %v1153_v39  ;;  %5963 = vmatprep.mubr.f32.mxu1 %v1534_v37 }
 0x176   : > { %v1537_v40 = vmax.f32 %v1159_v38, 0.0  ;;  %5964 = vmatmul.mubr.f32.gmra.mrb[56].mxu1 %v1535_v36 }
 0x177   : > { %v1536_v41 = vmax.f32 %v1154_v20, 0.0  ;;  %v5747_v42 = vpop.f32.mrb[66].mxu0 }
 0x178   : > { %v1169_v43 = vadd.f32 %v5747_v42, %v7130_v23  ;;  %v1163_v44 = vpop.f32.mrb[67].mxu0 }
 0x179   : > { %v1164_v45 = vadd.f32 %v7130_v23, %v1163_v44  ;;  %5966 = vmatprep.mubr.f32.mxu1 %v1536_v41 }
 0x17a   : > { %v1539_v46 = vmax.f32 %v1169_v43, 0.0  ;;  %5967 = vmatmul.mubr.f32.gmra.mrb[58].mxu1 %v1537_v40 }
 0x17b   : > { %v1538_v19 = vmax.f32 %v1164_v45, 0.0  ;;  %v5750_v47 = vpop.f32.mrb[68].mxu0 }
 0x17c   : > { %v1179_v48 = vadd.f32 %v5750_v47, %v7130_v23  ;;  %v1173_v49 = vpop.f32.mrb[69].mxu0 }
 0x17d   : > { %v1174_v50 = vadd.f32 %v7130_v23, %v1173_v49  ;;  %5969 = vmatprep.mubr.f32.mxu1 %v1538_v19 }
 0x17e   : > { %v1541_v51 = vmax.f32 %v1179_v48, 0.0  ;;  %5970 = vmatmul.mubr.f32.gmra.mrb[60].mxu1 %v1539_v46 }
 0x17f   : > { %v1540_v52 = vmax.f32 %v1174_v50, 0.0  ;;  %v5753_v53 = vpop.f32.mrb[70].mxu0 }
 0x180   : > { %v1189_v54 = vadd.f32 %v5753_v53, %v7130_v23  ;;  %v1183_v55 = vpop.f32.mrb[71].mxu0 }
 0x181   : > { %v1184_v56 = vadd.f32 %v7130_v23, %v1183_v55  ;;  %5972 = vmatprep.mubr.f32.mxu1 %v1540_v52 }
 0x182   : > { %v1543_v57 = vmax.f32 %v1189_v54, 0.0  ;;  %5973 = vmatmul.mubr.f32.gmra.mrb[62].mxu1 %v1541_v51 }
 0x183   : > { %v1542_v58 = vmax.f32 %v1184_v56, 0.0  ;;  %v5756_v59 = vpop.f32.mrb[72].mxu0 }
 0x184   : > { %v1199_v60 = vadd.f32 %v5756_v59, %v7130_v23  ;;  %v1193_v61 = vpop.f32.mrb[73].mxu0 }
 0x185   : > { %v1194_v62 = vadd.f32 %v7130_v23, %v1193_v61  ;;  %5975 = vmatprep.mubr.f32.mxu1 %v1542_v58 }
 0x186   : > { %v1545_v63 = vmax.f32 %v1199_v60, 0.0  ;;  %5976 = vmatmul.mubr.f32.gmra.mrb[64].mxu1 %v1543_v57 }
 0x187   : > { %v1544_v0 = vmax.f32 %v1194_v62, 0.0  ;;  %v5759_v1 = vpop.f32.mrb[74].mxu0 }
 0x188   : > { %v1209_v2 = vadd.f32 %v5759_v1, %v7130_v23  ;;  %v1203_v3 = vpop.f32.mrb[75].mxu0 }
 0x189   : > { %v1204_v4 = vadd.f32 %v7130_v23, %v1203_v3  ;;  %5978 = vmatprep.mubr.f32.mxu1 %v1544_v0 }
 0x18a   : > { %v1547_v5 = vmax.f32 %v1209_v2, 0.0  ;;  %5979 = vmatmul.mubr.f32.gmra.mrb[66].mxu1 %v1545_v63 }
 0x18b   : > { %v1546_v6 = vmax.f32 %v1204_v4, 0.0  ;;  %v5762_v7 = vpop.f32.mrb[76].mxu0 }
 0x18c   : > { %v1219_v8 = vadd.f32 %v5762_v7, %v7130_v23  ;;  %v1213_v9 = vpop.f32.mrb[77].mxu0 }
 0x18d   : > { %v1214_v10 = vadd.f32 %v7130_v23, %v1213_v9  ;;  %5981 = vmatprep.mubr.f32.mxu1 %v1546_v6 }
 0x18e   : > { %v1549_v13 = vmax.f32 %v1219_v8, 0.0  ;;  %5982 = vmatmul.mubr.f32.gmra.mrb[68].mxu1 %v1547_v5 }
 0x18f   : > { %v1548_v14 = vmax.f32 %v1214_v10, 0.0  ;;  %v5765_v17 = vpop.f32.mrb[78].mxu0 }
 0x190   : > { %v1229_v18 = vadd.f32 %v5765_v17, %v7130_v23  ;;  %v1223_v21 = vpop.f32.mrb[79].mxu0 }
 0x191   : > { %v1224_v12 = vadd.f32 %v7130_v23, %v1223_v21  ;;  %5984 = vmatprep.mubr.f32.mxu1 %v1548_v14 }
 0x192   : > { %v1551_v22 = vmax.f32 %v1229_v18, 0.0  ;;  %5985 = vmatmul.mubr.f32.gmra.mrb[70].mxu1 %v1549_v13 }
 0x193   : > { %v1550_v24 = vmax.f32 %v1224_v12, 0.0  ;;  %v5768_v26 = vpop.f32.mrb[80].mxu0 }
 0x194   : > { %v1239_v27 = vadd.f32 %v5768_v26, %v7130_v23  ;;  %v1233_v28 = vpop.f32.mrb[81].mxu0 }
 0x195   : > { %v1234_v11 = vadd.f32 %v7130_v23, %v1233_v28  ;;  %5987 = vmatprep.mubr.f32.mxu1 %v1550_v24 }
 0x196   : > { %v1553_v16 = vmax.f32 %v1239_v27, 0.0  ;;  %5988 = vmatmul.mubr.f32.gmra.mrb[72].mxu1 %v1551_v22 }
 0x197   : > { %v1552_v29 = vmax.f32 %v1234_v11, 0.0  ;;  %v5771_v30 = vpop.f32.mrb[82].mxu0 }
 0x198   : > { %v1249_v31 = vadd.f32 %v5771_v30, %v7130_v23  ;;  %v1243_v25 = vpop.f32.mrb[83].mxu0 }
 0x199   : > { %v1244_v32 = vadd.f32 %v7130_v23, %v1243_v25  ;;  %5990 = vmatprep.mubr.f32.mxu1 %v1552_v29 }
 0x19a   : > { %v1555_v33 = vmax.f32 %v1249_v31, 0.0  ;;  %5991 = vmatmul.mubr.f32.gmra.mrb[74].mxu1 %v1553_v16 }
 0x19b   : > { %v1554_v34 = vmax.f32 %v1244_v32, 0.0  ;;  %v5774_v35 = vpop.f32.mrb[84].mxu0 }
 0x19c   : > { %v1259_v36 = vadd.f32 %v5774_v35, %v7130_v23  ;;  %v1253_v37 = vpop.f32.mrb[85].mxu0 }
 0x19d   : > { %v1254_v15 = vadd.f32 %v7130_v23, %v1253_v37  ;;  %5993 = vmatprep.mubr.f32.mxu1 %v1554_v34 }
 0x19e   : > { %v1557_v38 = vmax.f32 %v1259_v36, 0.0  ;;  %5994 = vmatmul.mubr.f32.gmra.mrb[76].mxu1 %v1555_v33 }
 0x19f   : > { %v1556_v39 = vmax.f32 %v1254_v15, 0.0  ;;  %v5777_v20 = vpop.f32.mrb[86].mxu0 }
 0x1a0   : > { %v1269_v40 = vadd.f32 %v5777_v20, %v7130_v23  ;;  %v1263_v41 = vpop.f32.mrb[87].mxu0 }
 0x1a1   : > { %v1264_v42 = vadd.f32 %v7130_v23, %v1263_v41  ;;  %5996 = vmatprep.mubr.f32.mxu1 %v1556_v39 }
 0x1a2   : > { %v1559_v43 = vmax.f32 %v1269_v40, 0.0  ;;  %5997 = vmatmul.mubr.f32.gmra.mrb[78].mxu1 %v1557_v38 }
 0x1a3   : > { %v1558_v44 = vmax.f32 %v1264_v42, 0.0  ;;  %v5780_v45 = vpop.f32.mrb[88].mxu0 }
 0x1a4   : > { %v1279_v46 = vadd.f32 %v5780_v45, %v7130_v23  ;;  %v1273_v19 = vpop.f32.mrb[89].mxu0 }
 0x1a5   : > { %v1274_v47 = vadd.f32 %v7130_v23, %v1273_v19  ;;  %5999 = vmatprep.mubr.f32.mxu1 %v1558_v44 }
 0x1a6   : > { %v1561_v48 = vmax.f32 %v1279_v46, 0.0  ;;  %6000 = vmatmul.mubr.f32.gmra.mrb[80].mxu1 %v1559_v43 }
 0x1a7   : > { %v1560_v49 = vmax.f32 %v1274_v47, 0.0  ;;  %v5783_v50 = vpop.f32.mrb[90].mxu0 }
 0x1a8   : > { %v1289_v51 = vadd.f32 %v5783_v50, %v7130_v23  ;;  %v1283_v52 = vpop.f32.mrb[91].mxu0 }
 0x1a9   : > { %v1284_v53 = vadd.f32 %v7130_v23, %v1283_v52  ;;  %6002 = vmatprep.mubr.f32.mxu1 %v1560_v49 }
 0x1aa   : > { %v1563_v54 = vmax.f32 %v1289_v51, 0.0  ;;  %6003 = vmatmul.mubr.f32.gmra.mrb[82].mxu1 %v1561_v48 }
 0x1ab   : > { %v1562_v55 = vmax.f32 %v1284_v53, 0.0  ;;  %v5786_v56 = vpop.f32.mrb[92].mxu0 }
 0x1ac   : > { %v1299_v57 = vadd.f32 %v5786_v56, %v7130_v23  ;;  %v1293_v58 = vpop.f32.mrb[93].mxu0 }
 0x1ad   : > { %v1294_v59 = vadd.f32 %v7130_v23, %v1293_v58  ;;  %6005 = vmatprep.mubr.f32.mxu1 %v1562_v55 }
 0x1ae   : > { %v1565_v60 = vmax.f32 %v1299_v57, 0.0  ;;  %6006 = vmatmul.mubr.f32.gmra.mrb[84].mxu1 %v1563_v54 }
 0x1af   : > { %v1564_v61 = vmax.f32 %v1294_v59, 0.0  ;;  %v5789_v62 = vpop.f32.mrb[94].mxu0 }
 0x1b0   : > { %v1309_v63 = vadd.f32 %v5789_v62, %v7130_v23  ;;  %v1303_v0 = vpop.f32.mrb[95].mxu0 }
 0x1b1   : > { %v1304_v1 = vadd.f32 %v7130_v23, %v1303_v0  ;;  %6008 = vmatprep.mubr.f32.mxu1 %v1564_v61 }
 0x1b2   : > { %v1567_v2 = vmax.f32 %v1309_v63, 0.0  ;;  %6009 = vmatmul.mubr.f32.gmra.mrb[86].mxu1 %v1565_v60  ;;  %v7304_v60 = vld [vmem:[%s8668_s4 + $0x1] ss:$0 sm:$0xff] }
 0x1b3   : > { %v1566_v3 = vmax.f32 %v1304_v1, 0.0  ;;  %v5792_v4 = vpop.f32.mrb[96].mxu0 }
 0x1b4   : > { %v1319_v5 = vadd.f32 %v5792_v4, %v7130_v23  ;;  %v1313_v6 = vpop.f32.mrb[97].mxu0 }
 0x1b5   : > { %v1314_v7 = vadd.f32 %v7130_v23, %v1313_v6  ;;  %6011 = vmatprep.mubr.f32.mxu1 %v1566_v3 }
 0x1b6   : > { %v1569_v8 = vmax.f32 %v1319_v5, 0.0  ;;  %6012 = vmatmul.mubr.f32.gmra.mrb[88].mxu1 %v1567_v2 }
 0x1b7   : > { %v1568_v9 = vmax.f32 %v1314_v7, 0.0  ;;  %v5795_v10 = vpop.f32.mrb[98].mxu0  ;;  %v7313_v7 = vld [vmem:[%s8667_s3] ss:$0 sm:$0xff] }
 0x1b8   : > { %v1329_v13 = vadd.f32 %v5795_v10, %v7130_v23  ;;  %v1323_v14 = vpop.f32.mrb[99].mxu0 }
 0x1b9   : > { %v1324_v17 = vadd.f32 %v7130_v23, %v1323_v14  ;;  %6014 = vmatprep.mubr.f32.mxu1 %v1568_v9  ;;  %v7319_v14 = vld [vmem:[%s8668_s4] ss:$0 sm:$0xff] }
 0x1ba   : > { %v1571_v18 = vmax.f32 %v1329_v13, 0.0  ;;  %6015 = vmatmul.mubr.f32.gmra.mrb[90].mxu1 %v1569_v8 }
 0x1bb   : > { %v1570_v21 = vmax.f32 %v1324_v17, 0.0  ;;  %v5798_v12 = vpop.f32.mrb[100].mxu0 }
 0x1bc   : > { %v1339_v22 = vadd.f32 %v5798_v12, %v7130_v23  ;;  %v1333_v24 = vpop.f32.mrb[101].mxu0 }
 0x1bd   : > { %v1334_v26 = vadd.f32 %v7130_v23, %v1333_v24  ;;  %6017 = vmatprep.mubr.f32.mxu1 %v1570_v21 }
 0x1be   : > { %v1573_v27 = vmax.f32 %v1339_v22, 0.0  ;;  %6018 = vmatmul.mubr.f32.gmra.mrb[92].mxu1 %v1571_v18 }
 0x1bf   : > { %v1572_v28 = vmax.f32 %v1334_v26, 0.0  ;;  %v5801_v11 = vpop.f32.mrb[102].mxu0 }
 0x1c0   : > { %v1349_v16 = vadd.f32 %v5801_v11, %v7130_v23  ;;  %v1343_v29 = vpop.f32.mrb[103].mxu0 }
 0x1c1   : > { %v1344_v30 = vadd.f32 %v7130_v23, %v1343_v29  ;;  %6020 = vmatprep.mubr.f32.mxu1 %v1572_v28 }
 0x1c2   : > { %v1575_v31 = vmax.f32 %v1349_v16, 0.0  ;;  %6021 = vmatmul.mubr.f32.gmra.mrb[94].mxu1 %v1573_v27 }
 0x1c3   : > { %v1574_v25 = vmax.f32 %v1344_v30, 0.0  ;;  %v5804_v32 = vpop.f32.mrb[104].mxu0 }
 0x1c4   : > { %v1359_v33 = vadd.f32 %v5804_v32, %v7130_v23  ;;  %v1353_v34 = vpop.f32.mrb[105].mxu0 }
 0x1c5   : > { %v1354_v35 = vadd.f32 %v7130_v23, %v1353_v34  ;;  %6023 = vmatprep.mubr.f32.mxu1 %v1574_v25 }
 0x1c6   : > { %v1577_v36 = vmax.f32 %v1359_v33, 0.0  ;;  %6024 = vmatmul.mubr.f32.gmra.mrb[96].mxu1 %v1575_v31 }
 0x1c7   : > { %v1576_v37 = vmax.f32 %v1354_v35, 0.0  ;;  %v5807_v15 = vpop.f32.mrb[106].mxu0 }
 0x1c8   : > { %v1369_v38 = vadd.f32 %v5807_v15, %v7130_v23  ;;  %v1363_v39 = vpop.f32.mrb[107].mxu0 }
 0x1c9   : > { %v1364_v20 = vadd.f32 %v7130_v23, %v1363_v39  ;;  %6026 = vmatprep.mubr.f32.mxu1 %v1576_v37 }
 0x1ca   : > { %v1579_v40 = vmax.f32 %v1369_v38, 0.0  ;;  %6027 = vmatmul.mubr.f32.gmra.mrb[98].mxu1 %v1577_v36 }
 0x1cb   : > { %v1578_v41 = vmax.f32 %v1364_v20, 0.0  ;;  %v5810_v42 = vpop.f32.mrb[108].mxu0 }
 0x1cc   : > { %v1379_v43 = vadd.f32 %v5810_v42, %v7130_v23  ;;  %v1373_v44 = vpop.f32.mrb[109].mxu0 }
 0x1cd   : > { %v1374_v45 = vadd.f32 %v7130_v23, %v1373_v44  ;;  %6029 = vmatprep.mubr.f32.mxu1 %v1578_v41 }
 0x1ce   : > { %v1581_v46 = vmax.f32 %v1379_v43, 0.0  ;;  %6030 = vmatmul.mubr.f32.gmra.mrb[100].mxu1 %v1579_v40 }
 0x1cf   : > { %v1580_v19 = vmax.f32 %v1374_v45, 0.0  ;;  %v5813_v47 = vpop.f32.mrb[110].mxu0 }
 0x1d0   : > { %v1389_v48 = vadd.f32 %v5813_v47, %v7130_v23  ;;  %v1383_v49 = vpop.f32.mrb[111].mxu0 }
 0x1d1   : > { %v1384_v50 = vadd.f32 %v7130_v23, %v1383_v49  ;;  %6032 = vmatprep.mubr.f32.mxu1 %v1580_v19 }
 0x1d2   : > { %v1583_v51 = vmax.f32 %v1389_v48, 0.0  ;;  %6033 = vmatmul.mubr.f32.gmra.mrb[102].mxu1 %v1581_v46 }
 0x1d3   : > { %v1582_v52 = vmax.f32 %v1384_v50, 0.0  ;;  %v5816_v53 = vpop.f32.mrb[112].mxu0 }
 0x1d4   : > { %v1399_v54 = vadd.f32 %v5816_v53, %v7130_v23  ;;  %v1393_v55 = vpop.f32.mrb[113].mxu0 }
 0x1d5   : > { %v1394_v56 = vadd.f32 %v7130_v23, %v1393_v55  ;;  %6035 = vmatprep.mubr.f32.mxu1 %v1582_v52 }
 0x1d6   : > { %v1585_v57 = vmax.f32 %v1399_v54, 0.0  ;;  %6036 = vmatmul.mubr.f32.gmra.mrb[104].mxu1 %v1583_v51 }
 0x1d7   : > { %v1584_v58 = vmax.f32 %v1394_v56, 0.0  ;;  %v5819_v59 = vpop.f32.mrb[114].mxu0 }
 0x1d8   : > { %v1409_v61 = vadd.f32 %v5819_v59, %v7130_v23  ;;  %v1403_v62 = vpop.f32.mrb[115].mxu0 }
 0x1d9   : > { %v1404_v63 = vadd.f32 %v7130_v23, %v1403_v62  ;;  %v5881_v0 = vpop.f32.mrb[0].mxu1  ;;  %6038 = vmatprep.mubr.f32.mxu1 %v1584_v58 }
 0x1da   : > { %v1587_v1 = vmax.f32 %v1409_v61, 0.0  ;;  %v1723_v2 = vadd.f32 %v5881_v0, %v7304_v60  ;;  %v1717_v3 = vpop.f32.mrb[1].mxu1  ;;  %6039 = vmatmul.mubr.f32.gmra.mrb[106].mxu1 %v1585_v57 }
 0x1db   : > { %v1586_v4 = vmax.f32 %v1404_v63, 0.0  ;;  %v1718_v5 = vadd.f32 %v7304_v60, %v1717_v3  ;;  %v5822_v6 = vpop.f32.mrb[116].mxu0 }
 0x1dc   : > { %v2333_v8 = vmax.f32 %v1723_v2, 0.0  ;;  %v1419_v9 = vadd.f32 %v5822_v6, %v7130_v23  ;;  %v1413_v10 = vpop.f32.mrb[117].mxu0 }
 0x1dd   : > { %v2332_v13 = vmax.f32 %v1718_v5, 0.0  ;;  %v1414_v17 = vadd.f32 %v7319_v14, %v1413_v10  ;;  %v5884_v18 = vpop.f32.mrb[2].mxu1  ;;  %6041 = vmatprep.mubr.f32.mxu1 %v1586_v4 }
 0x1de   : > { %v1589_v21 = vmax.f32 %v1419_v9, 0.0  ;;  %v1733_v12 = vadd.f32 %v5884_v18, %v7304_v60  ;;  %v1727_v22 = vpop.f32.mrb[3].mxu1  ;;  %6042 = vmatmul.mubr.f32.gmra.mrb[108].mxu1 %v1587_v1  ;;  %v2468_v24 = vmul.f32 %v7313_v7, %v2333_v8 }
 0x1df   : > { %v1588_v26 = vmax.f32 %v1414_v17, 0.0  ;;  %v1728_v23 = vadd.f32 %v7304_v60, %v1727_v22  ;;  %v5825_v27 = vpop.f32.mrb[118].mxu0  ;;  %v2467_v28 = vmul.f32 %v7313_v7, %v2332_v13 }
 0x1e0   : > { %v2335_v11 = vmax.f32 %v1733_v12, 0.0  ;;  %v1429_v16 = vadd.f32 %v7319_v14, %v5825_v27  ;;  %v1423_v29 = vpop.f32.mrb[119].mxu0  ;;  %2603 = vadd.xlane.f32.xlu1 %v2468_v24 }
 0x1e1   : > { %v2334_v30 = vmax.f32 %v1728_v23, 0.0  ;;  %v1424_v31 = vadd.f32 %v7319_v14, %v1423_v29  ;;  %v5887_v25 = vpop.f32.mrb[4].mxu1  ;;  %6044 = vmatprep.mubr.f32.mxu1 %v1588_v26  ;;  %2601 = vadd.xlane.f32.xlu0 %v2467_v28 }
 0x1e2   : > { %v1591_v32 = vmax.f32 %v1429_v16, 0.0  ;;  %v1743_v33 = vadd.f32 %v5887_v25, %v7304_v60  ;;  %v1737_v34 = vpop.f32.mrb[5].mxu1  ;;  %6045 = vmatmul.mubr.f32.gmra.mrb[110].mxu1 %v1589_v21  ;;  %v2470_v35 = vmul.f32 %v7313_v7, %v2335_v11 }
 0x1e3   : > { %v1590_v36 = vmax.f32 %v1424_v31, 0.0  ;;  %v1738_v37 = vadd.f32 %v7304_v60, %v1737_v34  ;;  %v5828_v15 = vpop.f32.mrb[120].mxu0  ;;  %v2469_v38 = vmul.f32 %v7313_v7, %v2334_v30 }
 0x1e4   : > { %v2337_v39 = vmax.f32 %v1743_v33, 0.0  ;;  %v1439_v20 = vadd.f32 %v7319_v14, %v5828_v15  ;;  %v1433_v40 = vpop.f32.mrb[121].mxu0  ;;  %2607 = vadd.xlane.f32.xlu1 %v2470_v35 }
 0x1e5   : > { %v2336_v41 = vmax.f32 %v1738_v37, 0.0  ;;  %v1434_v42 = vadd.f32 %v7319_v14, %v1433_v40  ;;  %v5890_v43 = vpop.f32.mrb[6].mxu1  ;;  %6047 = vmatprep.mubr.f32.mxu1 %v1590_v36  ;;  %2605 = vadd.xlane.f32.xlu0 %v2469_v38 }
 0x1e6   : > { %v1593_v44 = vmax.f32 %v1439_v20, 0.0  ;;  %v1753_v45 = vadd.f32 %v5890_v43, %v7304_v60  ;;  %v1747_v46 = vpop.f32.mrb[7].mxu1  ;;  %6048 = vmatmul.mubr.f32.gmra.mrb[112].mxu1 %v1591_v32  ;;  %v2472_v19 = vmul.f32 %v7313_v7, %v2337_v39 }
 0x1e7   : > { %v1592_v47 = vmax.f32 %v1434_v42, 0.0  ;;  %v1748_v48 = vadd.f32 %v7304_v60, %v1747_v46  ;;  %v5831_v49 = vpop.f32.mrb[122].mxu0  ;;  %v2471_v50 = vmul.f32 %v7313_v7, %v2336_v41 }
 0x1e8   : > { %v2339_v51 = vmax.f32 %v1753_v45, 0.0  ;;  %v1449_v52 = vadd.f32 %v7319_v14, %v5831_v49  ;;  %v1443_v53 = vpop.f32.mrb[123].mxu0  ;;  %2611 = vadd.xlane.f32.xlu1 %v2472_v19 }
 0x1e9   : > { %v2338_v54 = vmax.f32 %v1748_v48, 0.0  ;;  %v1444_v55 = vadd.f32 %v7319_v14, %v1443_v53  ;;  %v5893_v56 = vpop.f32.mrb[8].mxu1  ;;  %6050 = vmatprep.mubr.f32.mxu1 %v1592_v47  ;;  %2609 = vadd.xlane.f32.xlu0 %v2471_v50 }
 0x1ea   : > { %v1595_v57 = vmax.f32 %v1449_v52, 0.0  ;;  %v1763_v58 = vadd.f32 %v5893_v56, %v7304_v60  ;;  %v1757_v59 = vpop.f32.mrb[9].mxu1  ;;  %6051 = vmatmul.mubr.f32.gmra.mrb[114].mxu1 %v1593_v44  ;;  %v2474_v61 = vmul.f32 %v7313_v7, %v2339_v51 }
 0x1eb   : > { %v1594_v62 = vmax.f32 %v1444_v55, 0.0  ;;  %v1758_v63 = vadd.f32 %v7304_v60, %v1757_v59  ;;  %v5834_v0 = vpop.f32.mrb[124].mxu0  ;;  %v2473_v1 = vmul.f32 %v7313_v7, %v2338_v54 }
 0x1ec   : > { %v2341_v2 = vmax.f32 %v1763_v58, 0.0  ;;  %v1459_v3 = vadd.f32 %v7319_v14, %v5834_v0  ;;  %v1453_v4 = vpop.f32.mrb[125].mxu0  ;;  %2615 = vadd.xlane.f32.xlu1 %v2474_v61 }
 0x1ed   : > { %v2340_v5 = vmax.f32 %v1758_v63, 0.0  ;;  %v1454_v6 = vadd.f32 %v7319_v14, %v1453_v4  ;;  %v5896_v8 = vpop.f32.mrb[10].mxu1  ;;  %6053 = vmatprep.mubr.f32.mxu1 %v1594_v62  ;;  %2613 = vadd.xlane.f32.xlu0 %v2473_v1 }
 0x1ee   : > { %v1597_v9 = vmax.f32 %v1459_v3, 0.0  ;;  %v1773_v10 = vadd.f32 %v5896_v8, %v7304_v60  ;;  %v1767_v13 = vpop.f32.mrb[11].mxu1  ;;  %6054 = vmatmul.mubr.f32.gmra.mrb[116].mxu1 %v1595_v57  ;;  %v2476_v17 = vmul.f32 %v7313_v7, %v2341_v2 }
 0x1ef   : > { %v1596_v18 = vmax.f32 %v1454_v6, 0.0  ;;  %v1768_v21 = vadd.f32 %v7304_v60, %v1767_v13  ;;  %v5837_v12 = vpop.f32.mrb[126].mxu0  ;;  %v2475_v22 = vmul.f32 %v7313_v7, %v2340_v5 }
 0x1f0   : > { %v2343_v24 = vmax.f32 %v1773_v10, 0.0  ;;  %v1469_v26 = vadd.f32 %v7319_v14, %v5837_v12  ;;  %v1463_v23 = vpop.f32.mrb[127].mxu0  ;;  %2619 = vadd.xlane.f32.xlu1 %v2476_v17 }
 0x1f1   : > { %v2342_v27 = vmax.f32 %v1768_v21, 0.0  ;;  %v1464_v28 = vadd.f32 %v7319_v14, %v1463_v23  ;;  %v5899_v11 = vpop.f32.mrb[12].mxu1  ;;  %6056 = vmatprep.mubr.f32.mxu1 %v1596_v18  ;;  %2617 = vadd.xlane.f32.xlu0 %v2475_v22 }
 0x1f2   : > { %v1599_v16 = vmax.f32 %v1469_v26, 0.0  ;;  %v1783_v29 = vadd.f32 %v5899_v11, %v7304_v60  ;;  %v1777_v30 = vpop.f32.mrb[13].mxu1  ;;  %6057 = vmatmul.mubr.f32.gmra.mrb[118].mxu1 %v1597_v9  ;;  %v2478_v31 = vmul.f32 %v7313_v7, %v2343_v24 }
 0x1f3   : > { %v1598_v25 = vmax.f32 %v1464_v28, 0.0  ;;  %v1778_v32 = vadd.f32 %v7304_v60, %v1777_v30  ;;  %v5872_v33 = vpop.f32.mrb[128].mxu0  ;;  %v2477_v34 = vmul.f32 %v7313_v7, %v2342_v27 }
 0x1f4   : > { %v2345_v35 = vmax.f32 %v1783_v29, 0.0  ;;  %v1693_v36 = vadd.f32 %v5872_v33, %v7304_v60  ;;  %2623 = vadd.xlane.f32.xlu1 %v2478_v31  ;;  %v1687_v14 = vpop.f32.mrb[129].mxu0 }
 0x1f5   : > { %v2344_v37 = vmax.f32 %v1778_v32, 0.0  ;;  %v5902_v15 = vpop.f32.mrb[14].mxu1  ;;  %6059 = vmatprep.mubr.f32.mxu1 %v1598_v25  ;;  %2621 = vadd.xlane.f32.xlu0 %v2477_v34  ;;  %v1688_v41 = vadd.f32 %v7304_v60, %v1687_v14 }
 0x1f6   : > { %v1793_v38 = vadd.f32 %v5902_v15, %v7304_v60  ;;  %v1787_v39 = vpop.f32.mrb[15].mxu1  ;;  %6060 = vmatmul.mubr.f32.gmra.mrb[120].mxu1 %v1599_v16  ;;  %v2480_v20 = vmul.f32 %v7313_v7, %v2345_v35  ;;  %v2327_v40 = vmax.f32 %v1693_v36, 0.0 }
 0x1f7   : > { %v5875_v42 = vpop.f32.mrb[130].mxu0  ;;  %v2479_v43 = vmul.f32 %v7313_v7, %v2344_v37  ;;  %v2326_v51 = vmax.f32 %v1688_v41, 0.0  ;;  %v1788_v52 = vadd.f32 %v7304_v60, %v1787_v39 }
 0x1f8   : > { %v2347_v44 = vmax.f32 %v1793_v38, 0.0  ;;  %v1703_v45 = vadd.f32 %v5875_v42, %v7304_v60  ;;  %2627 = vadd.xlane.f32.xlu1 %v2480_v20  ;;  %v1697_v46 = vpop.f32.mrb[131].mxu0  ;;  %v2462_v54 = vmul.f32 %v7313_v7, %v2327_v40 }
 0x1f9   : > { %v5905_v19 = vpop.f32.mrb[16].mxu1  ;;  %2625 = vadd.xlane.f32.xlu0 %v2479_v43  ;;  %v1698_v48 = vadd.f32 %v7304_v60, %v1697_v46  ;;  %v2346_v62 = vmax.f32 %v1788_v52, 0.0  ;;  %v2461_v0 = vmul.f32 %v7313_v7, %v2326_v51 }
 0x1fa   : > { %v2329_v47 = vmax.f32 %v1703_v45, 0.0  ;;  %v1797_v49 = vpop.f32.mrb[17].mxu1  ;;  %v2482_v50 = vmul.f32 %v7313_v7, %v2347_v44  ;;  %v1803_v58 = vadd.f32 %v5905_v19, %v7304_v60 }
 0x1fb   : > { %v5878_v53 = vpop.f32.mrb[132].mxu0  ;;  %v2328_v57 = vmax.f32 %v1698_v48, 0.0  ;;  %v1798_v63 = vadd.f32 %v7304_v60, %v1797_v49  ;;  %v2481_v9 = vmul.f32 %v7313_v7, %v2346_v62 }
 0x1fc   : > { %2631 = vadd.xlane.f32.xlu1 %v2482_v50  ;;  %v1707_v55 = vpop.f32.mrb[133].mxu0  ;;  %v2464_v61 = vmul.f32 %v7313_v7, %v2329_v47  ;;  %v2349_v2 = vmax.f32 %v1803_v58, 0.0  ;;  %v1713_v3 = vadd.f32 %v5878_v53, %v7304_v60 }
 0x1fd   : > { %v5908_v56 = vpop.f32.mrb[18].mxu1  ;;  %2591 = vadd.xlane.f32.xlu0 %v2462_v54  ;;  %v2463_v5 = vmul.f32 %v7313_v7, %v2328_v57  ;;  %v2348_v6 = vmax.f32 %v1798_v63, 0.0  ;;  %v1708_v8 = vadd.f32 %v7304_v60, %v1707_v55 }
 0x1fe   : > { %v1807_v59 = vpop.f32.mrb[19].mxu1  ;;  %v2331_v13 = vmax.f32 %v1713_v3, 0.0  ;;  %v1813_v17 = vadd.f32 %v5908_v56, %v7304_v60  ;;  %v2484_v21 = vmul.f32 %v7313_v7, %v2349_v2 }
 0x1ff   : > { %v2330_v12 = vmax.f32 %v1708_v8, 0.0  ;;  %v1808_v22 = vadd.f32 %v7304_v60, %v1807_v59  ;;  %v2483_v24 = vmul.f32 %v7313_v7, %v2348_v6 }
 0x200   : > { %2595 = vadd.xlane.f32.xlu1 %v2464_v61  ;;  %v2351_v23 = vmax.f32 %v1813_v17, 0.0  ;;  %v2466_v11 = vmul.f32 %v7313_v7, %v2331_v13 }
 0x201   : > { %v5911_v1 = vpop.f32.mrb[20].mxu1  ;;  %2589 = vadd.xlane.f32.xlu0 %v2461_v0  ;;  %v2350_v16 = vmax.f32 %v1808_v22, 0.0  ;;  %v2465_v30 = vmul.f32 %v7313_v7, %v2330_v12 }
 0x202   : > { %v1817_v4 = vpop.f32.mrb[21].mxu1  ;;  %v1823_v27 = vadd.f32 %v5911_v1, %v7304_v60  ;;  %v2486_v34 = vmul.f32 %v7313_v7, %v2351_v23 }
 0x203   : > { %v1818_v29 = vadd.f32 %v7304_v60, %v1817_v4  ;;  %v2485_v14 = vmul.f32 %v7313_v7, %v2350_v16 }
 0x204   : > { %2593 = vadd.xlane.f32.xlu1 %v2463_v5  ;;  %v2353_v25 = vmax.f32 %v1823_v27, 0.0  ;;  %v6741_v27 = vmov 0  }
 0x205   : > { %v5914_v10 = vpop.f32.mrb[22].mxu1  ;;  %2629 = vadd.xlane.f32.xlu0 %v2481_v9  ;;  %v2352_v35 = vmax.f32 %v1818_v29, 0.0  ;;  %6159 = vset.pattern.permute.xlu1 %v6741_v27 }
 0x206   : > { %v1827_v18 = vpop.f32.mrb[23].mxu1  ;;  %v1833_v32 = vadd.f32 %v5914_v10, %v7304_v60  ;;  %v2488_v20 = vmul.f32 %v7313_v7, %v2353_v25  ;;  %6158 = vset.pattern.permute.xlu0 %v6741_v27 }
 0x207   : > { %v1828_v36 = vadd.f32 %v7304_v60, %v1827_v18  ;;  %v2487_v42 = vmul.f32 %v7313_v7, %v2352_v35 }
 0x208   : > { %2635 = vadd.xlane.f32.xlu1 %v2484_v21  ;;  %v2355_v15 = vmax.f32 %v1833_v32, 0.0 }
 0x209   : > { %v5917_v26 = vpop.f32.mrb[24].mxu1  ;;  %2633 = vadd.xlane.f32.xlu0 %v2483_v24  ;;  %v2354_v40 = vmax.f32 %v1828_v36, 0.0 }
 0x20a   : > { %v1837_v28 = vpop.f32.mrb[25].mxu1  ;;  %v1843_v38 = vadd.f32 %v5917_v26, %v7304_v60  ;;  %v2490_v19 = vmul.f32 %v7313_v7, %v2355_v15 }
 0x20b   : > { %v1838_v41 = vadd.f32 %v7304_v60, %v1837_v28  ;;  %v2489_v49 = vmul.f32 %v7313_v7, %v2354_v40 }
 0x20c   : > { %2599 = vadd.xlane.f32.xlu1 %v2466_v11  ;;  %v2357_v44 = vmax.f32 %v1843_v38, 0.0 }
 0x20d   : > { %v5920_v31 = vpop.f32.mrb[26].mxu1  ;;  %2597 = vadd.xlane.f32.xlu0 %v2465_v30  ;;  %v2356_v47 = vmax.f32 %v1838_v41, 0.0 }
 0x20e   : > { %v1847_v33 = vpop.f32.mrb[27].mxu1  ;;  %v1853_v45 = vadd.f32 %v5920_v31, %v7304_v60  ;;  %v2492_v54 = vmul.f32 %v7313_v7, %v2357_v44 }
 0x20f   : > { %v1848_v48 = vadd.f32 %v7304_v60, %v1847_v33  ;;  %v2491_v57 = vmul.f32 %v7313_v7, %v2356_v47 }
 0x210   : > { %2639 = vadd.xlane.f32.xlu1 %v2486_v34  ;;  %v2359_v51 = vmax.f32 %v1853_v45, 0.0 }
 0x211   : > { %v5923_v37 = vpop.f32.mrb[28].mxu1  ;;  %2637 = vadd.xlane.f32.xlu0 %v2485_v14  ;;  %v2358_v55 = vmax.f32 %v1848_v48, 0.0 }
 0x212   : > { %v1857_v39 = vpop.f32.mrb[29].mxu1  ;;  %v1863_v52 = vadd.f32 %v5923_v37, %v7304_v60  ;;  %v2494_v63 = vmul.f32 %v7313_v7, %v2359_v51 }
 0x213   : > { %v1858_v56 = vadd.f32 %v7304_v60, %v1857_v39  ;;  %v2493_v2 = vmul.f32 %v7313_v7, %v2358_v55 }
 0x214   : > { %2643 = vadd.xlane.f32.xlu1 %v2488_v20  ;;  %v2361_v59 = vmax.f32 %v1863_v52, 0.0 }
 0x215   : > { %v5926_v43 = vpop.f32.mrb[30].mxu1  ;;  %2641 = vadd.xlane.f32.xlu0 %v2487_v42  ;;  %v2360_v0 = vmax.f32 %v1858_v56, 0.0 }
 0x216   : > { %v1867_v46 = vpop.f32.mrb[31].mxu1  ;;  %v1873_v61 = vadd.f32 %v5926_v43, %v7304_v60  ;;  %v2496_v8 = vmul.f32 %v7313_v7, %v2361_v59 }
 0x217   : > { %v1868_v1 = vadd.f32 %v7304_v60, %v1867_v46  ;;  %v2495_v13 = vmul.f32 %v7313_v7, %v2360_v0 }
 0x218   : > { %2647 = vadd.xlane.f32.xlu1 %v2490_v19  ;;  %v2363_v4 = vmax.f32 %v1873_v61, 0.0 }
 0x219   : > { %v5929_v50 = vpop.f32.mrb[32].mxu1  ;;  %2645 = vadd.xlane.f32.xlu0 %v2489_v49  ;;  %v2362_v9 = vmax.f32 %v1868_v1, 0.0 }
 0x21a   : > { %v1877_v53 = vpop.f32.mrb[33].mxu1  ;;  %v1883_v5 = vadd.f32 %v5929_v50, %v7304_v60  ;;  %v2498_v22 = vmul.f32 %v7313_v7, %v2363_v4 }
 0x21b   : > { %v1878_v10 = vadd.f32 %v7304_v60, %v1877_v53  ;;  %v2497_v23 = vmul.f32 %v7313_v7, %v2362_v9 }
 0x21c   : > { %2651 = vadd.xlane.f32.xlu1 %v2492_v54  ;;  %v2365_v18 = vmax.f32 %v1883_v5, 0.0 }
 0x21d   : > { %v5932_v58 = vpop.f32.mrb[34].mxu1  ;;  %2649 = vadd.xlane.f32.xlu0 %v2491_v57  ;;  %v2364_v24 = vmax.f32 %v1878_v10, 0.0 }
 0x21e   : > { %v1887_v62 = vpop.f32.mrb[35].mxu1  ;;  %v1893_v21 = vadd.f32 %v5932_v58, %v7304_v60  ;;  %v2500_v30 = vmul.f32 %v7313_v7, %v2365_v18 }
 0x21f   : > { %v1888_v26 = vadd.f32 %v7304_v60, %v1887_v62  ;;  %v2499_v32 = vmul.f32 %v7313_v7, %v2364_v24 }
 0x220   : > { %2655 = vadd.xlane.f32.xlu1 %v2494_v63  ;;  %v2367_v11 = vmax.f32 %v1893_v21, 0.0 }
 0x221   : > { %v5935_v3 = vpop.f32.mrb[36].mxu1  ;;  %2653 = vadd.xlane.f32.xlu0 %v2493_v2  ;;  %v2366_v31 = vmax.f32 %v1888_v26, 0.0 }
 0x222   : > { %v1897_v6 = vpop.f32.mrb[37].mxu1  ;;  %v1903_v16 = vadd.f32 %v5935_v3, %v7304_v60  ;;  %v2502_v14 = vmul.f32 %v7313_v7, %v2367_v11 }
 0x223   : > { %v1898_v25 = vadd.f32 %v7304_v60, %v1897_v6  ;;  %v2501_v38 = vmul.f32 %v7313_v7, %v2366_v31 }
 0x224   : > { %2659 = vadd.xlane.f32.xlu1 %v2496_v8  ;;  %v2369_v34 = vmax.f32 %v1903_v16, 0.0 }
 0x225   : > { %v5938_v17 = vpop.f32.mrb[38].mxu1  ;;  %2657 = vadd.xlane.f32.xlu0 %v2495_v13  ;;  %v2368_v37 = vmax.f32 %v1898_v25, 0.0 }
 0x226   : > { %v1907_v12 = vpop.f32.mrb[39].mxu1  ;;  %v1913_v35 = vadd.f32 %v5938_v17, %v7304_v60  ;;  %v2504_v42 = vmul.f32 %v7313_v7, %v2369_v34 }
 0x227   : > { %v1908_v15 = vadd.f32 %v7304_v60, %v1907_v12  ;;  %v2503_v45 = vmul.f32 %v7313_v7, %v2368_v37 }
 0x228   : > { %2663 = vadd.xlane.f32.xlu1 %v2498_v22  ;;  %v2371_v20 = vmax.f32 %v1913_v35, 0.0 }
 0x229   : > { %v5941_v28 = vpop.f32.mrb[40].mxu1  ;;  %2661 = vadd.xlane.f32.xlu0 %v2497_v23  ;;  %v2370_v43 = vmax.f32 %v1908_v15, 0.0 }
 0x22a   : > { %v1917_v29 = vpop.f32.mrb[41].mxu1  ;;  %v1923_v40 = vadd.f32 %v5941_v28, %v7304_v60  ;;  %v2506_v49 = vmul.f32 %v7313_v7, %v2371_v20 }
 0x22b   : > { %v1918_v44 = vadd.f32 %v7304_v60, %v1917_v29  ;;  %v2505_v52 = vmul.f32 %v7313_v7, %v2370_v43 }
 0x22c   : > { %2667 = vadd.xlane.f32.xlu1 %v2500_v30  ;;  %v2373_v19 = vmax.f32 %v1923_v40, 0.0 }
 0x22d   : > { %v5944_v33 = vpop.f32.mrb[42].mxu1  ;;  %2665 = vadd.xlane.f32.xlu0 %v2499_v32  ;;  %v2372_v50 = vmax.f32 %v1918_v44, 0.0 }
 0x22e   : > { %v1927_v36 = vpop.f32.mrb[43].mxu1  ;;  %v1933_v47 = vadd.f32 %v5944_v33, %v7304_v60  ;;  %v2508_v57 = vmul.f32 %v7313_v7, %v2373_v19 }
 0x22f   : > { %v1928_v51 = vadd.f32 %v7304_v60, %v1927_v36  ;;  %v2507_v61 = vmul.f32 %v7313_v7, %v2372_v50  ;;  %v7458_v50 = vpop.permute.xlu0 %2852 }
 0x230   : > { %2671 = vadd.xlane.f32.xlu1 %v2502_v14  ;;  %v2375_v54 = vmax.f32 %v1933_v47, 0.0 }
 0x231   : > { %v5947_v39 = vpop.f32.mrb[44].mxu1  ;;  %2669 = vadd.xlane.f32.xlu0 %v2501_v38  ;;  %v2374_v58 = vmax.f32 %v1928_v51, 0.0  ;;  %v7448_v38 = vpop.permute.xlu1 %2856 }
 0x232   : > { %v1937_v41 = vpop.f32.mrb[45].mxu1  ;;  %v1943_v55 = vadd.f32 %v5947_v39, %v7304_v60  ;;  %v2510_v2 = vmul.f32 %v7313_v7, %v2375_v54 }
 0x233   : > { %v1938_v59 = vadd.f32 %v7304_v60, %v1937_v41  ;;  %v2509_v5 = vmul.f32 %v7313_v7, %v2374_v58 }
 0x234   : > { %2675 = vadd.xlane.f32.xlu1 %v2504_v42  ;;  %v2377_v63 = vmax.f32 %v1943_v55, 0.0 }
 0x235   : > { %v5950_v46 = vpop.f32.mrb[46].mxu1  ;;  %2673 = vadd.xlane.f32.xlu0 %v2503_v45  ;;  %v2376_v3 = vmax.f32 %v1938_v59, 0.0 }
 0x236   : > { %v1947_v48 = vpop.f32.mrb[47].mxu1  ;;  %v1953_v0 = vadd.f32 %v5950_v46, %v7304_v60  ;;  %v2512_v13 = vmul.f32 %v7313_v7, %v2377_v63 }
 0x237   : > { %v1948_v4 = vadd.f32 %v7304_v60, %v1947_v48  ;;  %v2511_v21 = vmul.f32 %v7313_v7, %v2376_v3  ;;  %v7456_v48 = vpop.permute.xlu1 %2860 }
 0x238   : > { %2679 = vadd.xlane.f32.xlu1 %v2506_v49  ;;  %v2379_v8 = vmax.f32 %v1953_v0, 0.0 }
 0x239   : > { %v5953_v53 = vpop.f32.mrb[48].mxu1  ;;  %2677 = vadd.xlane.f32.xlu0 %v2505_v52  ;;  %v2378_v17 = vmax.f32 %v1948_v4, 0.0  ;;  %v7470_v4 = vpop.permute.xlu0 %2868 }
 0x23a   : > { %v1957_v56 = vpop.f32.mrb[49].mxu1  ;;  %v1963_v9 = vadd.f32 %v5953_v53, %v7304_v60  ;;  %v2514_v23 = vmul.f32 %v7313_v7, %v2379_v8 }
 0x23b   : > { %v1958_v18 = vadd.f32 %v7304_v60, %v1957_v56  ;;  %v2513_v11 = vmul.f32 %v7313_v7, %v2378_v17  ;;  %v7466_v0 = vpop.permute.xlu1 %2864 }
 0x23c   : > { %2683 = vadd.xlane.f32.xlu1 %v2508_v57  ;;  %v2381_v22 = vmax.f32 %v1963_v9, 0.0 }
 0x23d   : > { %v5956_v62 = vpop.f32.mrb[50].mxu1  ;;  %2681 = vadd.xlane.f32.xlu0 %v2507_v61  ;;  %v2380_v27 = vmax.f32 %v1958_v18, 0.0 }
 0x23e   : > { %v1967_v1 = vpop.f32.mrb[51].mxu1  ;;  %v1973_v24 = vadd.f32 %v5956_v62, %v7304_v60  ;;  %v2516_v25 = vmul.f32 %v7313_v7, %v2381_v22  ;;  %v7478_v22 = vpop.permute.xlu0 %2876 }
 0x23f   : > { %v1968_v28 = vadd.f32 %v7304_v60, %v1967_v1  ;;  %v2515_v34 = vmul.f32 %v7313_v7, %v2380_v27 }
 0x240   : > { %2687 = vadd.xlane.f32.xlu1 %v2510_v2  ;;  %v2383_v29 = vmax.f32 %v1973_v24, 0.0 }
 0x241   : > { %v5959_v6 = vpop.f32.mrb[52].mxu1  ;;  %2685 = vadd.xlane.f32.xlu0 %v2509_v5  ;;  %v2382_v32 = vmax.f32 %v1968_v28, 0.0 }
 0x242   : > { %v1977_v10 = vpop.f32.mrb[53].mxu1  ;;  %v1983_v30 = vadd.f32 %v5959_v6, %v7304_v60  ;;  %v2518_v15 = vmul.f32 %v7313_v7, %v2383_v29 }
 0x243   : > { %v1978_v33 = vadd.f32 %v7304_v60, %v1977_v10  ;;  %v2517_v40 = vmul.f32 %v7313_v7, %v2382_v32 }
 0x244   : > { %2691 = vadd.xlane.f32.xlu1 %v2512_v13  ;;  %v2385_v36 = vmax.f32 %v1983_v30, 0.0 }
 0x245   : > { %v5962_v12 = vpop.f32.mrb[54].mxu1  ;;  %2689 = vadd.xlane.f32.xlu0 %v2511_v21  ;;  %v2384_v39 = vmax.f32 %v1978_v33, 0.0  ;;  %v7476_v21 = vpop.permute.xlu1 %2872 }
 0x246   : > { %v1987_v26 = vpop.f32.mrb[55].mxu1  ;;  %v1993_v14 = vadd.f32 %v5962_v12, %v7304_v60  ;;  %v2520_v45 = vmul.f32 %v7313_v7, %v2385_v36 }
 0x247   : > { %v1988_v20 = vadd.f32 %v7304_v60, %v1987_v26  ;;  %v2519_v47 = vmul.f32 %v7313_v7, %v2384_v39 }
 0x248   : > { %2695 = vadd.xlane.f32.xlu1 %v2514_v23  ;;  %v2387_v42 = vmax.f32 %v1993_v14, 0.0  ;;  %v7490_v14 = vpop.permute.xlu0 %2884 }
 0x249   : > { %v5965_v16 = vpop.f32.mrb[56].mxu1  ;;  %2693 = vadd.xlane.f32.xlu0 %v2513_v11  ;;  %v2386_v46 = vmax.f32 %v1988_v20, 0.0  ;;  %v7486_v33 = vpop.permute.xlu1 %2880 }
 0x24a   : > { %v1997_v31 = vpop.f32.mrb[57].mxu1  ;;  %v2003_v43 = vadd.f32 %v5965_v16, %v7304_v60  ;;  %v2522_v54 = vmul.f32 %v7313_v7, %v2387_v42 }
 0x24b   : > { %v1998_v19 = vadd.f32 %v7304_v60, %v1997_v31  ;;  %v2521_v57 = vmul.f32 %v7313_v7, %v2386_v46 }
 0x24c   : > { %2699 = vadd.xlane.f32.xlu1 %v2516_v25  ;;  %v2389_v51 = vmax.f32 %v2003_v43, 0.0  ;;  %v7498_v46 = vpop.permute.xlu0 %2892 }
 0x24d   : > { %v5968_v35 = vpop.f32.mrb[58].mxu1  ;;  %2697 = vadd.xlane.f32.xlu0 %v2515_v34  ;;  %v2388_v55 = vmax.f32 %v1998_v19, 0.0 }
 0x24e   : > { %v2007_v37 = vpop.f32.mrb[59].mxu1  ;;  %v2013_v52 = vadd.f32 %v5968_v35, %v7304_v60  ;;  %v2524_v63 = vmul.f32 %v7313_v7, %v2389_v51 }
 0x24f   : > { %v2008_v56 = vadd.f32 %v7304_v60, %v2007_v37  ;;  %v2523_v3 = vmul.f32 %v7313_v7, %v2388_v55 }
 0x250   : > { %2703 = vadd.xlane.f32.xlu1 %v2518_v15  ;;  %v2391_v59 = vmax.f32 %v2013_v52, 0.0 }
 0x251   : > { %v5971_v41 = vpop.f32.mrb[60].mxu1  ;;  %2701 = vadd.xlane.f32.xlu0 %v2517_v40  ;;  %v2390_v1 = vmax.f32 %v2008_v56, 0.0 }
 0x252   : > { %v2017_v44 = vpop.f32.mrb[61].mxu1  ;;  %v2023_v61 = vadd.f32 %v5971_v41, %v7304_v60  ;;  %v2526_v10 = vmul.f32 %v7313_v7, %v2391_v59 }
 0x253   : > { %v2018_v2 = vadd.f32 %v7304_v60, %v2017_v44  ;;  %v2525_v18 = vmul.f32 %v7313_v7, %v2390_v1  ;;  %v7496_v44 = vpop.permute.xlu1 %2888 }
 0x254   : > { %2707 = vadd.xlane.f32.xlu1 %v2520_v45  ;;  %v2393_v6 = vmax.f32 %v2023_v61, 0.0 }
 0x255   : > { %v5974_v49 = vpop.f32.mrb[62].mxu1  ;;  %2705 = vadd.xlane.f32.xlu0 %v2519_v47  ;;  %v2392_v13 = vmax.f32 %v2018_v2, 0.0  ;;  %v7510_v2 = vpop.permute.xlu0 %2900 }
 0x256   : > { %v2027_v53 = vpop.f32.mrb[63].mxu1  ;;  %v2033_v8 = vadd.f32 %v5974_v49, %v7304_v60  ;;  %v2528_v27 = vmul.f32 %v7313_v7, %v2393_v6 }
 0x257   : > { %v2028_v17 = vadd.f32 %v7304_v60, %v2027_v53  ;;  %v2527_v16 = vmul.f32 %v7313_v7, %v2392_v13  ;;  %v7506_v61 = vpop.permute.xlu1 %2896 }
 0x258   : > { %2711 = vadd.xlane.f32.xlu1 %v2522_v54  ;;  %v2395_v24 = vmax.f32 %v2033_v8, 0.0 }
 0x259   : > { %v5977_v58 = vpop.f32.mrb[64].mxu1  ;;  %2709 = vadd.xlane.f32.xlu0 %v2521_v57  ;;  %v2394_v28 = vmax.f32 %v2028_v17, 0.0 }
 0x25a   : > { %v2037_v62 = vpop.f32.mrb[65].mxu1  ;;  %v2043_v26 = vadd.f32 %v5977_v58, %v7304_v60  ;;  %v2530_v32 = vmul.f32 %v7313_v7, %v2395_v24  ;;  %v7518_v24 = vpop.permute.xlu0 %2908 }
 0x25b   : > { %v2038_v11 = vadd.f32 %v7304_v60, %v2037_v62  ;;  %v2529_v36 = vmul.f32 %v7313_v7, %v2394_v28 }
 0x25c   : > { %2715 = vadd.xlane.f32.xlu1 %v2524_v63  ;;  %v2397_v30 = vmax.f32 %v2043_v26, 0.0 }
 0x25d   : > { %v5980_v5 = vpop.f32.mrb[66].mxu1  ;;  %2713 = vadd.xlane.f32.xlu0 %v2523_v3  ;;  %v2396_v34 = vmax.f32 %v2038_v11, 0.0 }
 0x25e   : > { %v2047_v9 = vpop.f32.mrb[67].mxu1  ;;  %v2053_v31 = vadd.f32 %v5980_v5, %v7304_v60  ;;  %v2532_v40 = vmul.f32 %v7313_v7, %v2397_v30 }
 0x25f   : > { %v2048_v35 = vadd.f32 %v7304_v60, %v2047_v9  ;;  %v2531_v43 = vmul.f32 %v7313_v7, %v2396_v34 }
 0x260   : > { %2719 = vadd.xlane.f32.xlu1 %v2526_v10  ;;  %v2399_v15 = vmax.f32 %v2053_v31, 0.0 }
 0x261   : > { %v5983_v12 = vpop.f32.mrb[68].mxu1  ;;  %2717 = vadd.xlane.f32.xlu0 %v2525_v18  ;;  %v2398_v41 = vmax.f32 %v2048_v35, 0.0  ;;  %v7516_v18 = vpop.permute.xlu1 %2904 }
 0x262   : > { %v2057_v23 = vpop.f32.mrb[69].mxu1  ;;  %v2063_v39 = vadd.f32 %v5983_v12, %v7304_v60  ;;  %v2534_v51 = vmul.f32 %v7313_v7, %v2399_v15 }
 0x263   : > { %v2058_v42 = vadd.f32 %v7304_v60, %v2057_v23  ;;  %v2533_v54 = vmul.f32 %v7313_v7, %v2398_v41 }
 0x264   : > { %2723 = vadd.xlane.f32.xlu1 %v2528_v27  ;;  %v2401_v19 = vmax.f32 %v2063_v39, 0.0 }
 0x265   : > { %v5986_v29 = vpop.f32.mrb[70].mxu1  ;;  %2721 = vadd.xlane.f32.xlu0 %v2527_v16  ;;  %v2400_v52 = vmax.f32 %v2058_v42, 0.0  ;;  %v7528_v39 = vpop.permute.xlu1 %2912 }
 0x266   : > { %v2067_v25 = vpop.f32.mrb[71].mxu1  ;;  %v2073_v47 = vadd.f32 %v5986_v29, %v7304_v60  ;;  %v2536_v59 = vmul.f32 %v7313_v7, %v2401_v19 }
 0x267   : > { %v2068_v53 = vadd.f32 %v7304_v60, %v2067_v25  ;;  %v2535_v1 = vmul.f32 %v7313_v7, %v2400_v52 }
 0x268   : > { %2727 = vadd.xlane.f32.xlu1 %v2530_v32  ;;  %v2403_v56 = vmax.f32 %v2073_v47, 0.0 }
 0x269   : > { %v5989_v37 = vpop.f32.mrb[72].mxu1  ;;  %2725 = vadd.xlane.f32.xlu0 %v2529_v36  ;;  %v2402_v62 = vmax.f32 %v2068_v53, 0.0 }
 0x26a   : > { %v2077_v20 = vpop.f32.mrb[73].mxu1  ;;  %v2083_v57 = vadd.f32 %v5989_v37, %v7304_v60  ;;  %v2538_v9 = vmul.f32 %v7313_v7, %v2403_v56  ;;  %v7541_v56 = vld [vmem:[%s8668_s4 + $0x1] ss:$0 sm:$0xff] }
 0x26b   : > { %v2078_v63 = vadd.f32 %v7304_v60, %v2077_v20  ;;  %v2537_v17 = vmul.f32 %v7313_v7, %v2402_v62 }
 0x26c   : > { %2731 = vadd.xlane.f32.xlu1 %v2532_v40  ;;  %v2405_v5 = vmax.f32 %v2083_v57, 0.0 }
 0x26d   : > { %v5992_v45 = vpop.f32.mrb[74].mxu1  ;;  %2729 = vadd.xlane.f32.xlu0 %v2531_v43  ;;  %v2404_v10 = vmax.f32 %v2078_v63, 0.0 }
 0x26e   : > { %v2087_v49 = vpop.f32.mrb[75].mxu1  ;;  %v2093_v6 = vadd.f32 %v5992_v45, %v7304_v60  ;;  %v2540_v28 = vmul.f32 %v7313_v7, %v2405_v5  ;;  %v2602_v25 = vpop.xlane.xlu0 %2601 }
 0x26f   : > { %v2088_v13 = vadd.f32 %v7304_v60, %v2087_v49  ;;  %v2539_v29 = vmul.f32 %v7313_v7, %v2404_v10  ;;  %v2936_v20 = vadd.f32 %v7478_v22, %v2602_v25 }
 0x270   : > { %2735 = vadd.xlane.f32.xlu1 %v2534_v51  ;;  %v2407_v26 = vmax.f32 %v2093_v6, 0.0  ;;  %v2604_v51 = vpop.xlane.xlu1 %2603 }
 0x271   : > { %v5995_v55 = vpop.f32.mrb[76].mxu1  ;;  %2733 = vadd.xlane.f32.xlu0 %v2533_v54  ;;  %v2406_v11 = vmax.f32 %v2088_v13, 0.0  ;;  %v5236_v52 = vmul.f32 -1.442695, %v2936_v20 }
 0x272   : > { %v2097_v58 = vpop.f32.mrb[77].mxu1  ;;  %v2103_v23 = vadd.f32 %v5995_v55, %v7304_v60  ;;  %v2542_v31 = vmul.f32 %v7313_v7, %v2407_v26 }
 0x273   : > { %v2098_v16 = vadd.f32 %v7304_v60, %v2097_v58  ;;  %v2541_v15 = vmul.f32 %v7313_v7, %v2406_v11  ;;  %6160 = vpow2.f32 %v5236_v52 }
 0x274   : > { %2739 = vadd.xlane.f32.xlu1 %v2536_v59  ;;  %v2409_v32 = vmax.f32 %v2103_v23, 0.0 }
 0x275   : > { %v5998_v3 = vpop.f32.mrb[78].mxu1  ;;  %2737 = vadd.xlane.f32.xlu0 %v2535_v1  ;;  %v2408_v36 = vmax.f32 %v2098_v16, 0.0 }
 0x276   : > { %v2107_v8 = vpop.f32.mrb[79].mxu1  ;;  %v2113_v34 = vadd.f32 %v5998_v3, %v7304_v60  ;;  %v2544_v41 = vmul.f32 %v7313_v7, %v2409_v32  ;;  %v7554_v3 = vld [vmem:[%s8667_s3] ss:$0 sm:$0xff] }
 0x277   : > { %v2108_v37 = vadd.f32 %v7304_v60, %v2107_v8  ;;  %v2543_v49 = vmul.f32 %v7313_v7, %v2408_v36 }
 0x278   : > { %2743 = vadd.xlane.f32.xlu1 %v2538_v9  ;;  %v2411_v42 = vmax.f32 %v2113_v34, 0.0 }
 0x279   : > { %v6001_v12 = vpop.f32.mrb[80].mxu1  ;;  %2741 = vadd.xlane.f32.xlu0 %v2537_v17  ;;  %v2410_v19 = vmax.f32 %v2108_v37, 0.0 }
 0x27a   : > { %v2117_v27 = vpop.f32.mrb[81].mxu1  ;;  %v2123_v43 = vadd.f32 %v6001_v12, %v7304_v60  ;;  %v2546_v54 = vmul.f32 %v7313_v7, %v2411_v42 }
 0x27b   : > { %v2118_v47 = vadd.f32 %v7304_v60, %v2117_v27  ;;  %v2937_v60 = vadd.f32 %v7486_v33, %v2604_v51  ;;  %v2545_v59 = vmul.f32 %v7313_v7, %v2410_v19 }
 0x27c   : > { %2747 = vadd.xlane.f32.xlu1 %v2540_v28  ;;  %v2413_v55 = vmax.f32 %v2123_v43, 0.0 }
 0x27d   : > { %v6004_v30 = vpop.f32.mrb[82].mxu1  ;;  %2745 = vadd.xlane.f32.xlu0 %v2539_v29  ;;  %v2412_v62 = vmax.f32 %v2118_v47, 0.0  ;;  %v5237_v7 = vmul.f32 -1.442695, %v2937_v60 }
 0x27e   : > { %v2127_v35 = vpop.f32.mrb[83].mxu1  ;;  %v2133_v57 = vadd.f32 %v7541_v56, %v6004_v30  ;;  %v2548_v5 = vmul.f32 %v7554_v3, %v2413_v55 }
 0x27f   : > { %v2128_v63 = vadd.f32 %v7541_v56, %v2127_v35  ;;  %v2547_v10 = vmul.f32 %v7554_v3, %v2412_v62  ;;  %6162 = vpow2.f32 %v5237_v7 }
 0x280   : > { %2751 = vadd.xlane.f32.xlu1 %v2542_v31  ;;  %v2415_v6 = vmax.f32 %v2133_v57, 0.0  ;;  %v6161_v31 = vpop.eup %6160 }
 0x281   : > { %v6007_v40 = vpop.f32.mrb[84].mxu1  ;;  %2749 = vadd.xlane.f32.xlu0 %v2541_v15  ;;  %v2414_v13 = vmax.f32 %v2128_v63, 0.0  ;;  %v3448_v34 = vadd.f32 1.0, %v6161_v31 }
 0x282   : > { %v2137_v45 = vpop.f32.mrb[85].mxu1  ;;  %v2143_v8 = vadd.f32 %v7541_v56, %v6007_v40  ;;  %v2550_v26 = vmul.f32 %v7554_v3, %v2415_v6  ;;  %v2608_v6 = vpop.xlane.xlu1 %2607 }
 0x283   : > { %v2138_v17 = vadd.f32 %v7541_v56, %v2137_v45  ;;  %v2549_v28 = vmul.f32 %v7554_v3, %v2414_v13  ;;  %6164 = vrcp.f32 %v3448_v34  ;;  %v2939_v13 = vadd.f32 %v7496_v44, %v2608_v6 }
 0x284   : > { %2755 = vadd.xlane.f32.xlu1 %v2544_v41  ;;  %v2417_v23 = vmax.f32 %v2143_v8, 0.0 }
 0x285   : > { %v7535_v53 = vpop.f32.mrb[86].mxu1  ;;  %2753 = vadd.xlane.f32.xlu0 %v2543_v49  ;;  %v2416_v11 = vmax.f32 %v2138_v17, 0.0 }
 0x286   : > { %v7544_v58 = vpop.f32.mrb[87].mxu1  ;;  %v2552_v29 = vmul.f32 %v7554_v3, %v2417_v23  ;;  %v2153_v23 = vadd.f32 %v7541_v56, %v7535_v53 }
 0x287   : > { %v2551_v25 = vmul.f32 %v7554_v3, %v2416_v11  ;;  %v2148_v11 = vadd.f32 %v7541_v56, %v7544_v58 }
 0x288   : > { %2759 = vadd.xlane.f32.xlu1 %v2546_v54 }
 0x289   : > { %v7549_v1 = vpop.f32.mrb[88].mxu1  ;;  %2757 = vadd.xlane.f32.xlu0 %v2545_v59  ;;  %v6163_v36 = vpop.eup %6162  ;;  %v2418_v34 = vmax.f32 %v2148_v11, 0.0 }
 0x28a   : > { %v7558_v9 = vpop.f32.mrb[89].mxu1  ;;  %v3449_v20 = vadd.f32 1.0, %v6163_v36  ;;  %v2606_v59 = vpop.xlane.xlu0 %2605 }
 0x28b   : > { %v2938_v63 = vadd.f32 %v7490_v14, %v2606_v59  ;;  %v2553_v53 = vmul.f32 %v7554_v3, %v2418_v34 }
 0x28c   : > { %2763 = vadd.xlane.f32.xlu1 %v2548_v5  ;;  %6166 = vrcp.f32 %v3449_v20 }
 0x28d   : > { %v7562_v12 = vpop.f32.mrb[90].mxu1  ;;  %2761 = vadd.xlane.f32.xlu0 %v2547_v10  ;;  %v6165_v45 = vpop.eup %6164  ;;  %v5238_v7 = vmul.f32 -1.442695, %v2938_v63 }
 0x28e   : > { %v7565_v27 = vpop.f32.mrb[91].mxu1 }
 0x28f   : > { %6168 = vpow2.f32 %v5238_v7 }
 0x290   : > { %2767 = vadd.xlane.f32.xlu1 %v2550_v26 }
 0x291   : > { %v7568_v16 = vpop.f32.mrb[92].mxu1  ;;  %2765 = vadd.xlane.f32.xlu0 %v2549_v28  ;;  %v5239_v28 = vmul.f32 -1.442695, %v2939_v13 }
 0x292   : > { %v7571_v30 = vpop.f32.mrb[93].mxu1 }
 0x293   : > { %6170 = vpow2.f32 %v5239_v28  ;;  %v2610_v28 = vpop.xlane.xlu0 %2609 }
 0x294   : > { %2771 = vadd.xlane.f32.xlu1 %v2552_v29  ;;  %v2940_v11 = vadd.f32 %v7498_v46, %v2610_v28 }
 0x295   : > { %v7574_v32 = vpop.f32.mrb[94].mxu1  ;;  %2769 = vadd.xlane.f32.xlu0 %v2551_v25  ;;  %v2419_v25 = vmax.f32 %v2153_v23, 0.0 }
 0x296   : > { %v7576_v35 = vpop.f32.mrb[95].mxu1  ;;  %v6167_v51 = vpop.eup %6166  ;;  %v5240_v34 = vmul.f32 -1.442695, %v2940_v11 }
 0x299   : > { %v7578_v37 = vpop.f32.mrb[96].mxu1 }
 0x29a   : > { %v7580_v15 = vpop.f32.mrb[97].mxu1 }
 0x29d   : > { %v7582_v40 = vpop.f32.mrb[98].mxu1 }
 0x29e   : > { %v7584_v41 = vpop.f32.mrb[99].mxu1 }
 0x2a1   : > { %v7586_v42 = vpop.f32.mrb[100].mxu1 }
 0x2a2   : > { %v7588_v43 = vpop.f32.mrb[101].mxu1 }
 0x2a5   : > { %v7590_v19 = vpop.f32.mrb[102].mxu1  ;;  %3973 = vperm.xlu1 %6159, %v6165_v45   ;;  %v2554_v45 = vmul.f32 %v7554_v3, %v2419_v25  ;;  %v2612_v25 = vpop.xlane.xlu1 %2611 }
 0x2a6   : > { %v7592_v47 = vpop.f32.mrb[103].mxu1 }
 0x2a9   : > { %v7594_v49 = vpop.f32.mrb[104].mxu1 }
 0x2aa   : > { %v7596_v52 = vpop.f32.mrb[105].mxu1 }
 0x2ab   : > { %3976 = vperm.xlu0 %6158, %v6167_v51   ;;  %v6169_v51 = vpop.eup %6168 }
 0x2ac   : > { %v3450_v63 = vadd.f32 1.0, %v6169_v51  ;;  %v6171_v6 = vpop.eup %6170 }
 0x2ad   : > { %v7598_v54 = vpop.f32.mrb[106].mxu1  ;;  %v3451_v7 = vadd.f32 1.0, %v6171_v6 }
 0x2ae   : > { %v7600_v55 = vpop.f32.mrb[107].mxu1  ;;  %6172 = vrcp.f32 %v3450_v63 }
 0x2af   : > { %6174 = vrcp.f32 %v3451_v7 }
 0x2b0   : > { %6176 = vpow2.f32 %v5240_v34 }
 0x2b1   : > { %v7602_v57 = vpop.f32.mrb[108].mxu1 }
 0x2b2   : > { %v7604_v60 = vpop.f32.mrb[109].mxu1 }
 0x2b5   : > { %v7606_v62 = vpop.f32.mrb[110].mxu1 }
 0x2b6   : > { %v7609_v5 = vpop.f32.mrb[111].mxu1 }
 0x2b8   : > { %v6173_v13 = vpop.eup %6172 }
 0x2b9   : > { %v7611_v8 = vpop.f32.mrb[112].mxu1  ;;  %v6175_v23 = vpop.eup %6174 }
 0x2ba   : > { %v7613_v10 = vpop.f32.mrb[113].mxu1 }
 0x2bd   : > { %v7616_v17 = vpop.f32.mrb[114].mxu1 }
 0x2be   : > { %v7618_v26 = vpop.f32.mrb[115].mxu1 }
 0x2c1   : > { %v7624_v29 = vpop.f32.mrb[116].mxu1 }
 0x2c2   : > { %v7626_v31 = vpop.f32.mrb[117].mxu1 }
 0x2c5   : > { %v7628_v36 = vpop.f32.mrb[118].mxu1 }
 0x2c6   : > { %v7630_v20 = vpop.f32.mrb[119].mxu1 }
 0x2c9   : > { %v7634_v59 = vpop.f32.mrb[120].mxu1  ;;  %2775 = vadd.xlane.f32.xlu1 %v2554_v45  ;;  %v2163_v45 = vadd.f32 %v7541_v56, %v7549_v1 }
 0x2ca   : > { %8676 = vst [vmem:[#allocation5_spill] sm:$0xff] %v7634_v59  ;;  %v7636_v58 = vpop.f32.mrb[121].mxu1  ;;  %2773 = vadd.xlane.f32.xlu0 %v2553_v53  ;;  %v2941_v59 = vadd.f32 %v7506_v61, %v2612_v25  ;;  %v2158_v53 = vadd.f32 %v7541_v56, %v7558_v9  ;;  %v2614_v9 = vpop.xlane.xlu0 %2613 }
 0x2cb   : > { %v2421_v63 = vmax.f32 %v2163_v45, 0.0  ;;  %v2942_v34 = vadd.f32 %v7510_v2, %v2614_v9  ;;  %v2616_v45 = vpop.xlane.xlu1 %2615 }
 0x2cc   : > { %v5241_v51 = vmul.f32 -1.442695, %v2941_v59  ;;  %v2420_v6 = vmax.f32 %v2158_v53, 0.0  ;;  %v2943_v53 = vadd.f32 %v7516_v18, %v2616_v45 }
 0x2cd   : > { %v2556_v7 = vmul.f32 %v7554_v3, %v2421_v63  ;;  %v2173_v63 = vadd.f32 %v7541_v56, %v7562_v12 }
 0x2ce   : > { %6178 = vpow2.f32 %v5241_v51  ;;  %v5242_v51 = vmul.f32 -1.442695, %v2942_v34 }
 0x2da   : > { %3979 = vperm.xlu1 %6159, %v6173_v13   ;;  %v6177_v13 = vpop.eup %6176 }
 0x2db   : > { %v3452_v28 = vadd.f32 1.0, %v6177_v13  ;;  %v6179_v11 = vpop.eup %6178  ;;  %v2423_v13 = vmax.f32 %v2173_v63, 0.0 }
 0x2dc   : > { %v3453_v25 = vadd.f32 1.0, %v6179_v11 }
 0x2dd   : > { %6180 = vrcp.f32 %v3452_v28  ;;  %v2558_v28 = vmul.f32 %v7554_v3, %v2423_v13  ;;  %v2178_v13 = vadd.f32 %v7541_v56, %v7571_v30 }
 0x2de   : > { %6182 = vrcp.f32 %v3453_v25 }
 0x2df   : > { %6184 = vpow2.f32 %v5242_v51  ;;  %v2620_v51 = vpop.xlane.xlu1 %2619 }
 0x2e0   : > { %3982 = vperm.xlu0 %6158, %v6175_v23   ;;  %v2555_v23 = vmul.f32 %v7554_v3, %v2420_v6  ;;  %v5243_v6 = vmul.f32 -1.442695, %v2943_v53  ;;  %v2945_v63 = vadd.f32 %v7528_v39, %v2620_v51 }
 0x2e2   : > { %6186 = vpow2.f32 %v5243_v6  ;;  %v2183_v6 = vadd.f32 %v7541_v56, %v7568_v16 }
 0x2e7   : > { %v6181_v1 = vpop.eup %6180 }
 0x2e8   : > { %v6183_v59 = vpop.eup %6182 }
 0x2e9   : > { %v6185_v11 = vpop.eup %6184 }
 0x2fe   : > { %2779 = vadd.xlane.f32.xlu1 %v2556_v7  ;;  %v2168_v7 = vadd.f32 %v7541_v56, %v7565_v27  ;;  %v2618_v27 = vpop.xlane.xlu0 %2617 }
 0x2ff   : > { %2777 = vadd.xlane.f32.xlu0 %v2555_v23  ;;  %v2944_v45 = vadd.f32 %v7518_v24, %v2618_v27 }
 0x300   : > { %v2422_v23 = vmax.f32 %v2168_v7, 0.0  ;;  %v5245_v7 = vmul.f32 -1.442695, %v2945_v63  ;;  %v2193_v63 = vadd.f32 %v7541_v56, %v7574_v32 }
 0x301   : > { %v5244_v53 = vmul.f32 -1.442695, %v2944_v45 }
 0x302   : > { %v2557_v25 = vmul.f32 %v7554_v3, %v2422_v23  ;;  %v2425_v23 = vmax.f32 %v2183_v6, 0.0  ;;  %v2622_v30 = vpop.xlane.xlu0 %2621 }
 0x303   : > { %v2946_v45 = vadd.f32 %v7458_v50, %v2622_v30 }
 0x305   : > { %v5246_v51 = vmul.f32 -1.442695, %v2946_v45 }
 0x30f   : > { %3985 = vperm.xlu1 %6159, %v6181_v1   ;;  %v3454_v1 = vadd.f32 1.0, %v6185_v11  ;;  %v2560_v11 = vmul.f32 %v7554_v3, %v2425_v23 }
 0x311   : > { %6188 = vrcp.f32 %v3454_v1 }
 0x315   : > { %3988 = vperm.xlu0 %6158, %v6183_v59   ;;  %v6187_v59 = vpop.eup %6186 }
 0x316   : > { %v3455_v9 = vadd.f32 1.0, %v6187_v59 }
 0x318   : > { %6190 = vrcp.f32 %v3455_v9 }
 0x319   : > { %6192 = vpow2.f32 %v5244_v53 }
 0x31a   : > { %6194 = vpow2.f32 %v5245_v7  ;;  %v2188_v7 = vadd.f32 %v7541_v56, %v7576_v35 }
 0x31b   : > { %v6189_v12 = vpop.eup %6188 }
 0x31c   : > { %v2426_v23 = vmax.f32 %v2188_v7, 0.0 }
 0x322   : > { %v6191_v34 = vpop.eup %6190 }
 0x333   : > { %2783 = vadd.xlane.f32.xlu1 %v2558_v28  ;;  %v2424_v28 = vmax.f32 %v2178_v13, 0.0  ;;  %v2427_v13 = vmax.f32 %v2193_v63, 0.0 }
 0x334   : > { %2781 = vadd.xlane.f32.xlu0 %v2557_v25  ;;  %v6193_v25 = vpop.eup %6192 }
 0x335   : > { %v2559_v1 = vmul.f32 %v7554_v3, %v2424_v28  ;;  %v3456_v59 = vadd.f32 1.0, %v6193_v25  ;;  %v6195_v9 = vpop.eup %6194  ;;  %v2562_v28 = vmul.f32 %v7554_v3, %v2427_v13  ;;  %v2561_v25 = vmul.f32 %v7554_v3, %v2426_v23 }
 0x337   : > { %6196 = vrcp.f32 %v3456_v59  ;;  %v2626_v59 = vpop.xlane.xlu0 %2625 }
 0x338   : > { %v2948_v30 = vadd.f32 %v7456_v48, %v2626_v59 }
 0x33a   : > { %v5248_v45 = vmul.f32 -1.442695, %v2948_v30 }
 0x341   : > { %v6197_v16 = vpop.eup %6196 }
 0x344   : > { %3991 = vperm.xlu1 %6159, %v6189_v12   ;;  %v3457_v12 = vadd.f32 1.0, %v6195_v9 }
 0x346   : > { %6198 = vrcp.f32 %v3457_v12 }
 0x347   : > { %6200 = vpow2.f32 %v5246_v51 }
 0x34a   : > { %3994 = vperm.xlu0 %6158, %v6191_v34   ;;  %v2624_v34 = vpop.xlane.xlu1 %2623 }
 0x34b   : > { %v2947_v53 = vadd.f32 %v7448_v38, %v2624_v34 }
 0x34d   : > { %v5247_v6 = vmul.f32 -1.442695, %v2947_v53  ;;  %v2203_v53 = vadd.f32 %v7541_v56, %v7578_v37 }
 0x34f   : > { %6202 = vpow2.f32 %v5247_v6  ;;  %v2198_v6 = vadd.f32 %v7541_v56, %v7580_v15  ;;  %v2429_v7 = vmax.f32 %v2203_v53, 0.0 }
 0x350   : > { %v6199_v27 = vpop.eup %6198 }
 0x351   : > { %v2428_v13 = vmax.f32 %v2198_v6, 0.0  ;;  %v2564_v23 = vmul.f32 %v7554_v3, %v2429_v7 }
 0x368   : > { %2787 = vadd.xlane.f32.xlu1 %v2560_v11  ;;  %v6201_v11 = vpop.eup %6200 }
 0x369   : > { %2785 = vadd.xlane.f32.xlu0 %v2559_v1  ;;  %v2628_v1 = vpop.xlane.xlu1 %2627  ;;  %v3458_v9 = vadd.f32 1.0, %v6201_v11  ;;  %v6203_v12 = vpop.eup %6202  ;;  %v2563_v11 = vmul.f32 %v7554_v3, %v2428_v13  ;;  %v2208_v13 = vadd.f32 %v7541_v56, %v7584_v41 }
 0x36a   : > { %v3459_v32 = vadd.f32 1.0, %v6203_v12  ;;  %v2949_v51 = vadd.f32 %v7466_v0, %v2628_v1 }
 0x36b   : > { %6204 = vrcp.f32 %v3458_v9 }
 0x36c   : > { %6206 = vrcp.f32 %v3459_v32  ;;  %v5249_v63 = vmul.f32 -1.442695, %v2949_v51 }
 0x36d   : > { %v2632_v34 = vpop.xlane.xlu1 %2631  ;;  %6208 = vpow2.f32 %v5248_v45 }
 0x36e   : > { %6210 = vpow2.f32 %v5249_v63  ;;  %v2213_v63 = vadd.f32 %v7541_v56, %v7582_v40  ;;  %v2951_v6 = vadd.f32 %v7476_v21, %v2632_v34 }
 0x379   : > { %3997 = vperm.xlu1 %6159, %v6197_v16   ;;  %v6205_v16 = vpop.eup %6204 }
 0x37a   : > { %v6207_v35 = vpop.eup %6206 }
 0x37f   : > { %4000 = vperm.xlu0 %6158, %v6199_v27   ;;  %v2592_v27 = vpop.xlane.xlu0 %2591 }
 0x383   : > { %v2590_v59 = vpop.xlane.xlu0 %2589 }
 0x384   : > { %v2930_v51 = vadd.f32 %v7458_v50, %v2590_v59 }
 0x386   : > { %v5230_v7 = vmul.f32 -1.442695, %v2930_v51 }
 0x39d   : > { %2791 = vadd.xlane.f32.xlu1 %v2562_v28  ;;  %v6209_v28 = vpop.eup %6208 }
 0x39e   : > { %2789 = vadd.xlane.f32.xlu0 %v2561_v25  ;;  %v2596_v25 = vpop.xlane.xlu1 %2595  ;;  %v3460_v1 = vadd.f32 1.0, %v6209_v28  ;;  %v6211_v9 = vpop.eup %6210  ;;  %v5251_v28 = vmul.f32 -1.442695, %v2951_v6 }
 0x39f   : > { %v3461_v37 = vadd.f32 1.0, %v6211_v9 }
 0x3a0   : > { %6212 = vrcp.f32 %v3460_v1 }
 0x3a1   : > { %6214 = vrcp.f32 %v3461_v37 }
 0x3a2   : > { %v2594_v32 = vpop.xlane.xlu1 %2593 }
 0x3a6   : > { %v2636_v37 = vpop.xlane.xlu1 %2635 }
 0x3aa   : > { %v6213_v12 = vpop.eup %6212  ;;  %v2600_v51 = vpop.xlane.xlu1 %2599 }
 0x3ab   : > { %v6215_v15 = vpop.eup %6214 }
 0x3ae   : > { %4003 = vperm.xlu1 %6159, %v6205_v16   ;;  %v2630_v16 = vpop.xlane.xlu0 %2629 }
 0x3af   : > { %v2950_v45 = vadd.f32 %v7470_v4, %v2630_v16 }
 0x3b1   : > { %v5250_v53 = vmul.f32 -1.442695, %v2950_v45 }
 0x3b2   : > { %v2634_v34 = vpop.xlane.xlu0 %2633 }
 0x3b4   : > { %4006 = vperm.xlu0 %6158, %v6207_v35   ;;  %v2931_v35 = vadd.f32 %v7448_v38, %v2592_v27  ;;  %v2933_v27 = vadd.f32 %v7466_v0, %v2596_v25 }
 0x3b6   : > { %v5231_v30 = vmul.f32 -1.442695, %v2931_v35  ;;  %v5233_v9 = vmul.f32 -1.442695, %v2933_v27  ;;  %v2598_v6 = vpop.xlane.xlu0 %2597 }
 0x3b8   : > { %6216 = vpow2.f32 %v5231_v30 }
 0x3b9   : > { %6218 = vpow2.f32 %v5250_v53 }
 0x3ba   : > { %6220 = vpow2.f32 %v5230_v7 }
 0x3bb   : > { %6222 = vpow2.f32 %v5251_v28  ;;  %v2638_v28 = vpop.xlane.xlu0 %2637 }
 0x3bc   : > { %6224 = vpow2.f32 %v5233_v9 }
 0x3c2   : > { %v6217_v1 = vpop.eup %6216 }
 0x3c3   : > { %v6219_v41 = vpop.eup %6218 }
 0x3c4   : > { %v3462_v16 = vadd.f32 1.0, %v6219_v41  ;;  %v2223_v41 = vadd.f32 %v7541_v56, %v7586_v42 }
 0x3d2   : > { %2795 = vadd.xlane.f32.xlu1 %v2564_v23  ;;  %v2431_v23 = vmax.f32 %v2213_v63, 0.0 }
 0x3d3   : > { %2793 = vadd.xlane.f32.xlu0 %v2563_v11  ;;  %v2430_v11 = vmax.f32 %v2208_v13, 0.0  ;;  %v2640_v13 = vpop.xlane.xlu1 %2639 }
 0x3d4   : > { %v2566_v59 = vmul.f32 %v7554_v3, %v2431_v23 }
 0x3d5   : > { %v2565_v40 = vmul.f32 %v7554_v3, %v2430_v11 }
 0x3e3   : > { %4009 = vperm.xlu1 %6159, %v6213_v12   ;;  %v3443_v12 = vadd.f32 1.0, %v6217_v1  ;;  %v2932_v1 = vadd.f32 %v7456_v48, %v2594_v32 }
 0x3e5   : > { %6226 = vrcp.f32 %v3443_v12  ;;  %v5232_v9 = vmul.f32 -1.442695, %v2932_v1 }
 0x3e6   : > { %6228 = vrcp.f32 %v3462_v16  ;;  %v2433_v16 = vmax.f32 %v2223_v41, 0.0 }
 0x3e8   : > { %v2568_v32 = vmul.f32 %v7554_v3, %v2433_v16 }
 0x3e9   : > { %4012 = vperm.xlu0 %6158, %v6215_v15   ;;  %v6221_v15 = vpop.eup %6220 }
 0x3ea   : > { %v3442_v25 = vadd.f32 1.0, %v6221_v15  ;;  %v6223_v35 = vpop.eup %6222  ;;  %v2953_v15 = vadd.f32 %v7486_v33, %v2636_v37 }
 0x3eb   : > { %v3463_v30 = vadd.f32 1.0, %v6223_v35  ;;  %v6225_v45 = vpop.eup %6224  ;;  %v2935_v35 = vadd.f32 %v7476_v21, %v2600_v51 }
 0x3ec   : > { %6230 = vrcp.f32 %v3442_v25  ;;  %v3445_v63 = vadd.f32 1.0, %v6225_v45  ;;  %v5253_v25 = vmul.f32 -1.442695, %v2953_v15 }
 0x3ed   : > { %6232 = vrcp.f32 %v3463_v30  ;;  %v2218_v30 = vadd.f32 %v7541_v56, %v7588_v43 }
 0x3ee   : > { %6234 = vrcp.f32 %v3445_v63  ;;  %v7700_v63 = vpop.xlane.xlu1 %2643 }
 0x3ef   : > { %v6227_v53 = vpop.eup %6226  ;;  %6236 = vpow2.f32 %v5232_v9 }
 0x3f0   : > { %v6229_v7 = vpop.eup %6228 }
 0x3f2   : > { %v7705_v1 = vpop.xlane.xlu1 %2647 }
 0x3f6   : > { %v6231_v23 = vpop.eup %6230  ;;  %v7707_v41 = vpop.xlane.xlu1 %2651 }
 0x3f7   : > { %v6233_v27 = vpop.eup %6232 }
 0x3f8   : > { %v6235_v11 = vpop.eup %6234 }
 0x3f9   : > { %v6237_v45 = vpop.eup %6236 }
 0x3fa   : > { %v3444_v42 = vadd.f32 1.0, %v6237_v45  ;;  %v2954_v45 = vadd.f32 %v7490_v14, %v2638_v28 }
 0x407   : > { %2799 = vadd.xlane.f32.xlu1 %v2566_v59  ;;  %v7689_v59 = vpop.xlane.xlu0 %2641 }
 0x408   : > { %2797 = vadd.xlane.f32.xlu0 %v2565_v40  ;;  %v2952_v40 = vadd.f32 %v7478_v22, %v2634_v34  ;;  %v5235_v34 = vmul.f32 -1.442695, %v2935_v35 }
 0x40a   : > { %v5252_v12 = vmul.f32 -1.442695, %v2952_v40 }
 0x40c   : > { %6238 = vpow2.f32 %v5252_v12 }
 0x40d   : > { %6240 = vpow2.f32 %v5253_v25 }
 0x40e   : > { %6242 = vpow2.f32 %v5235_v34  ;;  %v5254_v34 = vmul.f32 -1.442695, %v2954_v45 }
 0x40f   : > { %6244 = vrcp.f32 %v3444_v42  ;;  %v2955_v42 = vadd.f32 %v7496_v44, %v2640_v13 }
 0x418   : > { %3958 = vperm.xlu1 %6159, %v6227_v53   ;;  %v2432_v53 = vmax.f32 %v2218_v30, 0.0  ;;  %v2934_v30 = vadd.f32 %v7470_v4, %v2598_v6 }
 0x41a   : > { %v2567_v37 = vmul.f32 %v7554_v3, %v2432_v53  ;;  %v2233_v53 = vadd.f32 %v7541_v56, %v7590_v19 }
 0x41c   : > { %4015 = vperm.xlu1 %6159, %v6229_v7   ;;  %v6239_v7 = vpop.eup %6238 }
 0x41d   : > { %v3464_v51 = vadd.f32 1.0, %v6239_v7  ;;  %v6241_v43 = vpop.eup %6240  ;;  %v2435_v7 = vmax.f32 %v2233_v53, 0.0  ;;  %v2956_v53 = vadd.f32 %v7498_v46, %v7689_v59 }
 0x41e   : > { %3955 = vperm.xlu0 %6158, %v6231_v23   ;;  %v7703_v23 = vpop.xlane.xlu0 %2645 }
 0x41f   : > { %6246 = vrcp.f32 %v3464_v51  ;;  %v2228_v51 = vadd.f32 %v7541_v56, %v7592_v47 }
 0x421   : > { %v2434_v6 = vmax.f32 %v2228_v51, 0.0 }
 0x422   : > { %4018 = vperm.xlu0 %6158, %v6233_v27   ;;  %v3465_v27 = vadd.f32 1.0, %v6241_v43  ;;  %v7709_v15 = vpop.xlane.xlu0 %2649  ;;  %v2570_v43 = vmul.f32 %v7554_v3, %v2435_v7  ;;  %v2957_v7 = vadd.f32 %v7506_v61, %v7700_v63 }
 0x423   : > { %v2569_v19 = vmul.f32 %v7554_v3, %v2434_v6 }
 0x424   : > { %6248 = vrcp.f32 %v3465_v27  ;;  %v5257_v51 = vmul.f32 -1.442695, %v2957_v7  ;;  %v2253_v7 = vadd.f32 %v7541_v56, %v7598_v54 }
 0x426   : > { %3964 = vperm.xlu0 %6158, %v6235_v11   ;;  %v6243_v11 = vpop.eup %6242  ;;  %v7711_v35 = vpop.xlane.xlu0 %2653 }
 0x427   : > { %v6245_v9 = vpop.eup %6244  ;;  %v3447_v40 = vadd.f32 1.0, %v6243_v11  ;;  %v7721_v11 = vpop.xlane.xlu1 %2655 }
 0x429   : > { %v6247_v12 = vpop.eup %6246  ;;  %6250 = vrcp.f32 %v3447_v40 }
 0x42a   : > { %v7724_v40 = vpop.xlane.xlu0 %2657 }
 0x42e   : > { %v6249_v16 = vpop.eup %6248 }
 0x433   : > { %v6251_v25 = vpop.eup %6250 }
 0x440   : > { %2803 = vadd.xlane.f32.xlu1 %v2568_v32  ;;  %v5234_v32 = vmul.f32 -1.442695, %v2934_v30 }
 0x442   : > { %6252 = vpow2.f32 %v5234_v32 }
 0x443   : > { %6254 = vpow2.f32 %v5254_v34  ;;  %v7730_v34 = vpop.xlane.xlu0 %2661 }
 0x445   : > { %2801 = vadd.xlane.f32.xlu0 %v2567_v37  ;;  %v5255_v37 = vmul.f32 -1.442695, %v2955_v42  ;;  %v5256_v42 = vmul.f32 -1.442695, %v2956_v53 }
 0x447   : > { %6256 = vpow2.f32 %v5255_v37  ;;  %v2243_v37 = vadd.f32 %v7541_v56, %v7594_v49  ;;  %v7744_v63 = vpop.xlane.xlu0 %2665 }
 0x44c   : > { %v6253_v27 = vpop.eup %6252 }
 0x44d   : > { %v3446_v28 = vadd.f32 1.0, %v6253_v27  ;;  %v2437_v27 = vmax.f32 %v2243_v37, 0.0 }
 0x44f   : > { %6258 = vrcp.f32 %v3446_v28  ;;  %v2572_v28 = vmul.f32 %v7554_v3, %v2437_v27 }
 0x451   : > { %3961 = vperm.xlu1 %6159, %v6245_v9   ;;  %v6255_v9 = vpop.eup %6254 }
 0x452   : > { %v3466_v13 = vadd.f32 1.0, %v6255_v9 }
 0x454   : > { %6260 = vrcp.f32 %v3466_v13 }
 0x455   : > { %4021 = vperm.xlu1 %6159, %v6247_v12   ;;  %v6257_v12 = vpop.eup %6256 }
 0x456   : > { %v3467_v47 = vadd.f32 1.0, %v6257_v12 }
 0x458   : > { %6262 = vrcp.f32 %v3467_v47 }
 0x459   : > { %6264 = vpow2.f32 %v5256_v42  ;;  %v2959_v42 = vadd.f32 %v7516_v18, %v7705_v1 }
 0x45a   : > { %6266 = vpow2.f32 %v5257_v51  ;;  %v2248_v51 = vadd.f32 %v7541_v56, %v7600_v55 }
 0x45b   : > { %4024 = vperm.xlu0 %6158, %v6249_v16   ;;  %v7726_v16 = vpop.xlane.xlu1 %2659  ;;  %v5259_v37 = vmul.f32 -1.442695, %v2959_v42  ;;  %v2263_v42 = vadd.f32 %v7541_v56, %v7602_v57 }
 0x45c   : > { %v2438_v27 = vmax.f32 %v2248_v51, 0.0 }
 0x45d   : > { %v2441_v51 = vmax.f32 %v2263_v42, 0.0  ;;  %v2962_v42 = vadd.f32 %v7458_v50, %v7711_v35 }
 0x45f   : > { %3970 = vperm.xlu0 %6158, %v6251_v25   ;;  %v6259_v25 = vpop.eup %6258  ;;  %v7728_v32 = vpop.xlane.xlu1 %2663 }
 0x460   : > { %v6261_v30 = vpop.eup %6260 }
 0x462   : > { %v6263_v45 = vpop.eup %6262 }
 0x463   : > { %v6265_v9 = vpop.eup %6264 }
 0x464   : > { %v3468_v13 = vadd.f32 1.0, %v6265_v9  ;;  %v6267_v49 = vpop.eup %6266 }
 0x465   : > { %v3469_v12 = vadd.f32 1.0, %v6267_v49 }
 0x466   : > { %6268 = vrcp.f32 %v3468_v13 }
 0x467   : > { %6270 = vrcp.f32 %v3469_v12 }
 0x479   : > { %2807 = vadd.xlane.f32.xlu1 %v2570_v43  ;;  %v2238_v43 = vadd.f32 %v7541_v56, %v7596_v52  ;;  %v6269_v52 = vpop.eup %6268 }
 0x47b   : > { %v2436_v6 = vmax.f32 %v2238_v43, 0.0  ;;  %v2439_v43 = vmax.f32 %v2253_v7, 0.0 }
 0x47d   : > { %v2571_v59 = vmul.f32 %v7554_v3, %v2436_v6  ;;  %v2574_v6 = vmul.f32 %v7554_v3, %v2439_v43 }
 0x47e   : > { %2805 = vadd.xlane.f32.xlu0 %v2569_v19  ;;  %v7742_v19 = vpop.xlane.xlu1 %2667 }
 0x482   : > { %v7746_v47 = vpop.xlane.xlu1 %2671 }
 0x486   : > { %v7760_v9 = vpop.xlane.xlu1 %2675 }
 0x48a   : > { %3967 = vperm.xlu1 %6159, %v6259_v25   ;;  %v6271_v25 = vpop.eup %6270  ;;  %v7764_v49 = vpop.xlane.xlu1 %2679 }
 0x48e   : > { %4027 = vperm.xlu1 %6159, %v6261_v30   ;;  %v7748_v30 = vpop.xlane.xlu0 %2669 }
 0x492   : > { %v7762_v1 = vpop.xlane.xlu0 %2673 }
 0x494   : > { %4030 = vperm.xlu0 %6158, %v6263_v45   ;;  %v2958_v45 = vadd.f32 %v7510_v2, %v7703_v23  ;;  %v2573_v23 = vmul.f32 %v7554_v3, %v2438_v27  ;;  %v2576_v27 = vmul.f32 %v7554_v3, %v2441_v51  ;;  %v2963_v51 = vadd.f32 %v7448_v38, %v7721_v11 }
 0x496   : > { %v5258_v53 = vmul.f32 -1.442695, %v2958_v45 }
 0x498   : > { %6272 = vpow2.f32 %v5258_v53  ;;  %v2961_v53 = vadd.f32 %v7528_v39, %v7707_v41 }
 0x499   : > { %6274 = vpow2.f32 %v5259_v37  ;;  %v2258_v37 = vadd.f32 %v7541_v56, %v7604_v60 }
 0x49a   : > { %v5261_v7 = vmul.f32 -1.442695, %v2961_v53 }
 0x49b   : > { %v2440_v43 = vmax.f32 %v2258_v37, 0.0  ;;  %v5262_v37 = vmul.f32 -1.442695, %v2962_v42 }
 0x4b2   : > { %2811 = vadd.xlane.f32.xlu1 %v2572_v28  ;;  %v6273_v28 = vpop.eup %6272 }
 0x4b3   : > { %2809 = vadd.xlane.f32.xlu0 %v2571_v59  ;;  %v3470_v59 = vadd.f32 1.0, %v6273_v28  ;;  %v6275_v54 = vpop.eup %6274  ;;  %v7778_v28 = vpop.xlane.xlu1 %2683 }
 0x4b4   : > { %v3471_v13 = vadd.f32 1.0, %v6275_v54 }
 0x4b5   : > { %6276 = vrcp.f32 %v3470_v59 }
 0x4b6   : > { %6278 = vrcp.f32 %v3471_v13 }
 0x4b7   : > { %v7782_v59 = vpop.xlane.xlu1 %2687 }
 0x4bb   : > { %v7784_v54 = vpop.xlane.xlu1 %2691 }
 0x4bf   : > { %v6277_v55 = vpop.eup %6276 }
 0x4c0   : > { %v6279_v12 = vpop.eup %6278 }
 0x4c3   : > { %4033 = vperm.xlu1 %6159, %v6269_v52   ;;  %v7766_v52 = vpop.xlane.xlu0 %2677 }
 0x4c7   : > { %v7780_v41 = vpop.xlane.xlu0 %2681 }
 0x4c9   : > { %4036 = vperm.xlu0 %6158, %v6271_v25   ;;  %v2960_v25 = vadd.f32 %v7518_v24, %v7709_v15  ;;  %v2575_v15 = vmul.f32 %v7554_v3, %v2440_v43 }
 0x4cb   : > { %v5260_v45 = vmul.f32 -1.442695, %v2960_v25  ;;  %v7788_v25 = vpop.xlane.xlu0 %2685 }
 0x4cd   : > { %6280 = vpow2.f32 %v5260_v45 }
 0x4ce   : > { %6282 = vpow2.f32 %v5261_v7 }
 0x4e7   : > { %2815 = vadd.xlane.f32.xlu1 %v2574_v6  ;;  %v6281_v6 = vpop.eup %6280 }
 0x4e8   : > { %2813 = vadd.xlane.f32.xlu0 %v2573_v23  ;;  %v3472_v23 = vadd.f32 1.0, %v6281_v6  ;;  %v6283_v57 = vpop.eup %6282  ;;  %v5263_v6 = vmul.f32 -1.442695, %v2963_v51 }
 0x4e9   : > { %v3473_v60 = vadd.f32 1.0, %v6283_v57  ;;  %v7806_v57 = vpop.xlane.xlu0 %2689 }
 0x4ea   : > { %6284 = vrcp.f32 %v3472_v23 }
 0x4eb   : > { %6286 = vrcp.f32 %v3473_v60 }
 0x4ec   : > { %6288 = vpow2.f32 %v5262_v37 }
 0x4ed   : > { %6290 = vpow2.f32 %v5263_v6  ;;  %v7812_v42 = vpop.xlane.xlu0 %2693 }
 0x4f1   : > { %v7816_v51 = vpop.xlane.xlu0 %2697 }
 0x4f4   : > { %v6285_v13 = vpop.eup %6284 }
 0x4f8   : > { %4039 = vperm.xlu1 %6159, %v6277_v55   ;;  %v7786_v55 = vpop.xlane.xlu1 %2695 }
 0x4fc   : > { %v7790_v45 = vpop.xlane.xlu1 %2699 }
 0x4fe   : > { %4042 = vperm.xlu0 %6158, %v6279_v12   ;;  %v6287_v12 = vpop.eup %6286 }
 0x4ff   : > { %v6289_v11 = vpop.eup %6288 }
 0x500   : > { %v7792_v53 = vpop.xlane.xlu1 %2703  ;;  %v3474_v37 = vadd.f32 1.0, %v6289_v11 }
 0x502   : > { %6292 = vrcp.f32 %v3474_v37 }
 0x504   : > { %v7796_v7 = vpop.xlane.xlu1 %2707 }
 0x508   : > { %v7800_v43 = vpop.xlane.xlu1 %2711 }
 0x509   : > { %8677 = vst [vmem:[#allocation6_spill] sm:$0xff] %v7800_v43 }
 0x50c   : > { %v7808_v60 = vpop.xlane.xlu1 %2715 }
 0x50d   : > { %8678 = vst [vmem:[#allocation7_spill] sm:$0xff] %v7808_v60 }
 0x51c   : > { %2819 = vadd.xlane.f32.xlu1 %v2576_v27  ;;  %v2273_v27 = vadd.f32 %v7541_v56, %v7606_v62  ;;  %v7814_v62 = vpop.xlane.xlu1 %2719 }
 0x51d   : > { %2817 = vadd.xlane.f32.xlu0 %v2575_v15  ;;  %v2268_v15 = vadd.f32 %v7541_v56, %v7609_v5  ;;  %8679 = vst [vmem:[#allocation8_spill] sm:$0xff] %v7814_v62  ;;  %v6291_v5 = vpop.eup %6290 }
 0x51e   : > { %v2443_v23 = vmax.f32 %v2273_v27, 0.0  ;;  %v3475_v6 = vadd.f32 1.0, %v6291_v5 }
 0x51f   : > { %v2442_v35 = vmax.f32 %v2268_v15, 0.0  ;;  %v7820_v15 = vpop.xlane.xlu0 %2701 }
 0x520   : > { %v7818_v27 = vpop.xlane.xlu1 %2723  ;;  %6294 = vrcp.f32 %v3475_v6  ;;  %v2964_v6 = vadd.f32 %v7456_v48, %v7724_v40  ;;  %v2278_v40 = vadd.f32 %v7541_v56, %v7613_v10 }
 0x521   : > { %8680 = vst [vmem:[#allocation9_spill] sm:$0xff] %v7818_v27 }
 0x522   : > { %v5264_v27 = vmul.f32 -1.442695, %v2964_v6 }
 0x523   : > { %v7824_v60 = vpop.xlane.xlu0 %2705 }
 0x524   : > { %6296 = vpow2.f32 %v5264_v27 }
 0x527   : > { %v7828_v11 = vpop.xlane.xlu0 %2709 }
 0x52b   : > { %v7832_v62 = vpop.xlane.xlu0 %2713 }
 0x52c   : > { %8684 = vst [vmem:[#allocation13_spill] sm:$0xff] %v7832_v62 }
 0x52d   : > { %4045 = vperm.xlu1 %6159, %v6285_v13   ;;  %v2578_v13 = vmul.f32 %v7554_v3, %v2443_v23  ;;  %v7822_v23 = vpop.xlane.xlu1 %2727 }
 0x52e   : > { %8681 = vst [vmem:[#allocation10_spill] sm:$0xff] %v7822_v23 }
 0x52f   : > { %v7838_v23 = vpop.xlane.xlu0 %2717 }
 0x530   : > { %8686 = vst [vmem:[#allocation15_spill] sm:$0xff] %v7838_v23  ;;  %v2444_v23 = vmax.f32 %v2278_v40, 0.0 }
 0x533   : > { %4048 = vperm.xlu0 %6158, %v6287_v12   ;;  %v2577_v12 = vmul.f32 %v7554_v3, %v2442_v35  ;;  %v6293_v35 = vpop.eup %6292 }
 0x551   : > { %2823 = vadd.xlane.f32.xlu1 %v2578_v13  ;;  %v7826_v13 = vpop.xlane.xlu1 %2731 }
 0x552   : > { %2821 = vadd.xlane.f32.xlu0 %v2577_v12  ;;  %8682 = vst [vmem:[#allocation11_spill] sm:$0xff] %v7826_v13  ;;  %v6295_v12 = vpop.eup %6294  ;;  %v2965_v13 = vadd.f32 %v7466_v0, %v7726_v16 }
 0x553   : > { %v6297_v27 = vpop.eup %6296 }
 0x555   : > { %v7830_v37 = vpop.xlane.xlu1 %2735 }
 0x556   : > { %8683 = vst [vmem:[#allocation12_spill] sm:$0xff] %v7830_v37  ;;  %v2283_v37 = vadd.f32 %v7541_v56, %v7611_v8 }
 0x558   : > { %v2445_v62 = vmax.f32 %v2283_v37, 0.0 }
 0x559   : > { %v7834_v5 = vpop.xlane.xlu1 %2739 }
 0x55a   : > { %8685 = vst [vmem:[#allocation14_spill] sm:$0xff] %v7834_v5  ;;  %v5265_v5 = vmul.f32 -1.442695, %v2965_v13  ;;  %v2580_v16 = vmul.f32 %v7554_v3, %v2445_v62  ;;  %v3476_v13 = vadd.f32 1.0, %v6297_v27 }
 0x55c   : > { %6298 = vpow2.f32 %v5265_v5 }
 0x55d   : > { %6300 = vrcp.f32 %v3476_v13 }
 0x562   : > { %4051 = vperm.xlu1 %6159, %v6293_v35   ;;  %v7840_v35 = vpop.xlane.xlu1 %2743 }
 0x563   : > { %8687 = vst [vmem:[#allocation16_spill] sm:$0xff] %v7840_v35 }
 0x566   : > { %v7848_v43 = vpop.xlane.xlu1 %2747  ;;  %v6299_v56 = vpop.eup %6298 }
 0x567   : > { %8689 = vst [vmem:[#allocation18_spill] sm:$0xff] %v7848_v43  ;;  %v3477_v37 = vadd.f32 1.0, %v6299_v56 }
 0x568   : > { %4054 = vperm.xlu0 %6158, %v6295_v12   ;;  %v7844_v12 = vpop.xlane.xlu0 %2721 }
 0x569   : > { %8688 = vst [vmem:[#allocation17_spill] sm:$0xff] %v7844_v12  ;;  %v2579_v12 = vmul.f32 %v7554_v3, %v2444_v23  ;;  %6302 = vrcp.f32 %v3477_v37  ;;  %v6301_v3 = vpop.eup %6300  ;;  %v2966_v37 = vadd.f32 %v7470_v4, %v7730_v34 }
 0x56a   : > { %v7854_v6 = vpop.xlane.xlu1 %2751 }
 0x56b   : > { %8690 = vst [vmem:[#allocation19_spill] sm:$0xff] %v7854_v6 }
 0x56c   : > { %v7852_v35 = vpop.xlane.xlu0 %2725 }
 0x56e   : > { %v7860_v43 = vpop.xlane.xlu1 %2755 }
 0x56f   : > { %8691 = vst [vmem:[#allocation20_spill] sm:$0xff] %v7860_v43  ;;  %v5266_v43 = vmul.f32 -1.442695, %v2966_v37 }
 0x570   : > { %v7858_v8 = vpop.xlane.xlu0 %2729 }
 0x571   : > { %6304 = vpow2.f32 %v5266_v43 }
 0x572   : > { %v7864_v5 = vpop.xlane.xlu1 %2759 }
 0x573   : > { %8692 = vst [vmem:[#allocation21_spill] sm:$0xff] %v7864_v5 }
 0x574   : > { %v7862_v10 = vpop.xlane.xlu0 %2733 }
 0x576   : > { %v7868_v62 = vpop.xlane.xlu1 %2763 }
 0x577   : > { %8693 = vst [vmem:[#allocation22_spill] sm:$0xff] %v7868_v62 }
 0x578   : > { %v7866_v40 = vpop.xlane.xlu0 %2737 }
 0x57c   : > { %v7870_v23 = vpop.xlane.xlu0 %2741 }
 0x57d   : > { %8694 = vst [vmem:[#allocation23_spill] sm:$0xff] %v7870_v23 }
 0x580   : > { %v7874_v27 = vpop.xlane.xlu0 %2745 }
 0x581   : > { %8696 = vst [vmem:[#allocation25_spill] sm:$0xff] %v7874_v27 }
 0x584   : > { %v7878_v56 = vpop.xlane.xlu0 %2749 }
 0x585   : > { %8698 = vst [vmem:[#allocation27_spill] sm:$0xff] %v7878_v56 }
 0x586   : > { %2827 = vadd.xlane.f32.xlu1 %v2580_v16  ;;  %v6303_v16 = vpop.eup %6302 }
 0x587   : > { %2825 = vadd.xlane.f32.xlu0 %v2579_v12  ;;  %v7872_v12 = vpop.xlane.xlu1 %2767  ;;  %v6305_v56 = vpop.eup %6304 }
 0x588   : > { %8695 = vst [vmem:[#allocation24_spill] sm:$0xff] %v7872_v12  ;;  %v2967_v12 = vadd.f32 %v7476_v21, %v7728_v32 }
 0x58b   : > { %v7876_v13 = vpop.xlane.xlu1 %2771 }
 0x58c   : > { %8697 = vst [vmem:[#allocation26_spill] sm:$0xff] %v7876_v13  ;;  %v7895_v13 = vld [vmem:[%s8668_s4 + $0x1] ss:$0 sm:$0xff] }
 0x58d   : > { %v2288_v37 = vadd.f32 %v7895_v13, %v7618_v26  ;;  %v3478_v26 = vadd.f32 1.0, %v6305_v56 }
 0x58f   : > { %v7880_v5 = vpop.permute.xlu1 %3973  ;;  %v2446_v43 = vmax.f32 %v2288_v37, 0.0 }
 0x590   : > { %8699 = vst [vmem:[#allocation28_spill] sm:$0xff] %v7880_v5  ;;  %v2293_v5 = vadd.f32 %v7895_v13, %v7616_v17 }
 0x592   : > { %v2447_v32 = vmax.f32 %v2293_v5, 0.0 }
 0x593   : > { %v7884_v62 = vpop.xlane.xlu1 %2775 }
 0x594   : > { %8700 = vst [vmem:[#allocation29_spill] sm:$0xff] %v7884_v62  ;;  %v5267_v62 = vmul.f32 -1.442695, %v2967_v12 }
 0x596   : > { %6306 = vpow2.f32 %v5267_v62 }
 0x597   : > { %4057 = vperm.xlu1 %6159, %v6301_v3   ;;  %v7886_v3 = vpop.xlane.xlu0 %2753  ;;  %6308 = vrcp.f32 %v3478_v26 }
 0x598   : > { %8701 = vst [vmem:[#allocation30_spill] sm:$0xff] %v7886_v3  ;;  %v7910_v3 = vld [vmem:[%s8667_s3] ss:$0 sm:$0xff] }
 0x599   : > { %v2582_v17 = vmul.f32 %v7910_v3, %v2447_v32  ;;  %v2581_v12 = vmul.f32 %v7910_v3, %v2446_v43 }
 0x59b   : > { %v7899_v34 = vpop.xlane.xlu0 %2757 }
 0x59c   : > { %8703 = vst [vmem:[#allocation32_spill] sm:$0xff] %v7899_v34 }
 0x59d   : > { %4060 = vperm.xlu0 %6158, %v6303_v16   ;;  %v7890_v16 = vpop.permute.xlu1 %3979 }
 0x59e   : > { %8702 = vst [vmem:[#allocation31_spill] sm:$0xff] %v7890_v16 }
 0x59f   : > { %v7905_v16 = vpop.xlane.xlu0 %2761 }
 0x5a0   : > { %8705 = vst [vmem:[#allocation34_spill] sm:$0xff] %v7905_v16  ;;  %v6307_v37 = vpop.eup %6306 }
 0x5a1   : > { %v7903_v6 = vpop.xlane.xlu1 %2779 }
 0x5a2   : > { %8704 = vst [vmem:[#allocation33_spill] sm:$0xff] %v7903_v6  ;;  %v3479_v6 = vadd.f32 1.0, %v6307_v37 }
 0x5a3   : > { %v7916_v5 = vpop.xlane.xlu0 %2765 }
 0x5a4   : > { %8707 = vst [vmem:[#allocation36_spill] sm:$0xff] %v7916_v5  ;;  %6310 = vrcp.f32 %v3479_v6 }
 0x5a5   : > { %v7914_v34 = vpop.permute.xlu1 %3985 }
 0x5a6   : > { %8706 = vst [vmem:[#allocation35_spill] sm:$0xff] %v7914_v34  ;;  %v6309_v34 = vpop.eup %6308 }
 0x5a7   : > { %v7920_v16 = vpop.xlane.xlu0 %2769 }
 0x5a8   : > { %8709 = vst [vmem:[#allocation38_spill] sm:$0xff] %v7920_v16  ;;  %v2976_v16 = vadd.f32 %v7518_v24, %v7780_v41  ;;  %v2975_v41 = vadd.f32 %v7516_v18, %v7764_v49 }
 0x5a9   : > { %v7918_v62 = vpop.xlane.xlu1 %2783 }
 0x5aa   : > { %8708 = vst [vmem:[#allocation37_spill] sm:$0xff] %v7918_v62 }
 0x5ab   : > { %v7924_v32 = vpop.permute.xlu0 %3976 }
 0x5ac   : > { %8711 = vst [vmem:[#allocation40_spill] sm:$0xff] %v7924_v32 }
 0x5ad   : > { %v7922_v27 = vpop.permute.xlu1 %3991 }
 0x5ae   : > { %8710 = vst [vmem:[#allocation39_spill] sm:$0xff] %v7922_v27  ;;  %v6311_v62 = vpop.eup %6310 }
 0x5b1   : > { %v7926_v43 = vpop.xlane.xlu1 %2787 }
 0x5b2   : > { %8712 = vst [vmem:[#allocation41_spill] sm:$0xff] %v7926_v43 }
 0x5b5   : > { %v7930_v56 = vpop.permute.xlu1 %3997 }
 0x5b6   : > { %8714 = vst [vmem:[#allocation43_spill] sm:$0xff] %v7930_v56 }
 0x5b9   : > { %v7934_v26 = vpop.xlane.xlu1 %2791 }
 0x5ba   : > { %8716 = vst [vmem:[#allocation45_spill] sm:$0xff] %v7934_v26 }
 0x5bb   : > { %2831 = vadd.xlane.f32.xlu1 %v2582_v17  ;;  %v7928_v17 = vpop.xlane.xlu0 %2773 }
 0x5bc   : > { %2829 = vadd.xlane.f32.xlu0 %v2581_v12  ;;  %8713 = vst [vmem:[#allocation42_spill] sm:$0xff] %v7928_v17 }
 0x5bd   : > { %v7940_v6 = vpop.permute.xlu1 %4003 }
 0x5be   : > { %8719 = vst [vmem:[#allocation48_spill] sm:$0xff] %v7940_v6 }
 0x5bf   : > { %v7932_v12 = vpop.permute.xlu0 %3982 }
 0x5c0   : > { %8715 = vst [vmem:[#allocation44_spill] sm:$0xff] %v7932_v12 }
 0x5c1   : > { %v7944_v43 = vpop.xlane.xlu1 %2795 }
 0x5c2   : > { %8721 = vst [vmem:[#allocation50_spill] sm:$0xff] %v7944_v43 }
 0x5c3   : > { %v7936_v37 = vpop.xlane.xlu0 %2777 }
 0x5c4   : > { %8717 = vst [vmem:[#allocation46_spill] sm:$0xff] %v7936_v37 }
 0x5c5   : > { %v7950_v17 = vpop.permute.xlu1 %4009 }
 0x5c6   : > { %8723 = vst [vmem:[#allocation52_spill] sm:$0xff] %v7950_v17 }
 0x5c7   : > { %v7938_v27 = vpop.permute.xlu0 %3988 }
 0x5c8   : > { %8718 = vst [vmem:[#allocation47_spill] sm:$0xff] %v7938_v27  ;;  %v2303_v27 = vadd.f32 %v7895_v13, %v7624_v29 }
 0x5c9   : > { %v7958_v6 = vpop.xlane.xlu1 %2799 }
 0x5ca   : > { %8725 = vst [vmem:[#allocation54_spill] sm:$0xff] %v7958_v6  ;;  %v2973_v6 = vadd.f32 %v7506_v61, %v7760_v9 }
 0x5cb   : > { %v7942_v32 = vpop.xlane.xlu0 %2781 }
 0x5cc   : > { %4063 = vperm.xlu1 %6159, %v6309_v34   ;;  %8720 = vst [vmem:[#allocation49_spill] sm:$0xff] %v7942_v32  ;;  %v2968_v34 = vadd.f32 %v7478_v22, %v7744_v63  ;;  %v2298_v63 = vadd.f32 %v7895_v13, %v7626_v31 }
 0x5ce   : > { %v5268_v12 = vmul.f32 -1.442695, %v2968_v34  ;;  %v2449_v34 = vmax.f32 %v2303_v27, 0.0 }
 0x5cf   : > { %v7948_v56 = vpop.permute.xlu0 %3994 }
 0x5d0   : > { %8722 = vst [vmem:[#allocation51_spill] sm:$0xff] %v7948_v56  ;;  %6312 = vpow2.f32 %v5268_v12  ;;  %v2448_v56 = vmax.f32 %v2298_v63, 0.0  ;;  %v2584_v12 = vmul.f32 %v7910_v3, %v2449_v34 }
 0x5d2   : > { %4066 = vperm.xlu0 %6158, %v6311_v62   ;;  %v2969_v62 = vadd.f32 %v7486_v33, %v7742_v19  ;;  %v7966_v19 = vpop.permute.xlu1 %3958  ;;  %v2583_v29 = vmul.f32 %v7910_v3, %v2448_v56 }
 0x5d3   : > { %v7954_v26 = vpop.xlane.xlu0 %2785  ;;  %8728 = vst [vmem:[#allocation57_spill] sm:$0xff] %v7966_v19 }
 0x5d4   : > { %8724 = vst [vmem:[#allocation53_spill] sm:$0xff] %v7954_v26  ;;  %v5269_v43 = vmul.f32 -1.442695, %v2969_v62 }
 0x5d6   : > { %6314 = vpow2.f32 %v5269_v43  ;;  %v7972_v31 = vpop.permute.xlu1 %4015 }
 0x5d7   : > { %v7962_v32 = vpop.permute.xlu0 %4000  ;;  %8730 = vst [vmem:[#allocation59_spill] sm:$0xff] %v7972_v31 }
 0x5d8   : > { %8726 = vst [vmem:[#allocation55_spill] sm:$0xff] %v7962_v32 }
 0x5da   : > { %v6313_v26 = vpop.eup %6312  ;;  %v7976_v43 = vpop.xlane.xlu1 %2803 }
 0x5db   : > { %v7964_v17 = vpop.xlane.xlu0 %2789  ;;  %v3480_v62 = vadd.f32 1.0, %v6313_v26  ;;  %8732 = vst [vmem:[#allocation61_spill] sm:$0xff] %v7976_v43 }
 0x5dc   : > { %8727 = vst [vmem:[#allocation56_spill] sm:$0xff] %v7964_v17 }
 0x5dd   : > { %6316 = vrcp.f32 %v3480_v62 }
 0x5de   : > { %v7982_v56 = vpop.permute.xlu1 %3961 }
 0x5df   : > { %v7970_v37 = vpop.permute.xlu0 %4006  ;;  %8735 = vst [vmem:[#allocation64_spill] sm:$0xff] %v7982_v56 }
 0x5e0   : > { %8729 = vst [vmem:[#allocation58_spill] sm:$0xff] %v7970_v37  ;;  %v6315_v27 = vpop.eup %6314 }
 0x5e1   : > { %v3481_v19 = vadd.f32 1.0, %v6315_v27 }
 0x5e2   : > { %v7986_v26 = vpop.permute.xlu1 %4021 }
 0x5e3   : > { %v7974_v32 = vpop.xlane.xlu0 %2793  ;;  %6318 = vrcp.f32 %v3481_v19  ;;  %8737 = vst [vmem:[#allocation66_spill] sm:$0xff] %v7986_v26  ;;  %v2970_v19 = vadd.f32 %v7490_v14, %v7748_v30  ;;  %v2308_v30 = vadd.f32 %v7895_v13, %v7630_v20 }
 0x5e4   : > { %8731 = vst [vmem:[#allocation60_spill] sm:$0xff] %v7974_v32 }
 0x5e5   : > { %v5270_v26 = vmul.f32 -1.442695, %v2970_v19 }
 0x5e6   : > { %v7990_v62 = vpop.xlane.xlu1 %2807 }
 0x5e7   : > { %v7978_v63 = vpop.permute.xlu0 %4012  ;;  %8739 = vst [vmem:[#allocation68_spill] sm:$0xff] %v7990_v62  ;;  %6320 = vpow2.f32 %v5270_v26 }
 0x5e8   : > { %8733 = vst [vmem:[#allocation62_spill] sm:$0xff] %v7978_v63 }
 0x5ea   : > { %v7994_v27 = vpop.permute.xlu1 %3967 }
 0x5eb   : > { %v7980_v34 = vpop.xlane.xlu0 %2797  ;;  %8741 = vst [vmem:[#allocation70_spill] sm:$0xff] %v7994_v27  ;;  %v2313_v27 = vadd.f32 %v7895_v13, %v7628_v36 }
 0x5ec   : > { %8734 = vst [vmem:[#allocation63_spill] sm:$0xff] %v7980_v34 }
 0x5ed   : > { %v2451_v19 = vmax.f32 %v2313_v27, 0.0 }
 0x5ee   : > { %v8000_v56 = vpop.permute.xlu1 %4027 }
 0x5ef   : > { %v7984_v37 = vpop.permute.xlu0 %3955  ;;  %8743 = vst [vmem:[#allocation72_spill] sm:$0xff] %v8000_v56  ;;  %v2586_v26 = vmul.f32 %v7910_v3, %v2451_v19 }
 0x5f0   : > { %2835 = vadd.xlane.f32.xlu1 %v2584_v12  ;;  %8736 = vst [vmem:[#allocation65_spill] sm:$0xff] %v7984_v37  ;;  %v6317_v12 = vpop.eup %6316 }
 0x5f1   : > { %2833 = vadd.xlane.f32.xlu0 %v2583_v29  ;;  %v6319_v31 = vpop.eup %6318 }
 0x5f2   : > { %v8004_v37 = vpop.xlane.xlu1 %2811 }
 0x5f3   : > { %v7988_v29 = vpop.permute.xlu0 %4018  ;;  %8745 = vst [vmem:[#allocation74_spill] sm:$0xff] %v8004_v37 }
 0x5f4   : > { %8738 = vst [vmem:[#allocation67_spill] sm:$0xff] %v7988_v29  ;;  %v2971_v29 = vadd.f32 %v7496_v44, %v7746_v47 }
 0x5f6   : > { %v8014_v62 = vpop.permute.xlu1 %4033 }
 0x5f7   : > { %v7992_v43 = vpop.permute.xlu0 %3964  ;;  %8747 = vst [vmem:[#allocation76_spill] sm:$0xff] %v8014_v62 }
 0x5f8   : > { %8740 = vst [vmem:[#allocation69_spill] sm:$0xff] %v7992_v43  ;;  %v5271_v43 = vmul.f32 -1.442695, %v2971_v29 }
 0x5fa   : > { %6322 = vpow2.f32 %v5271_v43  ;;  %v8018_v37 = vpop.xlane.xlu1 %2815 }
 0x5fb   : > { %v7996_v63 = vpop.xlane.xlu0 %2801  ;;  %8749 = vst [vmem:[#allocation78_spill] sm:$0xff] %v8018_v37 }
 0x5fc   : > { %8742 = vst [vmem:[#allocation71_spill] sm:$0xff] %v7996_v63 }
 0x5fe   : > { %v8026_v20 = vpop.permute.xlu1 %4039 }
 0x5ff   : > { %8752 = vst [vmem:[#allocation81_spill] sm:$0xff] %v8026_v20 }
 0x601   : > { %4069 = vperm.xlu1 %6159, %v6317_v12   ;;  %v8002_v12 = vpop.permute.xlu0 %4024 }
 0x602   : > { %8744 = vst [vmem:[#allocation73_spill] sm:$0xff] %v8002_v12  ;;  %v2450_v12 = vmax.f32 %v2308_v30, 0.0  ;;  %v8030_v27 = vpop.xlane.xlu1 %2819 }
 0x603   : > { %8754 = vst [vmem:[#allocation83_spill] sm:$0xff] %v8030_v27 }
 0x604   : > { %v2585_v36 = vmul.f32 %v7910_v3, %v2450_v12 }
 0x606   : > { %v8034_v19 = vpop.permute.xlu1 %4045 }
 0x607   : > { %4072 = vperm.xlu0 %6158, %v6319_v31   ;;  %v8008_v31 = vpop.permute.xlu0 %3970  ;;  %8756 = vst [vmem:[#allocation85_spill] sm:$0xff] %v8034_v19 }
 0x608   : > { %8746 = vst [vmem:[#allocation75_spill] sm:$0xff] %v8008_v31  ;;  %v6321_v31 = vpop.eup %6320 }
 0x609   : > { %v3482_v62 = vadd.f32 1.0, %v6321_v31  ;;  %v6323_v43 = vpop.eup %6322 }
 0x60a   : > { %v3483_v30 = vadd.f32 1.0, %v6323_v43 }
 0x60b   : > { %v8016_v56 = vpop.xlane.xlu0 %2805  ;;  %6324 = vrcp.f32 %v3482_v62 }
 0x60c   : > { %8748 = vst [vmem:[#allocation77_spill] sm:$0xff] %v8016_v56  ;;  %6326 = vrcp.f32 %v3483_v30 }
 0x60f   : > { %v8020_v47 = vpop.permute.xlu0 %4030 }
 0x610   : > { %8750 = vst [vmem:[#allocation79_spill] sm:$0xff] %v8020_v47 }
 0x613   : > { %v8024_v29 = vpop.xlane.xlu0 %2809 }
 0x614   : > { %8751 = vst [vmem:[#allocation80_spill] sm:$0xff] %v8024_v29  ;;  %v8038_v29 = vpop.xlane.xlu1 %2823 }
 0x615   : > { %8758 = vst [vmem:[#allocation87_spill] sm:$0xff] %v8038_v29 }
 0x617   : > { %v8028_v56 = vpop.permute.xlu0 %4036 }
 0x618   : > { %8753 = vst [vmem:[#allocation82_spill] sm:$0xff] %v8028_v56 }
 0x61b   : > { %v8032_v47 = vpop.xlane.xlu0 %2813 }
 0x61c   : > { %8755 = vst [vmem:[#allocation84_spill] sm:$0xff] %v8032_v47  ;;  %v4338_v47 = vlaneseq }
 0x61e   : > { %v8048_v30 = vand.u32 127, %v4338_v47 }
 0x61f   : > { %v8036_v12 = vpop.permute.xlu0 %4042 }
 0x620   : > { %8757 = vst [vmem:[#allocation86_spill] sm:$0xff] %v8036_v12  ;;  %v4344_v29 = vadd.s32 4294967288, %v8048_v30  ;;  %v4372_v32 = vadd.s32 4294967256, %v8048_v30 }
 0x623   : > { %v8040_v20 = vpop.xlane.xlu0 %2817 }
 0x624   : > { %8759 = vst [vmem:[#allocation88_spill] sm:$0xff] %v8040_v20  ;;  %v8056_v20 = vshrl.u32 %v4338_v47, 7 }
 0x625   : > { %2839 = vadd.xlane.f32.xlu1 %v2586_v26  ;;  %v6325_v26 = vpop.eup %6324 }
 0x626   : > { %2837 = vadd.xlane.f32.xlu0 %v2585_v36  ;;  %v4052_v36 = vpop.permute.xlu1 %4051  ;;  %v6327_v56 = vpop.eup %6326  ;;  %v8074_v34 = vsub.s32 %v8048_v30, %v8056_v20 }
 0x627   : > { %v8042_v31 = vpop.permute.xlu0 %4048 }
 0x628   : > { %8760 = vst [vmem:[#allocation89_spill] sm:$0xff] %v8042_v31  ;;  %v4351_v31 = vadd.s32 4294967280, %v8048_v30  ;;  %v4531_v5 = vrot.slane %v4052_v36, %v8074_v34 }
 0x62a   : > { %v8046_v43 = vpop.xlane.xlu1 %2827  ;;  %v8070_v47 = vsub.s32 %v4351_v31, %v8056_v20  ;;  %v5273_v31 = vmul.f32 -1.442695, %v2973_v6 }
 0x62b   : > { %v8044_v62 = vpop.xlane.xlu0 %2821  ;;  %8762 = vst [vmem:[#allocation91_spill] sm:$0xff] %v8046_v43  ;;  %v4365_v43 = vadd.s32 4294967264, %v8048_v30 }
 0x62c   : > { %8761 = vst [vmem:[#allocation90_spill] sm:$0xff] %v8044_v62 }
 0x62e   : > { %v4058_v12 = vpop.permute.xlu1 %4057 }
 0x62f   : > { %v4055_v19 = vpop.permute.xlu0 %4054 }
 0x633   : > { %v8050_v27 = vpop.xlane.xlu0 %2825 }
 0x634   : > { %8763 = vst [vmem:[#allocation92_spill] sm:$0xff] %v8050_v27  ;;  %v8065_v27 = vsub.s32 %v4344_v29, %v8056_v20 }
 0x636   : > { %4075 = vperm.xlu1 %6159, %v6325_v26   ;;  %v2972_v26 = vadd.f32 %v7498_v46, %v7762_v1  ;;  %8765 = vst [vmem:[#allocation94_spill] sm:$0xff] %v8065_v27  ;;  %v2974_v1 = vadd.f32 %v7510_v2, %v7766_v52  ;;  %v4535_v9 = vrot.slane %v4055_v19, %v8065_v27  ;;  %v8766_v27 = vld [vmem:[#allocation5_spill] sm:$0xff] }
 0x637   : > { %v4061_v37 = vpop.permute.xlu0 %4060  ;;  %v4540_v52 = vrot.slane %v4058_v12, %v8070_v47  ;;  %v8095_v12 = vsub.s32 %v4372_v32, %v8056_v20 }
 0x638   : > { %v5272_v63 = vmul.f32 -1.442695, %v2972_v26  ;;  %v8082_v26 = vsub.s32 %v4365_v43, %v8056_v20  ;;  %v5274_v23 = vmul.f32 -1.442695, %v2974_v1  ;;  %v2323_v43 = vadd.f32 %v7895_v13, %v8766_v27 }
 0x639   : > { %v4536_v6 = vsel %vm4349_vm1, %v4535_v9, %v4531_v5  ;;  %v5276_v1 = vmul.f32 -1.442695, %v2976_v16  ;;  %v2978_v5 = vadd.f32 %v7458_v50, %v7788_v25  ;;  %v2977_v16 = vadd.f32 %v7528_v39, %v7778_v28 }
 0x63a   : > { %6328 = vpow2.f32 %v5272_v63  ;;  %v4541_v63 = vsel %vm4356_vm2, %v4540_v52, %v4536_v6  ;;  %v2453_v32 = vmax.f32 %v2323_v43, 0.0  ;;  %v2982_v28 = vadd.f32 %v7470_v4, %v7812_v42 }
 0x63b   : > { %6330 = vpow2.f32 %v5274_v23  ;;  %v5278_v52 = vmul.f32 -1.442695, %v2978_v5  ;;  %v2980_v23 = vadd.f32 %v7456_v48, %v7806_v57  ;;  %v2983_v42 = vadd.f32 %v7476_v21, %v7786_v55 }
 0x63c   : > { %4078 = vperm.xlu0 %6158, %v6327_v56   ;;  %v4358_v56 = vadd.s32 4294967272, %v8048_v30  ;;  %6332 = vpow2.f32 %v5273_v31  ;;  %v2588_v25 = vmul.f32 %v7910_v3, %v2453_v32  ;;  %v2979_v31 = vadd.f32 %v7448_v38, %v7782_v59 }
 0x63d   : > { %6334 = vpow2.f32 %v5276_v1  ;;  %v5280_v6 = vmul.f32 -1.442695, %v2980_v23  ;;  %v2984_v59 = vadd.f32 %v7478_v22, %v7816_v51  ;;  %v5283_v51 = vmul.f32 -1.442695, %v2983_v42 }
 0x63e   : > { %v5279_v57 = vmul.f32 -1.442695, %v2979_v31 }
 0x63f   : > { %v5284_v32 = vmul.f32 -1.442695, %v2984_v59 }
 0x648   : > { %v8059_v62 = vpop.xlane.xlu1 %2831 }
 0x649   : > { %8764 = vst [vmem:[#allocation93_spill] sm:$0xff] %v8059_v62  ;;  %v8077_v62 = vsub.s32 %v4358_v56, %v8056_v20  ;;  %v8085_v17 = vpop.xlane.xlu0 %2829 }
 0x64b   : > { %v4545_v56 = vrot.slane %v4061_v37, %v8077_v62  ;;  %v2318_v37 = vadd.f32 %v7895_v13, %v7636_v58  ;;  %v5275_v13 = vmul.f32 -1.442695, %v2975_v41 }
 0x64c   : > { %v4064_v29 = vpop.permute.xlu1 %4063 }
 0x64d   : > { %v4550_v19 = vrot.slane %v4064_v29, %v8082_v26  ;;  %v4546_v27 = vsel %vm4363_vm3, %v4545_v56, %v4541_v63  ;;  %v2452_v9 = vmax.f32 %v2318_v37, 0.0  ;;  %v6329_v56 = vpop.eup %6328  ;;  %6336 = vpow2.f32 %v5275_v13 }
 0x64e   : > { %6338 = vpow2.f32 %v5278_v52  ;;  %v3484_v41 = vadd.f32 1.0, %v6329_v56  ;;  %v6331_v37 = vpop.eup %6330  ;;  %v2981_v63 = vadd.f32 %v7466_v0, %v7784_v54  ;;  %v2986_v54 = vadd.f32 %v7490_v14, %v7820_v15 }
 0x64f   : > { %v4551_v49 = vsel %vm4370_vm4, %v4550_v19, %v4546_v27  ;;  %v5277_v19 = vmul.f32 -1.442695, %v2977_v16  ;;  %v2587_v43 = vmul.f32 %v7910_v3, %v2452_v9  ;;  %v5282_v3 = vmul.f32 -1.442695, %v2982_v28 }
 0x650   : > { %v3486_v1 = vadd.f32 1.0, %v6331_v37  ;;  %v2985_v9 = vadd.f32 %v7486_v33, %v7790_v45  ;;  %v5286_v55 = vmul.f32 -1.442695, %v2986_v54 }
 0x651   : > { %v4067_v36 = vpop.permute.xlu0 %4066  ;;  %6340 = vpow2.f32 %v5277_v19 }
 0x652   : > { %v4555_v29 = vrot.slane %v4067_v36, %v8095_v12  ;;  %v6333_v36 = vpop.eup %6332  ;;  %6342 = vpow2.f32 %v5280_v6  ;;  %v5285_v15 = vmul.f32 -1.442695, %v2985_v9 }
 0x653   : > { %6344 = vrcp.f32 %v3484_v41  ;;  %v6335_v27 = vpop.eup %6334  ;;  %v3485_v5 = vadd.f32 1.0, %v6333_v36  ;;  %v2990_v41 = vadd.f32 %v7510_v2, %v7828_v11 }
 0x654   : > { %v8109_v58 = vsel %vm4377_vm5, %v4555_v29, %v4551_v49  ;;  %6346 = vpow2.f32 %v5279_v57  ;;  %v5281_v29 = vmul.f32 -1.442695, %v2981_v63  ;;  %v3488_v13 = vadd.f32 1.0, %v6335_v27 }
 0x655   : > { %6348 = vpow2.f32 %v5282_v3  ;;  %v2989_v63 = vadd.f32 %v7506_v61, %v7796_v7  ;;  %v5290_v59 = vmul.f32 -1.442695, %v2990_v41 }
 0x656   : > { %6350 = vrcp.f32 %v3486_v1  ;;  %v8767_v1 = vld [vmem:[#allocation13_spill] sm:$0xff] }
 0x657   : > { %v6337_v49 = vpop.eup %6336  ;;  %6352 = vpow2.f32 %v5281_v29  ;;  %v2992_v27 = vadd.f32 %v7518_v24, %v8767_v1 }
 0x658   : > { %v6339_v16 = vpop.eup %6338  ;;  %6354 = vrcp.f32 %v3485_v5  ;;  %v3487_v52 = vadd.f32 1.0, %v6337_v49  ;;  %v5289_v5 = vmul.f32 -1.442695, %v2989_v63  ;;  %v8768_v49 = vld [vmem:[#allocation6_spill] sm:$0xff]  ;;  %v8772_v63 = vld [vmem:[#allocation8_spill] sm:$0xff] }
 0x659   : > { %6356 = vpow2.f32 %v5284_v32  ;;  %v3490_v56 = vadd.f32 1.0, %v6339_v16  ;;  %v2991_v32 = vadd.f32 %v7516_v18, %v8768_v49  ;;  %v5292_v16 = vmul.f32 -1.442695, %v2992_v27 }
 0x65a   : > { %2843 = vadd.xlane.f32.xlu1 %v2588_v25  ;;  %v2988_v25 = vadd.f32 %v7498_v46, %v7824_v60  ;;  %6358 = vrcp.f32 %v3488_v13  ;;  %v2998_v27 = vadd.f32 %v7470_v4, %v7852_v35 }
 0x65b   : > { %2841 = vadd.xlane.f32.xlu0 %v2587_v43  ;;  %v6341_v23 = vpop.eup %6340  ;;  %6360 = vpow2.f32 %v5283_v51  ;;  %v2987_v43 = vadd.f32 %v7496_v44, %v7792_v53  ;;  %v8769_v51 = vld [vmem:[#allocation15_spill] sm:$0xff] }
 0x65c   : > { %v6343_v19 = vpop.eup %6342  ;;  %6362 = vrcp.f32 %v3487_v52  ;;  %v3489_v6 = vadd.f32 1.0, %v6341_v23  ;;  %v5288_v28 = vmul.f32 -1.442695, %v2988_v25  ;;  %v2994_v9 = vadd.f32 %v7458_v50, %v8769_v51 }
 0x65d   : > { %v6345_v31 = vpop.eup %6344  ;;  %6364 = vpow2.f32 %v5286_v55  ;;  %v3492_v60 = vadd.f32 1.0, %v6343_v19  ;;  %v5287_v57 = vmul.f32 -1.442695, %v2987_v43  ;;  %v5291_v25 = vmul.f32 -1.442695, %v2991_v32  ;;  %v8773_v32 = vld [vmem:[#allocation9_spill] sm:$0xff] }
 0x65e   : > { %v6347_v45 = vpop.eup %6346  ;;  %6366 = vrcp.f32 %v3490_v56  ;;  %v8770_v56 = vld [vmem:[#allocation7_spill] sm:$0xff]  ;;  %v5298_v35 = vmul.f32 -1.442695, %v2998_v27 }
 0x65f   : > { %v6349_v37 = vpop.eup %6348  ;;  %6368 = vpow2.f32 %v5285_v15  ;;  %v3491_v53 = vadd.f32 1.0, %v6347_v45  ;;  %v2993_v19 = vadd.f32 %v7528_v39, %v8770_v56  ;;  %v8771_v45 = vld [vmem:[#allocation17_spill] sm:$0xff] }
 0x660   : > { %v6351_v36 = vpop.eup %6350  ;;  %6370 = vrcp.f32 %v3489_v6  ;;  %v3494_v29 = vadd.f32 1.0, %v6349_v37  ;;  %v5294_v6 = vmul.f32 -1.442695, %v2994_v9  ;;  %v3000_v9 = vadd.f32 %v7478_v22, %v7858_v8 }
 0x661   : > { %v6353_v3 = vpop.eup %6352  ;;  %6372 = vpow2.f32 %v5288_v28  ;;  %v2996_v28 = vadd.f32 %v7456_v48, %v8771_v45 }
 0x662   : > { %v6355_v11 = vpop.eup %6354  ;;  %6374 = vrcp.f32 %v3492_v60  ;;  %v3493_v54 = vadd.f32 1.0, %v6353_v3 }
 0x663   : > { %v6357_v42 = vpop.eup %6356  ;;  %6376 = vpow2.f32 %v5287_v57  ;;  %v5293_v57 = vmul.f32 -1.442695, %v2993_v19  ;;  %v5296_v1 = vmul.f32 -1.442695, %v2996_v28  ;;  %v8774_v19 = vld [vmem:[#allocation10_spill] sm:$0xff] }
 0x664   : > { %v6359_v7 = vpop.eup %6358  ;;  %6378 = vrcp.f32 %v3491_v53  ;;  %v3496_v23 = vadd.f32 1.0, %v6357_v42  ;;  %v4379_v42 = vadd.s32 4294967248, %v8048_v30 }
 0x665   : > { %v6361_v13 = vpop.eup %6360  ;;  %6380 = vpow2.f32 %v5290_v59 }
 0x666   : > { %v6363_v52 = vpop.eup %6362  ;;  %6382 = vrcp.f32 %v3494_v29  ;;  %v3495_v43 = vadd.f32 1.0, %v6361_v13 }
 0x667   : > { %v6365_v55 = vpop.eup %6364  ;;  %6384 = vpow2.f32 %v5289_v5 }
 0x668   : > { %v6367_v15 = vpop.eup %6366  ;;  %6386 = vrcp.f32 %v3493_v54  ;;  %v3498_v60 = vadd.f32 1.0, %v6365_v55  ;;  %v8161_v55 = vsub.s32 %v4379_v42, %v8056_v20 }
 0x669   : > { %6388 = vpow2.f32 %v5292_v16 }
 0x66a   : > { %6390 = vrcp.f32 %v3496_v23 }
 0x66b   : > { %4081 = vperm.xlu1 %6159, %v6345_v31   ;;  %v6369_v31 = vpop.eup %6368  ;;  %6392 = vpow2.f32 %v5291_v25 }
 0x66c   : > { %v6371_v41 = vpop.eup %6370  ;;  %6394 = vrcp.f32 %v3495_v43  ;;  %v3497_v3 = vadd.f32 1.0, %v6369_v31  ;;  %v4386_v43 = vadd.s32 4294967240, %v8048_v30 }
 0x66d   : > { %v6373_v37 = vpop.eup %6372  ;;  %6396 = vpow2.f32 %v5294_v6 }
 0x66e   : > { %v6375_v53 = vpop.eup %6374  ;;  %6398 = vrcp.f32 %v3498_v60  ;;  %v3500_v29 = vadd.f32 1.0, %v6373_v37  ;;  %v5300_v60 = vmul.f32 -1.442695, %v3000_v9  ;;  %v3002_v37 = vadd.f32 %v7490_v14, %v7862_v10 }
 0x66f   : > { %4087 = vperm.xlu1 %6159, %v6351_v36   ;;  %v2995_v36 = vadd.f32 %v7448_v38, %v8772_v63  ;;  %v6377_v59 = vpop.eup %6376  ;;  %6400 = vpow2.f32 %v5293_v57  ;;  %v8176_v27 = vsub.s32 %v4386_v43, %v8056_v20 }
 0x670   : > { %6402 = vrcp.f32 %v3497_v3  ;;  %v3499_v16 = vadd.f32 1.0, %v6377_v59  ;;  %v8775_v59 = vld [vmem:[#allocation11_spill] sm:$0xff] }
 0x671   : > { %4084 = vperm.xlu0 %6158, %v6355_v11   ;;  %v6379_v11 = vpop.eup %6378  ;;  %v5295_v49 = vmul.f32 -1.442695, %v2995_v36  ;;  %6404 = vpow2.f32 %v5296_v1  ;;  %v3001_v1 = vadd.f32 %v7486_v33, %v8775_v59 }
 0x672   : > { %v6381_v5 = vpop.eup %6380  ;;  %6406 = vrcp.f32 %v3500_v29 }
 0x673   : > { %4093 = vperm.xlu1 %6159, %v6359_v7   ;;  %v2997_v7 = vadd.f32 %v7466_v0, %v8773_v32  ;;  %v6383_v13 = vpop.eup %6382  ;;  %v3502_v23 = vadd.f32 1.0, %v6381_v5  ;;  %6408 = vpow2.f32 %v5295_v49  ;;  %v5302_v5 = vmul.f32 -1.442695, %v3002_v37 }
 0x674   : > { %v6385_v51 = vpop.eup %6384  ;;  %6410 = vrcp.f32 %v3499_v16  ;;  %v5301_v16 = vmul.f32 -1.442695, %v3001_v1 }
 0x675   : > { %4090 = vperm.xlu0 %6158, %v6363_v52   ;;  %v6387_v52 = vpop.eup %6386  ;;  %v5297_v56 = vmul.f32 -1.442695, %v2997_v7  ;;  %v3501_v8 = vadd.f32 1.0, %v6385_v51  ;;  %6412 = vpow2.f32 %v5298_v35  ;;  %v8776_v51 = vld [vmem:[#allocation12_spill] sm:$0xff] }
 0x676   : > { %v6389_v25 = vpop.eup %6388  ;;  %6414 = vrcp.f32 %v3502_v23  ;;  %v3003_v35 = vadd.f32 %v7496_v44, %v8776_v51 }
 0x677   : > { %4099 = vperm.xlu1 %6159, %v6367_v15   ;;  %v2999_v15 = vadd.f32 %v7476_v21, %v8774_v19  ;;  %v6391_v6 = vpop.eup %6390  ;;  %v3504_v63 = vadd.f32 1.0, %v6389_v25  ;;  %6416 = vpow2.f32 %v5297_v56  ;;  %v8777_v56 = vld [vmem:[#allocation23_spill] sm:$0xff] }
 0x678   : > { %6418 = vrcp.f32 %v3501_v8  ;;  %v3006_v19 = vadd.f32 %v7510_v2, %v8777_v56  ;;  %v8778_v8 = vld [vmem:[#allocation14_spill] sm:$0xff] }
 0x679   : > { %4096 = vperm.xlu0 %6158, %v6371_v41   ;;  %v6393_v41 = vpop.eup %6392  ;;  %v5299_v3 = vmul.f32 -1.442695, %v2999_v15  ;;  %6420 = vpow2.f32 %v5300_v60 }
 0x67a   : > { %v6395_v57 = vpop.eup %6394  ;;  %v3503_v10 = vadd.f32 1.0, %v6393_v41  ;;  %6422 = vrcp.f32 %v3504_v63  ;;  %v8779_v63 = vld [vmem:[#allocation25_spill] sm:$0xff] }
 0x67b   : > { %4105 = vperm.xlu1 %6159, %v6375_v53   ;;  %v6397_v53 = vpop.eup %6396  ;;  %6424 = vpow2.f32 %v5299_v3 }
 0x67c   : > { %v3506_v7 = vadd.f32 1.0, %v6397_v53  ;;  %6426 = vrcp.f32 %v3503_v10 }
 0x67d   : > { %v8156_v54 = vpop.xlane.xlu1 %2835  ;;  %4102 = vperm.xlu0 %6158, %v6379_v11   ;;  %v6399_v11 = vpop.eup %6398  ;;  %6428 = vpow2.f32 %v5302_v5 }
 0x67e   : > { %v8166_v45 = vpop.xlane.xlu0 %2833  ;;  %v6401_v42 = vpop.eup %6400  ;;  %6430 = vrcp.f32 %v3506_v7 }
 0x67f   : > { %4111 = vperm.xlu1 %6159, %v6383_v13   ;;  %v6403_v32 = vpop.eup %6402  ;;  %6432 = vpow2.f32 %v5301_v16 }
 0x680   : > { %v6405_v13 = vpop.eup %6404 }
 0x681   : > { %v4070_v31 = vpop.permute.xlu1 %4069  ;;  %4108 = vperm.xlu0 %6158, %v6387_v52   ;;  %v6407_v52 = vpop.eup %6406  ;;  %v3508_v43 = vadd.f32 1.0, %v6405_v13 }
 0x682   : > { %v4560_v28 = vrot.slane %v4070_v31, %v8161_v55  ;;  %v6409_v23 = vpop.eup %6408 }
 0x683   : > { %4117 = vperm.xlu1 %6159, %v6391_v6   ;;  %v6411_v15 = vpop.eup %6410  ;;  %v5303_v6 = vmul.f32 -1.442695, %v3003_v35  ;;  %v3507_v60 = vadd.f32 1.0, %v6409_v23  ;;  %v8782_v35 = vld [vmem:[#allocation18_spill] sm:$0xff] }
 0x684   : > { %v4561_v36 = vsel %vm4384_vm6, %v4560_v28, %v8109_v58  ;;  %v3004_v58 = vadd.f32 %v7498_v46, %v7866_v40  ;;  %v3505_v40 = vadd.f32 1.0, %v6401_v42  ;;  %v6413_v31 = vpop.eup %6412  ;;  %v3005_v28 = vadd.f32 %v7506_v61, %v8778_v8 }
 0x685   : > { %4114 = vperm.xlu0 %6158, %v6395_v57   ;;  %v6415_v41 = vpop.eup %6414  ;;  %v5306_v57 = vmul.f32 -1.442695, %v3006_v19  ;;  %v3510_v3 = vadd.f32 1.0, %v6413_v31  ;;  %v8783_v19 = vld [vmem:[#allocation30_spill] sm:$0xff] }
 0x686   : > { %v4073_v29 = vpop.permute.xlu0 %4072  ;;  %v5304_v25 = vmul.f32 -1.442695, %v3004_v58  ;;  %6434 = vrcp.f32 %v3505_v40  ;;  %v6417_v37 = vpop.eup %6416  ;;  %v5305_v1 = vmul.f32 -1.442695, %v3005_v28  ;;  %v8784_v28 = vld [vmem:[#allocation19_spill] sm:$0xff] }
 0x687   : > { %v4565_v49 = vrot.slane %v4073_v29, %v8176_v27  ;;  %4123 = vperm.xlu1 %6159, %v6399_v11   ;;  %v6419_v53 = vpop.eup %6418  ;;  %v8780_v11 = vld [vmem:[#allocation16_spill] sm:$0xff]  ;;  %v3509_v42 = vadd.f32 1.0, %v6417_v37 }
 0x688   : > { %6436 = vpow2.f32 %v5304_v25  ;;  %v6421_v59 = vpop.eup %6420  ;;  %v3007_v10 = vadd.f32 %v7516_v18, %v8780_v11 }
 0x689   : > { %v8184_v9 = vsel %vm4391_vm7, %v4565_v49, %v4561_v36  ;;  %4120 = vperm.xlu0 %6158, %v6403_v32   ;;  %v3008_v36 = vadd.f32 %v7518_v24, %v8779_v63  ;;  %6438 = vrcp.f32 %v3508_v43  ;;  %v6423_v29 = vpop.eup %6422  ;;  %v8781_v49 = vld [vmem:[#allocation27_spill] sm:$0xff]  ;;  %v3512_v13 = vadd.f32 1.0, %v6421_v59 }
 0x68a   : > { %6440 = vpow2.f32 %v5303_v6  ;;  %v6425_v5 = vpop.eup %6424  ;;  %v3010_v32 = vadd.f32 %v7458_v50, %v8781_v49  ;;  %v5307_v51 = vmul.f32 -1.442695, %v3007_v10  ;;  %v8786_v10 = vld [vmem:[#allocation20_spill] sm:$0xff] }
 0x68b   : > { %4129 = vperm.xlu1 %6159, %v6407_v52   ;;  %6442 = vrcp.f32 %v3507_v60  ;;  %v5308_v58 = vmul.f32 -1.442695, %v3008_v36  ;;  %v6427_v7 = vpop.eup %6426  ;;  %v3009_v52 = vadd.f32 %v7528_v39, %v8782_v35  ;;  %v3511_v23 = vadd.f32 1.0, %v6425_v5  ;;  %v8785_v36 = vld [vmem:[#allocation32_spill] sm:$0xff] }
 0x68c   : > { %6444 = vpow2.f32 %v5306_v57  ;;  %v6429_v16 = vpop.eup %6428  ;;  %v5310_v56 = vmul.f32 -1.442695, %v3010_v32  ;;  %v8787_v32 = vld [vmem:[#allocation34_spill] sm:$0xff] }
 0x68d   : > { %4126 = vperm.xlu0 %6158, %v6411_v15   ;;  %6446 = vrcp.f32 %v3510_v3  ;;  %v6431_v40 = vpop.eup %6430  ;;  %v3012_v15 = vadd.f32 %v7456_v48, %v8783_v19  ;;  %v3514_v31 = vadd.f32 1.0, %v6429_v16  ;;  %v5309_v8 = vmul.f32 -1.442695, %v3009_v52  ;;  %v8788_v52 = vld [vmem:[#allocation21_spill] sm:$0xff] }
 0x68e   : > { %6448 = vpow2.f32 %v5305_v1  ;;  %v6433_v25 = vpop.eup %6432 }
 0x68f   : > { %4135 = vperm.xlu1 %6159, %v6415_v41   ;;  %6450 = vrcp.f32 %v3509_v42  ;;  %v3011_v41 = vadd.f32 %v7448_v38, %v8784_v28  ;;  %v3513_v37 = vadd.f32 1.0, %v6433_v25  ;;  %v5312_v63 = vmul.f32 -1.442695, %v3012_v15  ;;  %v8789_v15 = vld [vmem:[#allocation36_spill] sm:$0xff] }
 0x690   : > { %6452 = vpow2.f32 %v5308_v58  ;;  %v6435_v43 = vpop.eup %6434 }
 0x691   : > { %4132 = vperm.xlu0 %6158, %v6419_v53   ;;  %6454 = vrcp.f32 %v3512_v13  ;;  %v3014_v53 = vadd.f32 %v7470_v4, %v8785_v36  ;;  %v5311_v11 = vmul.f32 -1.442695, %v3011_v41  ;;  %v8790_v41 = vld [vmem:[#allocation22_spill] sm:$0xff] }
 0x692   : > { %v6437_v6 = vpop.eup %6436  ;;  %6456 = vpow2.f32 %v5307_v51 }
 0x693   : > { %4141 = vperm.xlu1 %6159, %v6423_v29   ;;  %v6439_v60 = vpop.eup %6438  ;;  %6458 = vrcp.f32 %v3511_v23  ;;  %v3516_v59 = vadd.f32 1.0, %v6437_v6  ;;  %v3013_v29 = vadd.f32 %v7466_v0, %v8786_v10  ;;  %v5314_v49 = vmul.f32 -1.442695, %v3014_v53  ;;  %v8791_v53 = vld [vmem:[#allocation38_spill] sm:$0xff] }
 0x694   : > { %v6441_v57 = vpop.eup %6440  ;;  %6460 = vpow2.f32 %v5310_v56 }
 0x695   : > { %4138 = vperm.xlu0 %6158, %v6427_v7   ;;  %v6443_v3 = vpop.eup %6442  ;;  %6462 = vrcp.f32 %v3514_v31  ;;  %v3515_v5 = vadd.f32 1.0, %v6441_v57  ;;  %v3016_v7 = vadd.f32 %v7478_v22, %v8787_v32  ;;  %v5313_v35 = vmul.f32 -1.442695, %v3013_v29  ;;  %v8792_v29 = vld [vmem:[#allocation24_spill] sm:$0xff] }
 0x696   : > { %v6445_v1 = vpop.eup %6444  ;;  %6464 = vpow2.f32 %v5309_v8 }
 0x697   : > { %4147 = vperm.xlu1 %6159, %v6431_v40   ;;  %v6447_v42 = vpop.eup %6446  ;;  %6466 = vrcp.f32 %v3513_v37  ;;  %v3518_v16 = vadd.f32 1.0, %v6445_v1  ;;  %v3015_v40 = vadd.f32 %v7476_v21, %v8788_v52  ;;  %v5316_v19 = vmul.f32 -1.442695, %v3016_v7  ;;  %v8793_v7 = vld [vmem:[#allocation42_spill] sm:$0xff] }
 0x698   : > { %v6449_v58 = vpop.eup %6448  ;;  %6468 = vpow2.f32 %v5312_v63 }
 0x699   : > { %4144 = vperm.xlu0 %6158, %v6435_v43   ;;  %v6451_v13 = vpop.eup %6450  ;;  %6470 = vrcp.f32 %v3516_v59  ;;  %v3517_v25 = vadd.f32 1.0, %v6449_v58  ;;  %v3018_v43 = vadd.f32 %v7490_v14, %v8789_v15  ;;  %v5315_v28 = vmul.f32 -1.442695, %v3015_v40  ;;  %v8794_v40 = vld [vmem:[#allocation26_spill] sm:$0xff] }
 0x69a   : > { %v6453_v51 = vpop.eup %6452  ;;  %6472 = vpow2.f32 %v5311_v11 }
 0x69b   : > { %4153 = vperm.xlu1 %6159, %v6439_v60   ;;  %v6455_v23 = vpop.eup %6454  ;;  %6474 = vrcp.f32 %v3515_v5  ;;  %v3520_v6 = vadd.f32 1.0, %v6453_v51  ;;  %v3017_v60 = vadd.f32 %v7486_v33, %v8790_v41  ;;  %v5318_v36 = vmul.f32 -1.442695, %v3018_v43  ;;  %v8795_v43 = vld [vmem:[#allocation46_spill] sm:$0xff] }
 0x69c   : > { %v6457_v56 = vpop.eup %6456  ;;  %6476 = vpow2.f32 %v5314_v49 }
 0x69d   : > { %4150 = vperm.xlu0 %6158, %v6443_v3   ;;  %v6459_v31 = vpop.eup %6458  ;;  %6478 = vrcp.f32 %v3518_v16  ;;  %v3519_v57 = vadd.f32 1.0, %v6457_v56  ;;  %v3020_v3 = vadd.f32 %v7498_v46, %v8791_v53  ;;  %v5317_v10 = vmul.f32 -1.442695, %v3017_v60  ;;  %v8796_v60 = vld [vmem:[#allocation29_spill] sm:$0xff] }
 0x69e   : > { %v6461_v8 = vpop.eup %6460  ;;  %6480 = vpow2.f32 %v5313_v35 }
 0x69f   : > { %4159 = vperm.xlu1 %6159, %v6447_v42   ;;  %v6463_v37 = vpop.eup %6462  ;;  %6482 = vrcp.f32 %v3517_v25  ;;  %v3522_v1 = vadd.f32 1.0, %v6461_v8  ;;  %v3019_v42 = vadd.f32 %v7496_v44, %v8792_v29  ;;  %v5320_v32 = vmul.f32 -1.442695, %v3020_v3 }
 0x6a0   : > { %v6465_v63 = vpop.eup %6464  ;;  %6484 = vpow2.f32 %v5316_v19 }
 0x6a1   : > { %4156 = vperm.xlu0 %6158, %v6451_v13   ;;  %v6467_v59 = vpop.eup %6466  ;;  %6486 = vrcp.f32 %v3520_v6  ;;  %v3521_v58 = vadd.f32 1.0, %v6465_v63  ;;  %v3022_v13 = vadd.f32 %v7510_v2, %v8793_v7  ;;  %v5319_v52 = vmul.f32 -1.442695, %v3019_v42 }
 0x6a2   : > { %v6469_v11 = vpop.eup %6468  ;;  %6488 = vpow2.f32 %v5315_v28 }
 0x6a3   : > { %4165 = vperm.xlu1 %6159, %v6455_v23   ;;  %v6471_v5 = vpop.eup %6470  ;;  %6490 = vrcp.f32 %v3519_v57  ;;  %v3524_v51 = vadd.f32 1.0, %v6469_v11  ;;  %v3021_v23 = vadd.f32 %v7506_v61, %v8794_v40  ;;  %v5322_v15 = vmul.f32 -1.442695, %v3022_v13  ;;  %v8799_v40 = vld [vmem:[#allocation53_spill] sm:$0xff] }
 0x6a4   : > { %v6473_v49 = vpop.eup %6472  ;;  %6492 = vpow2.f32 %v5318_v36  ;;  %v4393_v57 = vadd.s32 4294967232, %v8048_v30 }
 0x6a5   : > { %4162 = vperm.xlu0 %6158, %v6459_v31   ;;  %v6475_v16 = vpop.eup %6474  ;;  %6494 = vrcp.f32 %v3522_v1  ;;  %v3523_v56 = vadd.f32 1.0, %v6473_v49  ;;  %v3024_v31 = vadd.f32 %v7518_v24, %v8795_v43  ;;  %v5321_v41 = vmul.f32 -1.442695, %v3021_v23  ;;  %v8797_v1 = vld [vmem:[#allocation49_spill] sm:$0xff] }
 0x6a6   : > { %v6477_v35 = vpop.eup %6476  ;;  %6496 = vpow2.f32 %v5317_v10  ;;  %v3026_v11 = vadd.f32 %v7458_v50, %v8797_v1  ;;  %v8798_v49 = vld [vmem:[#allocation33_spill] sm:$0xff]  ;;  %v3028_v23 = vadd.f32 %v7456_v48, %v8799_v40 }
 0x6a7   : > { %4171 = vperm.xlu1 %6159, %v6463_v37   ;;  %v6479_v25 = vpop.eup %6478  ;;  %6498 = vrcp.f32 %v3521_v58  ;;  %v3526_v8 = vadd.f32 1.0, %v6477_v35  ;;  %v3023_v37 = vadd.f32 %v7516_v18, %v8796_v60  ;;  %v8232_v58 = vsub.s32 %v4393_v57, %v8056_v20 }
 0x6a8   : > { %v6481_v19 = vpop.eup %6480  ;;  %6500 = vpow2.f32 %v5320_v32  ;;  %v3025_v32 = vadd.f32 %v7528_v39, %v8798_v49 }
 0x6a9   : > { %4168 = vperm.xlu0 %6158, %v6467_v59   ;;  %v6483_v6 = vpop.eup %6482  ;;  %6502 = vrcp.f32 %v3524_v51  ;;  %v3525_v36 = vadd.f32 1.0, %v6481_v19  ;;  %v5324_v59 = vmul.f32 -1.442695, %v3024_v31 }
 0x6aa   : > { %v6485_v28 = vpop.eup %6484  ;;  %6504 = vpow2.f32 %v5319_v52  ;;  %v5326_v52 = vmul.f32 -1.442695, %v3026_v11  ;;  %v5325_v31 = vmul.f32 -1.442695, %v3025_v32 }
 0x6ab   : > { %4177 = vperm.xlu1 %6159, %v6471_v5   ;;  %v6487_v63 = vpop.eup %6486  ;;  %6506 = vrcp.f32 %v3523_v56  ;;  %v3528_v29 = vadd.f32 1.0, %v6485_v28  ;;  %v5323_v5 = vmul.f32 -1.442695, %v3023_v37 }
 0x6ac   : > { %v6489_v3 = vpop.eup %6488  ;;  %6508 = vpow2.f32 %v5322_v15 }
 0x6ad   : > { %4174 = vperm.xlu0 %6158, %v6475_v16   ;;  %v6491_v10 = vpop.eup %6490  ;;  %6510 = vrcp.f32 %v3526_v8  ;;  %v3527_v13 = vadd.f32 1.0, %v6489_v3  ;;  %v4400_v16 = vadd.s32 4294967224, %v8048_v30 }
 0x6ae   : > { %v6493_v42 = vpop.eup %6492  ;;  %6512 = vpow2.f32 %v5321_v41 }
 0x6af   : > { %4183 = vperm.xlu1 %6159, %v6479_v25   ;;  %v6495_v7 = vpop.eup %6494  ;;  %6514 = vrcp.f32 %v3525_v36  ;;  %v3530_v15 = vadd.f32 1.0, %v6493_v42  ;;  %v8247_v37 = vsub.s32 %v4400_v16, %v8056_v20  ;;  %v8801_v36 = vld [vmem:[#allocation56_spill] sm:$0xff]  ;;  %v8802_v42 = vld [vmem:[#allocation41_spill] sm:$0xff] }
 0x6b0   : > { %v6497_v35 = vpop.eup %6496  ;;  %6516 = vpow2.f32 %v5324_v59  ;;  %v3030_v3 = vadd.f32 %v7470_v4, %v8801_v36 }
 0x6b1   : > { %4180 = vperm.xlu0 %6158, %v6483_v6   ;;  %v6499_v19 = vpop.eup %6498  ;;  %6518 = vrcp.f32 %v3528_v29  ;;  %v8800_v6 = vld [vmem:[#allocation37_spill] sm:$0xff]  ;;  %v3529_v60 = vadd.f32 1.0, %v6497_v35 }
 0x6b2   : > { %v8227_v53 = vpop.xlane.xlu1 %2839  ;;  %v6501_v43 = vpop.eup %6500  ;;  %6520 = vpow2.f32 %v5323_v5  ;;  %v3027_v8 = vadd.f32 %v7448_v38, %v8800_v6  ;;  %v3029_v5 = vadd.f32 %v7466_v0, %v8802_v42  ;;  %v5330_v16 = vmul.f32 -1.442695, %v3030_v3  ;;  %v8806_v3 = vld [vmem:[#allocation50_spill] sm:$0xff] }
 0x6b3   : > { %4189 = vperm.xlu1 %6159, %v6487_v63   ;;  %v8239_v25 = vpop.xlane.xlu0 %2837  ;;  %v6503_v41 = vpop.eup %6502  ;;  %6522 = vrcp.f32 %v3527_v13  ;;  %v5328_v63 = vmul.f32 -1.442695, %v3028_v23  ;;  %v3532_v11 = vadd.f32 1.0, %v6501_v43 }
 0x6b4   : > { %v6505_v57 = vpop.eup %6504  ;;  %6524 = vpow2.f32 %v5326_v52  ;;  %v5327_v29 = vmul.f32 -1.442695, %v3027_v8 }
 0x6b5   : > { %4186 = vperm.xlu0 %6158, %v6491_v10   ;;  %v6507_v1 = vpop.eup %6506  ;;  %6526 = vrcp.f32 %v3530_v15  ;;  %v3531_v32 = vadd.f32 1.0, %v6505_v57 }
 0x6b6   : > { %v4076_v51 = vpop.permute.xlu1 %4075  ;;  %v6509_v10 = vpop.eup %6508  ;;  %6528 = vpow2.f32 %v5325_v31 }
 0x6b7   : > { %v4570_v56 = vrot.slane %v4076_v51, %v8232_v58  ;;  %4195 = vperm.xlu1 %6159, %v6495_v7   ;;  %v6511_v49 = vpop.eup %6510  ;;  %6530 = vrcp.f32 %v3529_v60  ;;  %v8803_v51 = vld [vmem:[#allocation60_spill] sm:$0xff]  ;;  %v3534_v40 = vadd.f32 1.0, %v6509_v10 }
 0x6b8   : > { %v6513_v13 = vpop.eup %6512  ;;  %6532 = vpow2.f32 %v5328_v63  ;;  %v3032_v35 = vadd.f32 %v7478_v22, %v8803_v51 }
 0x6b9   : > { %v4571_v28 = vsel %vm4398_vm8, %v4570_v56, %v8184_v9  ;;  %4192 = vperm.xlu0 %6158, %v6499_v19   ;;  %v6515_v52 = vpop.eup %6514  ;;  %6534 = vrcp.f32 %v3532_v11  ;;  %v5329_v56 = vmul.f32 -1.442695, %v3029_v5  ;;  %v8804_v19 = vld [vmem:[#allocation45_spill] sm:$0xff]  ;;  %v3533_v31 = vadd.f32 1.0, %v6513_v13 }
 0x6ba   : > { %v6517_v23 = vpop.eup %6516  ;;  %6536 = vpow2.f32 %v5327_v29  ;;  %v3031_v15 = vadd.f32 %v7476_v21, %v8804_v19  ;;  %v5332_v8 = vmul.f32 -1.442695, %v3032_v35  ;;  %v8807_v29 = vld [vmem:[#allocation71_spill] sm:$0xff] }
 0x6bb   : > { %4201 = vperm.xlu1 %6159, %v6503_v41   ;;  %v4079_v59 = vpop.permute.xlu0 %4078  ;;  %v6519_v43 = vpop.eup %6518  ;;  %6538 = vrcp.f32 %v3531_v32  ;;  %v3536_v57 = vadd.f32 1.0, %v6517_v23  ;;  %v3036_v42 = vadd.f32 %v7498_v46, %v8807_v29 }
 0x6bc   : > { %v4575_v9 = vrot.slane %v4079_v59, %v8247_v37  ;;  %v6521_v6 = vpop.eup %6520  ;;  %6540 = vpow2.f32 %v5330_v16  ;;  %v5331_v36 = vmul.f32 -1.442695, %v3031_v15  ;;  %v3033_v59 = vadd.f32 %v7486_v33, %v8806_v3  ;;  %v8808_v16 = vld [vmem:[#allocation54_spill] sm:$0xff] }
 0x6bd   : > { %4198 = vperm.xlu0 %6158, %v6507_v1   ;;  %v6523_v60 = vpop.eup %6522  ;;  %6542 = vrcp.f32 %v3534_v40  ;;  %v3535_v11 = vadd.f32 1.0, %v6521_v6  ;;  %v3035_v51 = vadd.f32 %v7496_v44, %v8808_v16  ;;  %v5336_v23 = vmul.f32 -1.442695, %v3036_v42 }
 0x6be   : > { %v8255_v7 = vsel %vm4405_vm9, %v4575_v9, %v4571_v28  ;;  %v8805_v28 = vld [vmem:[#allocation63_spill] sm:$0xff]  ;;  %v6525_v63 = vpop.eup %6524  ;;  %6544 = vpow2.f32 %v5329_v56  ;;  %v5333_v13 = vmul.f32 -1.442695, %v3033_v59  ;;  %v8809_v56 = vld [vmem:[#allocation78_spill] sm:$0xff] }
 0x6bf   : > { %4207 = vperm.xlu1 %6159, %v6511_v49   ;;  %v3034_v41 = vadd.f32 %v7490_v14, %v8805_v28  ;;  %v6527_v1 = vpop.eup %6526  ;;  %6546 = vrcp.f32 %v3533_v31  ;;  %v3538_v49 = vadd.f32 1.0, %v6525_v63  ;;  %v3043_v19 = vadd.f32 %v7448_v38, %v8809_v56 }
 0x6c0   : > { %v6529_v9 = vpop.eup %6528  ;;  %6548 = vpow2.f32 %v5332_v8  ;;  %v5335_v6 = vmul.f32 -1.442695, %v3035_v51  ;;  %v8810_v8 = vld [vmem:[#allocation61_spill] sm:$0xff] }
 0x6c1   : > { %4204 = vperm.xlu0 %6158, %v6515_v52   ;;  %v5334_v10 = vmul.f32 -1.442695, %v3034_v41  ;;  %v6531_v5 = vpop.eup %6530  ;;  %6550 = vrcp.f32 %v3536_v57  ;;  %v3537_v52 = vadd.f32 1.0, %v6529_v9  ;;  %v3037_v28 = vadd.f32 %v7506_v61, %v8810_v8  ;;  %v8812_v9 = vld [vmem:[#allocation68_spill] sm:$0xff] }
 0x6c2   : > { %v6533_v32 = vpop.eup %6532  ;;  %6552 = vpow2.f32 %v5331_v36  ;;  %v5343_v63 = vmul.f32 -1.442695, %v3043_v19  ;;  %v8811_v36 = vld [vmem:[#allocation83_spill] sm:$0xff] }
 0x6c3   : > { %4213 = vperm.xlu1 %6159, %v6519_v43   ;;  %v6535_v35 = vpop.eup %6534  ;;  %6554 = vrcp.f32 %v3535_v11  ;;  %v3540_v43 = vadd.f32 1.0, %v6533_v32  ;;  %v3045_v38 = vadd.f32 %v7466_v0, %v8811_v36  ;;  %v5337_v11 = vmul.f32 -1.442695, %v3037_v28  ;;  %v8813_v32 = vld [vmem:[#allocation87_spill] sm:$0xff] }
 0x6c4   : > { %v6537_v40 = vpop.eup %6536  ;;  %6556 = vpow2.f32 %v5334_v10  ;;  %v3039_v10 = vadd.f32 %v7516_v18, %v8812_v9  ;;  %v3047_v0 = vadd.f32 %v7476_v21, %v8813_v32 }
 0x6c5   : > { %4210 = vperm.xlu0 %6158, %v6523_v60   ;;  %v6539_v15 = vpop.eup %6538  ;;  %6558 = vrcp.f32 %v3538_v49  ;;  %v3539_v60 = vadd.f32 1.0, %v6537_v40  ;;  %v5345_v49 = vmul.f32 -1.442695, %v3045_v38 }
 0x6c6   : > { %v6541_v31 = vpop.eup %6540  ;;  %6560 = vpow2.f32 %v5333_v13 }
 0x6c7   : > { %4219 = vperm.xlu1 %6159, %v6527_v1   ;;  %v6543_v41 = vpop.eup %6542  ;;  %6562 = vrcp.f32 %v3537_v52  ;;  %v3542_v59 = vadd.f32 1.0, %v6541_v31  ;;  %v8814_v52 = vld [vmem:[#allocation77_spill] sm:$0xff] }
 0x6c8   : > { %v6545_v57 = vpop.eup %6544  ;;  %6564 = vpow2.f32 %v5336_v23  ;;  %v3038_v40 = vadd.f32 %v7510_v2, %v8814_v52 }
 0x6c9   : > { %4216 = vperm.xlu0 %6158, %v6531_v5   ;;  %v6547_v3 = vpop.eup %6546  ;;  %6566 = vrcp.f32 %v3540_v43  ;;  %v3541_v42 = vadd.f32 1.0, %v6545_v57  ;;  %v8815_v43 = vld [vmem:[#allocation91_spill] sm:$0xff] }
 0x6ca   : > { %v6549_v1 = vpop.eup %6548  ;;  %6568 = vpow2.f32 %v5335_v6  ;;  %v3049_v21 = vadd.f32 %v7486_v33, %v8815_v43  ;;  %v5338_v28 = vmul.f32 -1.442695, %v3038_v40  ;;  %v4421_v43 = vadd.s32 4294967200, %v8048_v30 }
 0x6cb   : > { %4225 = vperm.xlu1 %6159, %v6535_v35   ;;  %v6551_v29 = vpop.eup %6550  ;;  %6570 = vrcp.f32 %v3539_v60  ;;  %v3544_v16 = vadd.f32 1.0, %v6549_v1  ;;  %v5339_v35 = vmul.f32 -1.442695, %v3039_v10  ;;  %v8818_v10 = vld [vmem:[#allocation84_spill] sm:$0xff] }
 0x6cc   : > { %v6553_v5 = vpop.eup %6552  ;;  %6572 = vpow2.f32 %v5343_v63  ;;  %v5349_v38 = vmul.f32 -1.442695, %v3049_v21 }
 0x6cd   : > { %4222 = vperm.xlu0 %6158, %v6539_v15   ;;  %v6555_v13 = vpop.eup %6554  ;;  %6574 = vrcp.f32 %v3542_v59  ;;  %v3543_v56 = vadd.f32 1.0, %v6553_v5  ;;  %v5347_v15 = vmul.f32 -1.442695, %v3047_v0 }
 0x6ce   : > { %v6557_v51 = vpop.eup %6556  ;;  %6576 = vpow2.f32 %v5337_v11 }
 0x6cf   : > { %4231 = vperm.xlu1 %6159, %v6543_v41   ;;  %v6559_v23 = vpop.eup %6558  ;;  %6578 = vrcp.f32 %v3541_v42  ;;  %v3546_v6 = vadd.f32 1.0, %v6557_v51  ;;  %v8816_v41 = vld [vmem:[#allocation80_spill] sm:$0xff] }
 0x6d0   : > { %v6561_v19 = vpop.eup %6560  ;;  %6580 = vpow2.f32 %v5345_v49  ;;  %v3040_v60 = vadd.f32 %v7518_v24, %v8816_v41 }
 0x6d1   : > { %4228 = vperm.xlu0 %6158, %v6547_v3   ;;  %v6563_v31 = vpop.eup %6562  ;;  %6582 = vrcp.f32 %v3544_v16  ;;  %v3545_v63 = vadd.f32 1.0, %v6561_v19  ;;  %v8817_v3 = vld [vmem:[#allocation93_spill] sm:$0xff] }
 0x6d2   : > { %v6565_v8 = vpop.eup %6564  ;;  %6584 = vpow2.f32 %v5339_v35  ;;  %v3051_v33 = vadd.f32 %v7496_v44, %v8817_v3  ;;  %v5340_v9 = vmul.f32 -1.442695, %v3040_v60  ;;  %v3053_v44 = vadd.f32 %v7506_v61, %v8156_v54  ;;  %v8819_v35 = vld [vmem:[#allocation88_spill] sm:$0xff] }
 0x6d3   : > { %4237 = vperm.xlu1 %6159, %v6551_v29   ;;  %v6567_v57 = vpop.eup %6566  ;;  %6586 = vrcp.f32 %v3543_v56  ;;  %v3548_v1 = vadd.f32 1.0, %v6565_v8  ;;  %v3042_v29 = vadd.f32 %v7458_v50, %v8818_v10  ;;  %v3044_v50 = vadd.f32 %v7456_v48, %v8819_v35  ;;  %v8820_v8 = vld [vmem:[#allocation90_spill] sm:$0xff]  ;;  %v8821_v10 = vld [vmem:[#allocation92_spill] sm:$0xff] }
 0x6d4   : > { %v6569_v36 = vpop.eup %6568  ;;  %6588 = vpow2.f32 %v5347_v15  ;;  %v5351_v32 = vmul.f32 -1.442695, %v3051_v33  ;;  %v4407_v56 = vadd.s32 4294967216, %v8048_v30  ;;  %v5353_v19 = vmul.f32 -1.442695, %v3053_v44 }
 0x6d5   : > { %4234 = vperm.xlu0 %6158, %v6555_v13   ;;  %v6571_v59 = vpop.eup %6570  ;;  %6590 = vrcp.f32 %v3546_v6  ;;  %v3547_v5 = vadd.f32 1.0, %v6569_v36  ;;  %v5342_v51 = vmul.f32 -1.442695, %v3042_v29  ;;  %v3052_v61 = vadd.f32 %v7498_v46, %v8166_v45 }
 0x6d6   : > { %v6573_v11 = vpop.eup %6572  ;;  %6592 = vpow2.f32 %v5338_v28  ;;  %v4414_v15 = vadd.s32 4294967208, %v8048_v30  ;;  %v5344_v6 = vmul.f32 -1.442695, %v3044_v50  ;;  %v3046_v28 = vadd.f32 %v7470_v4, %v8820_v8 }
 0x6d7   : > { %4243 = vperm.xlu1 %6159, %v6559_v23   ;;  %v6575_v42 = vpop.eup %6574  ;;  %6594 = vrcp.f32 %v3545_v63  ;;  %v3555_v13 = vadd.f32 1.0, %v6573_v11  ;;  %v4435_v46 = vadd.s32 4294967184, %v8048_v30  ;;  %v4442_v45 = vadd.s32 4294967176, %v8048_v30 }
 0x6d8   : > { %v6577_v49 = vpop.eup %6576  ;;  %6596 = vpow2.f32 %v5349_v38  ;;  %v8304_v63 = vsub.s32 %v4407_v56, %v8056_v20  ;;  %v5352_v36 = vmul.f32 -1.442695, %v3052_v61  ;;  %v3055_v38 = vadd.f32 %v7516_v18, %v8227_v53 }
 0x6d9   : > { %4240 = vperm.xlu0 %6158, %v6563_v31   ;;  %v6579_v0 = vpop.eup %6578  ;;  %6598 = vrcp.f32 %v3548_v1  ;;  %v3549_v40 = vadd.f32 1.0, %v6577_v49  ;;  %v4428_v31 = vadd.s32 4294967192, %v8048_v30  ;;  %v8311_v33 = vsub.s32 %v4414_v15, %v8056_v20  ;;  %v8825_v15 = vld [vmem:[#allocation64_spill] sm:$0xff] }
 0x6da   : > { %v6581_v16 = vpop.eup %6580  ;;  %6600 = vpow2.f32 %v5340_v9  ;;  %v8314_v30 = vsub.s32 %v4421_v43, %v8056_v20  ;;  %v5346_v9 = vmul.f32 -1.442695, %v3046_v28  ;;  %v3048_v18 = vadd.f32 %v7478_v22, %v8821_v10 }
 0x6db   : > { %4249 = vperm.xlu1 %6159, %v6567_v57   ;;  %v6583_v52 = vpop.eup %6582  ;;  %6602 = vrcp.f32 %v3547_v5  ;;  %v3557_v48 = vadd.f32 1.0, %v6581_v16  ;;  %v8317_v11 = vsub.s32 %v4428_v31, %v8056_v20  ;;  %v8322_v29 = vsub.s32 %v4435_v46, %v8056_v20 }
 0x6dc   : > { %v6585_v23 = vpop.eup %6584  ;;  %6604 = vpow2.f32 %v5351_v32  ;;  %v5355_v32 = vmul.f32 -1.442695, %v3055_v38  ;;  %v3054_v44 = vadd.f32 %v7510_v2, %v8239_v25  ;;  %v5348_v56 = vmul.f32 -1.442695, %v3048_v18 }
 0x6dd   : > { %4246 = vperm.xlu0 %6158, %v6571_v59   ;;  %v6587_v54 = vpop.eup %6586  ;;  %6606 = vrcp.f32 %v3555_v13  ;;  %v3551_v60 = vadd.f32 1.0, %v6585_v23  ;;  %v8822_v13 = vld [vmem:[#allocation65_spill] sm:$0xff]  ;;  %v3050_v2 = vadd.f32 %v7490_v14, %v8085_v17  ;;  %v4355_v43 = vrot.slane %v8825_v15, %v8070_v47 }
 0x6de   : > { %v6589_v21 = vpop.eup %6588  ;;  %6608 = vpow2.f32 %v5342_v51  ;;  %v4343_v16 = vrot.slane %v8822_v13, %v8074_v34 }
 0x6df   : > { %4255 = vperm.xlu1 %6159, %v6575_v42   ;;  %v6591_v41 = vpop.eup %6590  ;;  %6610 = vrcp.f32 %v3549_v40  ;;  %v3559_v59 = vadd.f32 1.0, %v6589_v21  ;;  %v8325_v42 = vsub.s32 %v4442_v45, %v8056_v20  ;;  %v8824_v40 = vld [vmem:[#allocation57_spill] sm:$0xff]  ;;  %v5350_v46 = vmul.f32 -1.442695, %v3050_v2 }
 0x6e0   : > { %v6593_v57 = vpop.eup %6592  ;;  %6612 = vpow2.f32 %v5353_v19 }
 0x6e1   : > { %4252 = vperm.xlu0 %6158, %v6579_v0   ;;  %v6595_v4 = vpop.eup %6594  ;;  %6614 = vrcp.f32 %v3557_v48  ;;  %v3550_v5 = vadd.f32 1.0, %v6593_v57  ;;  %v5354_v48 = vmul.f32 -1.442695, %v3054_v44 }
 0x6e2   : > { %v6597_v1 = vpop.eup %6596  ;;  %6616 = vpow2.f32 %v5344_v6 }
 0x6e3   : > { %4261 = vperm.xlu1 %6159, %v6583_v52   ;;  %v6599_v53 = vpop.eup %6598  ;;  %6618 = vrcp.f32 %v3551_v60  ;;  %v3561_v51 = vadd.f32 1.0, %v6597_v1  ;;  %v8823_v52 = vld [vmem:[#allocation94_spill] sm:$0xff] }
 0x6e4   : > { %v6601_v49 = vpop.eup %6600  ;;  %6620 = vpow2.f32 %v5352_v36  ;;  %v4348_v23 = vrot.slane %v8824_v40, %v8823_v52 }
 0x6e5   : > { %4258 = vperm.xlu0 %6158, %v6587_v54   ;;  %v6603_v22 = vpop.eup %6602  ;;  %6622 = vrcp.f32 %v3559_v59  ;;  %v3552_v19 = vadd.f32 1.0, %v6601_v49 }
 0x6e6   : > { %v6605_v50 = vpop.eup %6604  ;;  %6624 = vpow2.f32 %v5346_v9  ;;  %v4350_v14 = vsel %vm4349_vm1, %v4348_v23, %v4343_v16 }
 0x6e7   : > { %v8308_v3 = vpop.xlane.xlu1 %2843  ;;  %4267 = vperm.xlu1 %6159, %v6591_v41   ;;  %v6607_v25 = vpop.eup %6606  ;;  %6626 = vrcp.f32 %v3550_v5  ;;  %v3563_v17 = vadd.f32 1.0, %v6605_v50  ;;  %v8826_v41 = vld [vmem:[#allocation74_spill] sm:$0xff]  ;;  %v4357_v59 = vsel %vm4356_vm2, %v4355_v43, %v4350_v14 }
 0x6e8   : > { %v2842_v35 = vpop.xlane.xlu0 %2841  ;;  %v6609_v54 = vpop.eup %6608  ;;  %6628 = vpow2.f32 %v5355_v32  ;;  %v3057_v13 = vadd.f32 %v7528_v39, %v8308_v3 }
 0x6e9   : > { %4264 = vperm.xlu0 %6158, %v6595_v4   ;;  %v3056_v21 = vadd.f32 %v7518_v24, %v2842_v35  ;;  %v6611_v6 = vpop.eup %6610  ;;  %6630 = vrcp.f32 %v3561_v51  ;;  %v8827_v24 = vld [vmem:[#allocation69_spill] sm:$0xff]  ;;  %v3554_v36 = vadd.f32 1.0, %v6609_v54  ;;  %v8829_v54 = vld [vmem:[#allocation75_spill] sm:$0xff] }
 0x6ea   : > { %v6613_v28 = vpop.eup %6612  ;;  %6632 = vpow2.f32 %v5348_v56  ;;  %v4362_v57 = vrot.slane %v8827_v24, %v8077_v62  ;;  %v4376_v15 = vrot.slane %v8829_v54, %v8095_v12  ;;  %v5357_v43 = vmul.f32 -1.442695, %v3057_v13 }
 0x6eb   : > { %v4082_v0 = vpop.permute.xlu1 %4081  ;;  %4273 = vperm.xlu1 %6159, %v6599_v53   ;;  %v6615_v60 = vpop.eup %6614  ;;  %6634 = vrcp.f32 %v3552_v19  ;;  %v5356_v1 = vmul.f32 -1.442695, %v3056_v21  ;;  %v8828_v53 = vld [vmem:[#allocation70_spill] sm:$0xff]  ;;  %v3565_v49 = vadd.f32 1.0, %v6613_v28 }
 0x6ec   : > { %v4580_v20 = vrot.slane %v4082_v0, %v8304_v63  ;;  %v6617_v4 = vpop.eup %6616  ;;  %6636 = vpow2.f32 %v5354_v48  ;;  %v4369_v5 = vrot.slane %v8828_v53, %v8082_v26  ;;  %v4364_v40 = vsel %vm4363_vm3, %v4362_v57, %v4357_v59 }
 0x6ed   : > { %4270 = vperm.xlu0 %6158, %v6603_v22   ;;  %v6619_v18 = vpop.eup %6618  ;;  %6638 = vrcp.f32 %v3563_v17  ;;  %v3556_v35 = vadd.f32 1.0, %v6617_v4 }
 0x6ee   : > { %v4581_v61 = vsel %vm4412_vm10, %v4580_v20, %v8255_v7  ;;  %v3041_v7 = vadd.f32 %v7528_v39, %v8826_v41  ;;  %v6621_v0 = vpop.eup %6620  ;;  %6640 = vpow2.f32 %v5350_v46  ;;  %v4371_v39 = vsel %vm4370_vm4, %v4369_v5, %v4364_v40  ;;  %v8830_v41 = vld [vmem:[#allocation28_spill] sm:$0xff] }
 0x6ef   : > { %v4088_v31 = vpop.permute.xlu1 %4087  ;;  %4294 = vperm.xlu1 %6159, %v6607_v25   ;;  %v6623_v51 = vpop.eup %6622  ;;  %6642 = vrcp.f32 %v3554_v36  ;;  %v3564_v3 = vadd.f32 1.0, %v6621_v0  ;;  %v4378_v14 = vsel %vm4377_vm5, %v4376_v15, %v4371_v39  ;;  %v8834_v15 = vld [vmem:[#allocation44_spill] sm:$0xff] }
 0x6f0   : > { %v4085_v8 = vpop.permute.xlu0 %4084  ;;  %v4590_v38 = vrot.slane %v4088_v31, %v8314_v30  ;;  %v5341_v22 = vmul.f32 -1.442695, %v3041_v7  ;;  %v6625_v50 = vpop.eup %6624  ;;  %6644 = vpow2.f32 %v5356_v1  ;;  %v4383_v7 = vrot.slane %v8830_v41, %v8161_v55 }
 0x6f1   : > { %v4585_v45 = vrot.slane %v4085_v8, %v8311_v33  ;;  %4276 = vperm.xlu0 %6158, %v6611_v6   ;;  %v6627_v2 = vpop.eup %6626  ;;  %6646 = vrcp.f32 %v3565_v49  ;;  %v3558_v31 = vadd.f32 1.0, %v6625_v50 }
 0x6f2   : > { %6648 = vpow2.f32 %v5341_v22 }
 0x6f3   : > { %v4586_v9 = vsel %vm8673_vm11, %v4585_v45, %v4581_v61  ;;  %v4094_v10 = vpop.permute.xlu1 %4093  ;;  %4300 = vperm.xlu1 %6159, %v6615_v60   ;;  %v6629_v61 = vpop.eup %6628  ;;  %6650 = vrcp.f32 %v3556_v35 }
 0x6f4   : > { %v4591_v32 = vsel %vm8672_vm12, %v4590_v38, %v4586_v9  ;;  %v4091_v44 = vpop.permute.xlu0 %4090  ;;  %v4600_v20 = vrot.slane %v4094_v10, %v8322_v29  ;;  %v6631_v21 = vpop.eup %6630  ;;  %6652 = vrcp.f32 %v3564_v3  ;;  %v3567_v46 = vadd.f32 1.0, %v6629_v61  ;;  %v8831_v9 = vld [vmem:[#allocation40_spill] sm:$0xff] }
 0x6f5   : > { %v4595_v16 = vrot.slane %v4091_v44, %v8317_v11  ;;  %4282 = vperm.xlu0 %6158, %v6619_v18   ;;  %v6633_v6 = vpop.eup %6632  ;;  %6654 = vpow2.f32 %v5357_v43  ;;  %v4385_v38 = vsel %vm4384_vm6, %v4383_v7, %v4378_v14  ;;  %v4390_v10 = vrot.slane %v8831_v9, %v8176_v27  ;;  %v8836_v14 = vld [vmem:[#allocation48_spill] sm:$0xff] }
 0x6f6   : > { %v6635_v28 = vpop.eup %6634  ;;  %6656 = vrcp.f32 %v3558_v31  ;;  %v3560_v4 = vadd.f32 1.0, %v6633_v6  ;;  %v4404_v43 = vrot.slane %v8834_v15, %v8247_v37 }
 0x6f7   : > { %v4596_v23 = vsel %vm4433_vm13, %v4595_v16, %v4591_v32  ;;  %v4100_v56 = vpop.permute.xlu1 %4099  ;;  %4306 = vperm.xlu1 %6159, %v6623_v51   ;;  %v6637_v60 = vpop.eup %6636  ;;  %6658 = vrcp.f32 %v3567_v46  ;;  %v4392_v22 = vsel %vm4391_vm7, %v4390_v10, %v4385_v38  ;;  %v8832_v51 = vld [vmem:[#allocation31_spill] sm:$0xff] }
 0x6f8   : > { %v4601_v25 = vsel %vm4440_vm14, %v4600_v20, %v4596_v23  ;;  %v4097_v19 = vpop.permute.xlu0 %4096  ;;  %v4610_v24 = vrot.slane %v4100_v56, %v8074_v34  ;;  %v6639_v36 = vpop.eup %6638  ;;  %v3566_v49 = vadd.f32 1.0, %v6637_v60  ;;  %v4397_v35 = vrot.slane %v8832_v51, %v8232_v58  ;;  %v8833_v23 = vld [vmem:[#allocation58_spill] sm:$0xff]  ;;  %v8837_v46 = vld [vmem:[#allocation35_spill] sm:$0xff] }
 0x6f9   : > { %v4605_v48 = vrot.slane %v4097_v19, %v8325_v42  ;;  %4279 = vperm.xlu0 %6158, %v6627_v2   ;;  %v6641_v1 = vpop.eup %6640  ;;  %6660 = vrcp.f32 %v3560_v4  ;;  %v4456_v56 = vrot.slane %v8833_v23, %v8823_v52  ;;  %v8838_v60 = vld [vmem:[#allocation62_spill] sm:$0xff] }
 0x6fa   : > { %v6643_v5 = vpop.eup %6642  ;;  %v3562_v20 = vadd.f32 1.0, %v6641_v1  ;;  %6662 = vrcp.f32 %v3566_v49  ;;  %v8839_v1 = vld [vmem:[#allocation59_spill] sm:$0xff] }
 0x6fb   : > { %v8366_v17 = vsel %vm4447_vm15, %v4605_v48, %v4601_v25  ;;  %v4106_v8 = vpop.permute.xlu1 %4105  ;;  %4312 = vperm.xlu1 %6159, %v6631_v21   ;;  %v6645_v0 = vpop.eup %6644  ;;  %v4399_v25 = vsel %vm4398_vm8, %v4397_v35, %v4392_v22  ;;  %v8835_v48 = vld [vmem:[#allocation52_spill] sm:$0xff]  ;;  %v4471_v9 = vrot.slane %v8839_v1, %v8082_v26  ;;  %v8842_v35 = vld [vmem:[#allocation47_spill] sm:$0xff] }
 0x6fc   : > { %v4103_v45 = vpop.permute.xlu0 %4102  ;;  %v4619_v59 = vrot.slane %v4106_v8, %v8070_v47  ;;  %v6647_v16 = vpop.eup %6646  ;;  %v3568_v19 = vadd.f32 1.0, %v6645_v0  ;;  %v4461_v21 = vrot.slane %v8835_v48, %v8070_v47  ;;  %v4452_v8 = vrot.slane %v8836_v14, %v8074_v34 }
 0x6fd   : > { %v4614_v57 = vrot.slane %v4103_v45, %v8823_v52  ;;  %4285 = vperm.xlu0 %6158, %v6635_v28   ;;  %v6649_v40 = vpop.eup %6648  ;;  %6664 = vrcp.f32 %v3562_v20  ;;  %v4411_v45 = vrot.slane %v8837_v46, %v8304_v63  ;;  %v4418_v20 = vrot.slane %v8842_v35, %v8311_v33 }
 0x6fe   : > { %v6651_v3 = vpop.eup %6650  ;;  %v3553_v28 = vadd.f32 1.0, %v6649_v40  ;;  %6666 = vrcp.f32 %v3568_v19  ;;  %v8843_v40 = vld [vmem:[#allocation73_spill] sm:$0xff] }
 0x6ff   : > { %v4615_v18 = vsel %vm4349_vm1, %v4614_v57, %v4610_v24  ;;  %v4112_v53 = vpop.permute.xlu1 %4111  ;;  %4318 = vperm.xlu1 %6159, %v6639_v36   ;;  %v6653_v6 = vpop.eup %6652  ;;  %v4466_v24 = vrot.slane %v8838_v60, %v8077_v62  ;;  %v4406_v57 = vsel %vm4405_vm9, %v4404_v43, %v4399_v25  ;;  %v4486_v23 = vrot.slane %v8843_v40, %v8176_v27  ;;  %v8848_v60 = vld [vmem:[#allocation82_spill] sm:$0xff]  ;;  %v8853_v40 = vld [vmem:[#allocation89_spill] sm:$0xff] }
 0x700   : > { %v4620_v32 = vsel %vm4356_vm2, %v4619_v59, %v4615_v18  ;;  %v4109_v44 = vpop.permute.xlu0 %4108  ;;  %v4629_v50 = vrot.slane %v4112_v53, %v8082_v26  ;;  %v6655_v7 = vpop.eup %6654  ;;  %v4457_v59 = vsel %vm4349_vm1, %v4456_v56, %v4452_v8  ;;  %6668 = vrcp.f32 %v3553_v28 }
 0x701   : > { %v4624_v13 = vrot.slane %v4109_v44, %v8077_v62  ;;  %4291 = vperm.xlu0 %6158, %v6643_v5   ;;  %v6657_v4 = vpop.eup %6656  ;;  %v4462_v53 = vsel %vm4356_vm2, %v4461_v21, %v4457_v59  ;;  %v8840_v5 = vld [vmem:[#allocation67_spill] sm:$0xff]  ;;  %v8849_v59 = vld [vmem:[#allocation81_spill] sm:$0xff] }
 0x702   : > { %v4476_v49 = vrot.slane %v8840_v5, %v8095_v12  ;;  %v6659_v22 = vpop.eup %6658  ;;  %v8846_v21 = vld [vmem:[#allocation79_spill] sm:$0xff]  ;;  %v4511_v1 = vrot.slane %v8849_v59, %v8314_v30 }
 0x703   : > { %v4625_v2 = vsel %vm4363_vm3, %v4624_v13, %v4620_v32  ;;  %v4118_v39 = vpop.permute.xlu1 %4117  ;;  %4324 = vperm.xlu1 %6159, %v6647_v16   ;;  %v8841_v32 = vld [vmem:[#allocation66_spill] sm:$0xff]  ;;  %v4413_v13 = vsel %vm4412_vm10, %v4411_v45, %v4406_v57  ;;  %v3569_v16 = vadd.f32 1.0, %v6655_v7 }
 0x704   : > { %v4630_v61 = vsel %vm4370_vm4, %v4629_v50, %v4625_v2  ;;  %v4115_v54 = vpop.permute.xlu0 %4114  ;;  %v4639_v41 = vrot.slane %v4118_v39, %v8161_v55  ;;  %v4481_v44 = vrot.slane %v8841_v32, %v8161_v55  ;;  %v4467_v50 = vsel %vm4363_vm3, %v4466_v24, %v4462_v53  ;;  %v6661_v39 = vpop.eup %6660  ;;  %v8850_v53 = vld [vmem:[#allocation51_spill] sm:$0xff]  ;;  %v8851_v32 = vld [vmem:[#allocation86_spill] sm:$0xff] }
 0x705   : > { %v4634_v31 = vrot.slane %v4115_v54, %v8095_v12  ;;  %4297 = vperm.xlu0 %6158, %v6651_v3   ;;  %v8844_v3 = vld [vmem:[#allocation39_spill] sm:$0xff]  ;;  %v4472_v19 = vsel %vm4370_vm4, %v4471_v9, %v4467_v50  ;;  %v6663_v8 = vpop.eup %6662  ;;  %6670 = vrcp.f32 %v3569_v16  ;;  %v4506_v24 = vrot.slane %v8848_v60, %v8311_v33  ;;  %v8852_v16 = vld [vmem:[#allocation85_spill] sm:$0xff] }
 0x706   : > { %v4425_v25 = vrot.slane %v8844_v3, %v8314_v30  ;;  %v4477_v48 = vsel %vm4377_vm5, %v4476_v49, %v4472_v19  ;;  %v4432_v5 = vrot.slane %v8850_v53, %v8317_v11  ;;  %v8854_v3 = vld [vmem:[#allocation43_spill] sm:$0xff] }
 0x707   : > { %v4635_v36 = vsel %vm4377_vm5, %v4634_v31, %v4630_v61  ;;  %v4124_v38 = vpop.permute.xlu1 %4123  ;;  %4321 = vperm.xlu1 %6159, %v6653_v6   ;;  %v8845_v61 = vld [vmem:[#allocation72_spill] sm:$0xff]  ;;  %v4496_v31 = vrot.slane %v8846_v21, %v8247_v37  ;;  %v4420_v6 = vsel %vm8673_vm11, %v4418_v20, %v4413_v13  ;;  %v4482_v28 = vsel %vm4384_vm6, %v4481_v44, %v4477_v48 }
 0x708   : > { %v4640_v10 = vsel %vm4384_vm6, %v4639_v41, %v4635_v36  ;;  %v4121_v18 = vpop.permute.xlu0 %4120  ;;  %v4649_v51 = vrot.slane %v4124_v38, %v8232_v58  ;;  %v4491_v54 = vrot.slane %v8845_v61, %v8232_v58  ;;  %v8847_v41 = vld [vmem:[#allocation76_spill] sm:$0xff]  ;;  %v4487_v45 = vsel %vm4391_vm7, %v4486_v23, %v4482_v28  ;;  %v6665_v38 = vpop.eup %6664 }
 0x709   : > { %v4644_v0 = vrot.slane %v4121_v18, %v8176_v27  ;;  %4303 = vperm.xlu0 %6158, %v6657_v4   ;;  %v4501_v7 = vrot.slane %v8847_v41, %v8304_v63  ;;  %v4427_v9 = vsel %vm8672_vm12, %v4425_v25, %v4420_v6  ;;  %v4516_v44 = vrot.slane %v8851_v32, %v8317_v11  ;;  %v8855_v6 = vld [vmem:[#allocation55_spill] sm:$0xff] }
 0x70a   : > { %v4492_v4 = vsel %vm4398_vm8, %v4491_v54, %v4487_v45  ;;  %v4434_v50 = vsel %vm4433_vm13, %v4432_v5, %v4427_v9  ;;  %v4526_v23 = vrot.slane %v8853_v40, %v8325_v42  ;;  %v4439_v25 = vrot.slane %v8854_v3, %v8322_v29 }
 0x70b   : > { %v4645_v56 = vsel %vm4391_vm7, %v4644_v0, %v4640_v10  ;;  %v4130_v2 = vpop.permute.xlu1 %4129  ;;  %4330 = vperm.xlu1 %6159, %v6659_v22   ;;  %v4497_v49 = vsel %vm4405_vm9, %v4496_v31, %v4492_v4  ;;  %v6667_v22 = vpop.eup %6666 }
 0x70c   : > { %v4650_v15 = vsel %vm4398_vm8, %v4649_v51, %v4645_v56  ;;  %v4127_v43 = vpop.permute.xlu0 %4126  ;;  %v4659_v46 = vrot.slane %v4130_v2, %v8304_v63  ;;  %v4502_v13 = vsel %vm4412_vm10, %v4501_v7, %v4497_v49  ;;  %v4521_v51 = vrot.slane %v8852_v16, %v8322_v29 }
 0x70d   : > { %v4654_v14 = vrot.slane %v4127_v43, %v8247_v37  ;;  %4309 = vperm.xlu0 %6158, %v6661_v39   ;;  %v4507_v20 = vsel %vm8673_vm11, %v4506_v24, %v4502_v13  ;;  %v6669_v39 = vpop.eup %6668  ;;  %v4441_v21 = vsel %vm4440_vm14, %v4439_v25, %v4434_v50 }
 0x70e   : > { %v4512_v19 = vsel %vm8672_vm12, %v4511_v1, %v4507_v20 }
 0x70f   : > { %v4655_v57 = vsel %vm4405_vm9, %v4654_v14, %v4650_v15  ;;  %v4136_v36 = vpop.permute.xlu1 %4135  ;;  %4327 = vperm.xlu1 %6159, %v6663_v8   ;;  %v4517_v15 = vsel %vm4433_vm13, %v4516_v44, %v4512_v19  ;;  %v4446_v14 = vrot.slane %v8855_v6, %v8325_v42  ;;  %v6671_v7 = vpop.eup %6670 }
 0x710   : > { %v4660_v10 = vsel %vm4412_vm10, %v4659_v46, %v4655_v57  ;;  %v4133_v18 = vpop.permute.xlu0 %4132  ;;  %v4669_v35 = vrot.slane %v4136_v36, %v8314_v30  ;;  %v4522_v48 = vsel %vm4440_vm14, %v4521_v51, %v4517_v15 }
 0x711   : > { %v4664_v0 = vrot.slane %v4133_v18, %v8311_v33  ;;  %4315 = vperm.xlu0 %6158, %v6665_v38   ;;  %v4527_v8 = vsel %vm4447_vm15, %v4526_v23, %v4522_v48  ;;  %v4448_v60 = vsel %vm4447_vm15, %v4446_v14, %v4441_v21 }
 0x712   : > { %v5003_v57 = vsel %vm5002_vm0, %v4527_v8, %v4448_v60  ;;  %vm5008_vm0 = vcmask 1044484  }
 0x713   : > { %v4665_v56 = vsel %vm8673_vm11, %v4664_v0, %v4660_v10  ;;  %v4142_v2 = vpop.permute.xlu1 %4141  ;;  %4333 = vperm.xlu1 %6159, %v6667_v22   ;;  %vm5006_vm11 = vcmask 1043459  }
 0x714   : > { %v4670_v61 = vsel %vm8672_vm12, %v4669_v35, %v4665_v56  ;;  %v4139_v54 = vpop.permute.xlu0 %4138  ;;  %v4679_v31 = vrot.slane %v4142_v2, %v8322_v29  ;;  %vm5004_vm12 = vcmask 1042434  }
 0x715   : > { %v4674_v43 = vrot.slane %v4139_v54, %v8317_v11  ;;  %4288 = vperm.xlu0 %6158, %v6669_v39   ;;  %v5005_v36 = vsel %vm5004_vm12, %v8366_v17, %v5003_v57  ;;  %vm8857_vm12 = vcmask 851712  }
 0x717   : > { %v4675_v28 = vsel %vm4433_vm13, %v4674_v43, %v4670_v61  ;;  %v4148_v41 = vpop.permute.xlu1 %4147 }
 0x718   : > { %v4680_v46 = vsel %vm4440_vm14, %v4679_v31, %v4675_v28  ;;  %v4145_v45 = vpop.permute.xlu0 %4144  ;;  %v4689_v9 = vrot.slane %v4148_v41, %v8074_v34 }
 0x719   : > { %v4684_v24 = vrot.slane %v4145_v45, %v8325_v42  ;;  %4336 = vperm.xlu0 %6158, %v6671_v7  }
 0x71b   : > { %v4685_v38 = vsel %vm4447_vm15, %v4684_v24, %v4680_v46  ;;  %v4154_v4 = vpop.permute.xlu1 %4153 }
 0x71c   : > { %v5007_v59 = vsel %vm5006_vm11, %v4685_v38, %v5005_v36  ;;  %v4151_v1 = vpop.permute.xlu0 %4150  ;;  %v4698_v18 = vrot.slane %v4154_v4, %v8070_v47  ;;  %vm8856_vm11 = vcmask 786112  }
 0x71d   : > { %v4693_v10 = vrot.slane %v4151_v1, %v8823_v52 }
 0x71f   : > { %v4694_v53 = vsel %vm4349_vm1, %v4693_v10, %v4689_v9  ;;  %v4160_v5 = vpop.permute.xlu1 %4159 }
 0x720   : > { %v4699_v49 = vsel %vm4356_vm2, %v4698_v18, %v4694_v53  ;;  %v4157_v32 = vpop.permute.xlu0 %4156  ;;  %v4708_v17 = vrot.slane %v4160_v5, %v8082_v26 }
 0x721   : > { %v4703_v44 = vrot.slane %v4157_v32, %v8077_v62 }
 0x723   : > { %v4704_v0 = vsel %vm4363_vm3, %v4703_v44, %v4699_v49  ;;  %v4166_v22 = vpop.permute.xlu1 %4165 }
 0x724   : > { %v4709_v13 = vsel %vm4370_vm4, %v4708_v17, %v4704_v0  ;;  %v4163_v16 = vpop.permute.xlu0 %4162  ;;  %v4718_v35 = vrot.slane %v4166_v22, %v8161_v55 }
 0x725   : > { %v4713_v51 = vrot.slane %v4163_v16, %v8095_v12 }
 0x727   : > { %v4714_v20 = vsel %vm4377_vm5, %v4713_v51, %v4709_v13  ;;  %v4172_v50 = vpop.permute.xlu1 %4171 }
 0x728   : > { %v4719_v40 = vsel %vm4384_vm6, %v4718_v35, %v4714_v20  ;;  %v4169_v23 = vpop.permute.xlu0 %4168  ;;  %v4728_v2 = vrot.slane %v4172_v50, %v8232_v58 }
 0x729   : > { %v4723_v56 = vrot.slane %v4169_v23, %v8176_v27 }
 0x72b   : > { %v4724_v39 = vsel %vm4391_vm7, %v4723_v56, %v4719_v40  ;;  %v4178_v3 = vpop.permute.xlu1 %4177 }
 0x72c   : > { %v4729_v25 = vsel %vm4398_vm8, %v4728_v2, %v4724_v39  ;;  %v4175_v19 = vpop.permute.xlu0 %4174  ;;  %v4738_v54 = vrot.slane %v4178_v3, %v8304_v63 }
 0x72d   : > { %v4733_v61 = vrot.slane %v4175_v19, %v8247_v37 }
 0x72f   : > { %v4734_v15 = vsel %vm4405_vm9, %v4733_v61, %v4729_v25  ;;  %v4184_v43 = vpop.permute.xlu1 %4183 }
 0x730   : > { %v4739_v48 = vsel %vm4412_vm10, %v4738_v54, %v4734_v15  ;;  %v4181_v21 = vpop.permute.xlu0 %4180  ;;  %v4748_v6 = vrot.slane %v4184_v43, %v8314_v30 }
 0x731   : > { %v4743_v31 = vrot.slane %v4181_v21, %v8311_v33 }
 0x733   : > { %v4744_v14 = vsel %vm8856_vm11, %v4743_v31, %v4739_v48  ;;  %v4190_v8 = vpop.permute.xlu1 %4189 }
 0x734   : > { %v4749_v28 = vsel %vm8857_vm12, %v4748_v6, %v4744_v14  ;;  %v4187_v41 = vpop.permute.xlu0 %4186  ;;  %v4758_v46 = vrot.slane %v4190_v8, %v8322_v29 }
 0x735   : > { %v4753_v7 = vrot.slane %v4187_v41, %v8317_v11 }
 0x737   : > { %v4754_v45 = vsel %vm4433_vm13, %v4753_v7, %v4749_v28  ;;  %v4196_v60 = vpop.permute.xlu1 %4195 }
 0x738   : > { %v4759_v24 = vsel %vm4440_vm14, %v4758_v46, %v4754_v45  ;;  %v4193_v57 = vpop.permute.xlu0 %4192  ;;  %v4768_v10 = vrot.slane %v4196_v60, %v8074_v34 }
 0x739   : > { %v4763_v36 = vrot.slane %v4193_v57, %v8325_v42 }
 0x73b   : > { %v4764_v38 = vsel %vm4447_vm15, %v4763_v36, %v4759_v24  ;;  %v4202_v4 = vpop.permute.xlu1 %4201 }
 0x73c   : > { %v5009_v1 = vsel %vm5008_vm0, %v4764_v38, %v5007_v59  ;;  %v4199_v9 = vpop.permute.xlu0 %4198  ;;  %v4777_v53 = vrot.slane %v4202_v4, %v8070_v47  ;;  %vm5010_vm0 = vcmask 1045509  }
 0x73d   : > { %v4772_v18 = vrot.slane %v4199_v9, %v8823_v52 }
 0x73f   : > { %v4773_v5 = vsel %vm4349_vm1, %v4772_v18, %v4768_v10  ;;  %v4208_v49 = vpop.permute.xlu1 %4207 }
 0x740   : > { %v4778_v32 = vsel %vm4356_vm2, %v4777_v53, %v4773_v5  ;;  %v4205_v44 = vpop.permute.xlu0 %4204  ;;  %v4787_v0 = vrot.slane %v4208_v49, %v8082_v26 }
 0x741   : > { %v4782_v17 = vrot.slane %v4205_v44, %v8077_v62 }
 0x743   : > { %v4783_v22 = vsel %vm4363_vm3, %v4782_v17, %v4778_v32  ;;  %v4214_v59 = vpop.permute.xlu1 %4213 }
 0x744   : > { %v4788_v13 = vsel %vm4370_vm4, %v4787_v0, %v4783_v22  ;;  %v4211_v16 = vpop.permute.xlu0 %4210  ;;  %v4797_v35 = vrot.slane %v4214_v59, %v8161_v55 }
 0x745   : > { %v4792_v51 = vrot.slane %v4211_v16, %v8095_v12 }
 0x747   : > { %v4793_v20 = vsel %vm4377_vm5, %v4792_v51, %v4788_v13  ;;  %v4220_v50 = vpop.permute.xlu1 %4219 }
 0x748   : > { %v4798_v40 = vsel %vm4384_vm6, %v4797_v35, %v4793_v20  ;;  %v4217_v23 = vpop.permute.xlu0 %4216  ;;  %v4807_v2 = vrot.slane %v4220_v50, %v8232_v58 }
 0x749   : > { %v4802_v56 = vrot.slane %v4217_v23, %v8176_v27 }
 0x74b   : > { %v4803_v39 = vsel %vm4391_vm7, %v4802_v56, %v4798_v40  ;;  %v4226_v3 = vpop.permute.xlu1 %4225 }
 0x74c   : > { %v4808_v25 = vsel %vm4398_vm8, %v4807_v2, %v4803_v39  ;;  %v4223_v19 = vpop.permute.xlu0 %4222  ;;  %v4817_v54 = vrot.slane %v4226_v3, %v8304_v63 }
 0x74d   : > { %v4812_v61 = vrot.slane %v4223_v19, %v8247_v37 }
 0x74f   : > { %v4813_v15 = vsel %vm4405_vm9, %v4812_v61, %v4808_v25  ;;  %v4232_v43 = vpop.permute.xlu1 %4231 }
 0x750   : > { %v4818_v48 = vsel %vm4412_vm10, %v4817_v54, %v4813_v15  ;;  %v4229_v21 = vpop.permute.xlu0 %4228  ;;  %v4827_v6 = vrot.slane %v4232_v43, %v8314_v30 }
 0x751   : > { %v4822_v31 = vrot.slane %v4229_v21, %v8311_v33 }
 0x753   : > { %v4823_v14 = vsel %vm8856_vm11, %v4822_v31, %v4818_v48  ;;  %v4238_v8 = vpop.permute.xlu1 %4237 }
 0x754   : > { %v4828_v28 = vsel %vm8857_vm12, %v4827_v6, %v4823_v14  ;;  %v4235_v41 = vpop.permute.xlu0 %4234  ;;  %v4837_v60 = vrot.slane %v4238_v8, %v8322_v29 }
 0x755   : > { %v4832_v7 = vrot.slane %v4235_v41, %v8317_v11 }
 0x757   : > { %v4833_v46 = vsel %vm4433_vm13, %v4832_v7, %v4828_v28  ;;  %v4244_v45 = vpop.permute.xlu1 %4243 }
 0x758   : > { %v4241_v24 = vpop.permute.xlu0 %4240  ;;  %v4838_v36 = vsel %vm4440_vm14, %v4837_v60, %v4833_v46  ;;  %v4847_v50 = vrot.slane %v4244_v45, %v8074_v34 }
 0x759   : > { %v4842_v57 = vrot.slane %v4241_v24, %v8325_v42 }
 0x75b   : > { %v4843_v38 = vsel %vm4447_vm15, %v4842_v57, %v4838_v36  ;;  %v4250_v4 = vpop.permute.xlu1 %4249 }
 0x75c   : > { %v8539_v9 = vsel %vm5010_vm0, %v4843_v38, %v5009_v1  ;;  %v4247_v10 = vpop.permute.xlu0 %4246  ;;  %v4856_v2 = vrot.slane %v4250_v4, %v8070_v47 }
 0x75d   : > { %v4851_v20 = vrot.slane %v4247_v10, %v8823_v52 }
 0x75f   : > { %v4256_v18 = vpop.permute.xlu1 %4255  ;;  %v4852_v23 = vsel %vm4349_vm1, %v4851_v20, %v4847_v50 }
 0x760   : > { %v4253_v53 = vpop.permute.xlu0 %4252  ;;  %v4857_v25 = vsel %vm4356_vm2, %v4856_v2, %v4852_v23  ;;  %v4866_v15 = vrot.slane %v4256_v18, %v8082_v26 }
 0x761   : > { %v4861_v56 = vrot.slane %v4253_v53, %v8077_v62 }
 0x763   : > { %v4262_v5 = vpop.permute.xlu1 %4261  ;;  %v4862_v19 = vsel %vm4363_vm3, %v4861_v56, %v4857_v25 }
 0x764   : > { %v4259_v49 = vpop.permute.xlu0 %4258  ;;  %v4867_v31 = vsel %vm4370_vm4, %v4866_v15, %v4862_v19  ;;  %v4876_v41 = vrot.slane %v4262_v5, %v8161_v55 }
 0x765   : > { %v4871_v61 = vrot.slane %v4259_v49, %v8095_v12 }
 0x767   : > { %v4268_v32 = vpop.permute.xlu1 %4267  ;;  %v4872_v14 = vsel %vm4377_vm5, %v4871_v61, %v4867_v31 }
 0x768   : > { %v4265_v44 = vpop.permute.xlu0 %4264  ;;  %v4886_v36 = vrot.slane %v4268_v32, %v8232_v58 }
 0x769   : > { %v4881_v8 = vrot.slane %v4265_v44, %v8176_v27 }
 0x76b   : > { %v4274_v17 = vpop.permute.xlu1 %4273 }
 0x76c   : > { %v4271_v0 = vpop.permute.xlu0 %4270  ;;  %v4896_v44 = vrot.slane %v4274_v17, %v8304_v63 }
 0x76d   : > { %v4891_v24 = vrot.slane %v4271_v0, %v8247_v37 }
 0x76f   : > { %v4295_v22 = vpop.permute.xlu1 %4294 }
 0x770   : > { %v4277_v59 = vpop.permute.xlu0 %4276  ;;  %v4930_v48 = vrot.slane %v4295_v22, %v8823_v52  ;;  %v4877_v52 = vsel %vm4384_vm6, %v4876_v41, %v4872_v14 }
 0x771   : > { %v4901_v5 = vrot.slane %v4277_v59, %v8311_v33 }
 0x773   : > { %v4301_v13 = vpop.permute.xlu1 %4300 }
 0x774   : > { %v8541_v16 = vpop.permute.xlu0 %4282  ;;  %v4940_v46 = vrot.slane %v4301_v13, %v8077_v62 }
 0x777   : > { %v4307_v51 = vpop.permute.xlu1 %4306 }
 0x778   : > { %v4280_v35 = vpop.permute.xlu0 %4279  ;;  %v4950_v10 = vrot.slane %v4307_v51, %v8095_v12 }
 0x779   : > { %v4906_v32 = vrot.slane %v4280_v35, %v8314_v30 }
 0x77b   : > { %v4313_v1 = vpop.permute.xlu1 %4312 }
 0x77c   : > { %v8545_v40 = vpop.permute.xlu0 %4285  ;;  %v4960_v12 = vrot.slane %v4313_v1, %v8176_v27 }
 0x77d   : > { %v4916_v35 = vrot.slane %v8545_v40, %v8322_v29 }
 0x77f   : > { %v4319_v39 = vpop.permute.xlu1 %4318 }
 0x780   : > { %v4292_v3 = vpop.permute.xlu0 %4291  ;;  %v4970_v59 = vrot.slane %v4319_v39, %v8247_v37 }
 0x781   : > { %v4926_v54 = vrot.slane %v4292_v3, %v8074_v34 }
 0x783   : > { %v4325_v43 = vpop.permute.xlu1 %4324  ;;  %v4931_v28 = vsel %vm4349_vm1, %v4930_v48, %v4926_v54  ;;  %vm8858_vm1 = vmmov %vm8856_vm11 }
 0x784   : > { %v4298_v21 = vpop.permute.xlu0 %4297  ;;  %v4980_v23 = vrot.slane %v4325_v43, %v8311_v33 }
 0x785   : > { %v4935_v6 = vrot.slane %v4298_v21, %v8070_v47  ;;  %v4882_v47 = vsel %vm4391_vm7, %v4881_v8, %v4877_v52 }
 0x786   : > { %v4887_v18 = vsel %vm4398_vm8, %v4886_v36, %v4882_v47 }
 0x787   : > { %v4936_v34 = vsel %vm4356_vm2, %v4935_v6, %v4931_v28  ;;  %v4322_v7 = vpop.permute.xlu1 %4321  ;;  %vm8859_vm2 = vmmov %vm8857_vm12 }
 0x788   : > { %v4304_v45 = vpop.permute.xlu0 %4303  ;;  %v4941_v57 = vsel %vm4363_vm3, %v4940_v46, %v4936_v34  ;;  %v4975_v27 = vrot.slane %v4322_v7, %v8304_v63  ;;  %vm8860_vm3 = vmmov %vm8858_vm1 }
 0x789   : > { %v4945_v60 = vrot.slane %v4304_v45, %v8082_v26  ;;  %v4892_v26 = vsel %vm4405_vm9, %v4891_v24, %v4887_v18 }
 0x78b   : > { %v4946_v38 = vsel %vm4370_vm4, %v4945_v60, %v4941_v57  ;;  %v4331_v4 = vpop.permute.xlu1 %4330  ;;  %vm8861_vm4 = vmmov %vm8859_vm2 }
 0x78c   : > { %v4310_v62 = vpop.permute.xlu0 %4309  ;;  %v4951_v49 = vsel %vm4377_vm5, %v4950_v10, %v4946_v38  ;;  %v4990_v25 = vrot.slane %v4331_v4, %v8317_v11  ;;  %vm5012_vm5 = vcmask 1046534  }
 0x78d   : > { %v4955_v53 = vrot.slane %v4310_v62, %v8161_v55  ;;  %v4897_v55 = vsel %vm4412_vm10, %v4896_v44, %v4892_v26 }
 0x78e   : > { %v4902_v20 = vsel %vm8858_vm1, %v4901_v5, %v4897_v55 }
 0x78f   : > { %v4956_v0 = vsel %vm4384_vm6, %v4955_v53, %v4951_v49  ;;  %v4328_v22 = vpop.permute.xlu1 %4327  ;;  %v4907_v17 = vsel %vm8859_vm2, %v4906_v32, %v4902_v20  ;;  %vm5014_vm6 = vcmask 1047559  }
 0x790   : > { %v4316_v13 = vpop.permute.xlu0 %4315  ;;  %v4961_v50 = vsel %vm4391_vm7, %v4960_v12, %v4956_v0  ;;  %v4985_v39 = vrot.slane %v4328_v22, %v8314_v30 }
 0x791   : > { %v4965_v51 = vrot.slane %v4316_v13, %v8232_v58  ;;  %v4911_v58 = vrot.slane %v8541_v16, %v8317_v11 }
 0x793   : > { %v4966_v1 = vsel %vm4398_vm8, %v4965_v51, %v4961_v50  ;;  %v4334_v56 = vpop.permute.xlu1 %4333  ;;  %v4912_v63 = vsel %vm4433_vm13, %v4911_v58, %v4907_v17 }
 0x794   : > { %v4971_v37 = vsel %vm4405_vm9, %v4970_v59, %v4966_v1  ;;  %v4289_v2 = vpop.permute.xlu0 %4288  ;;  %v4917_v33 = vsel %vm4440_vm14, %v4916_v35, %v4912_v63  ;;  %v4995_v61 = vrot.slane %v4334_v56, %v8322_v29 }
 0x795   : > { %v4976_v3 = vsel %vm4412_vm10, %v4975_v27, %v4971_v37  ;;  %v4921_v40 = vrot.slane %v4289_v2, %v8325_v42 }
 0x796   : > { %v4981_v16 = vsel %vm8860_vm3, %v4980_v23, %v4976_v3 }
 0x797   : > { %v4986_v19 = vsel %vm8861_vm4, %v4985_v39, %v4981_v16  ;;  %v4922_v54 = vsel %vm4447_vm15, %v4921_v40, %v4917_v33 }
 0x798   : > { %v4991_v30 = vsel %vm4433_vm13, %v4990_v25, %v4986_v19  ;;  %v4337_v15 = vpop.permute.xlu0 %4336  ;;  %v5013_v21 = vsel %vm5012_vm5, %v4922_v54, %v8539_v9 }
 0x799   : > { %v4996_v11 = vsel %vm4440_vm14, %v4995_v61, %v4991_v30  ;;  %v5000_v43 = vrot.slane %v4337_v15, %v8325_v42 }
 0x79b   : > { %v5001_v48 = vsel %vm4447_vm15, %v5000_v43, %v4996_v11 }
 0x79c   : > { %v5015_v29 = vsel %vm5014_vm6, %v5001_v48, %v5013_v21 }
 0x79d   : > { %5017 = vst [vmem:[%s230_s14] sm:$0xff] %v5015_v29 }
 0x79e   : > { %6690 = shalt.err (!%p6687_p3)
}
 0x79f   : > { %s6691_s11 = scalar_lea.hbm %s8620_s10, 128  ;;  %s6695_s25 = scalar_lea.hbm %s8669_s5, 256 }
 0x7a0   : > { %p6692_p4 = scmp.ne.s32.totalorder %s8620_s10, %s6691_s11  ;;  %p6696_p9 = scmp.lt.u32.totalorder %s8620_s10, %s8669_s5 }
 0x7a1   : > { %p6697_p10 = scmp.lt.u32.totalorder %s6695_s25, %s6691_s11  ;;  %p6699_p12 = scmp.lt.u32.totalorder %s6691_s11, %s8620_s10 }
 0x7a2   : > { %p6693_p7 = pnand %p6692_p4, %p6808_p5 }
 0x7a3   : > { %p6698_p11 = por %p6697_p10, %p6696_p9 }
 0x7a4   : > { %p6694_p8 = pneg %p6693_p7 }
 0x7a5   : > { %p6700_p13 = por %p6699_p12, %p6698_p11 }
 0x7a7   : > { %p6701_p0 = pnand %p6700_p13, %p6694_p8 }
 0x7a9   : > { %6704 = shalt.err (!%p6701_p0)
}
 0x7aa   : > { %6118 = dma.vmem_to_hbm [thread:$0]  (%p6808_p5), %s8622_s7, 128, %s8620_s10, %s5019_s12  }
 0x7ab PF: > { %p6124_p1 = scmp.ge.s32.totalorder %s6739_s21, 2  ;;  %s5044_s6 = sand.u32 1, %s6727_s18  }
 0x7ac   : > { %s5045_s14 = scalar_lea.sflag [#allocation3], %s5044_s6 }
 0x7ad   : > { %p6121_p2 = pnand %p6124_p1, %p6812_p6 }
 0x7af   : > { %6722 = dma.done.wait (!%p6121_p2), %s5045_s14, 128  }
 0x7b0   : > { %6724 = vsyncadd (!%p6121_p2), %s5045_s14, 4294967168  ;;  %p15_p3 = scmp.ge.s32.totalorder %s6796_s24, 4   ;;  %s8862_s18 = smov %s6731_s19 }
 0x7b1   : > { %s8863_s19 = smov %s6735_s20  ;;  %s8864_s20 = smov %s6806_s27 }
 0x7b2   : > { %s8865_s21 = smov %s6796_s24  ;;  %17 = sbr.rel (!%p15_p3) target bundleno = 3 (0x3), region = 75 }
 0x7b9   :  { %5050 = vsyncpa [#allocation3], 1 }
 0x7ba   :  { %5052 = vsyncpa [#allocation3 + $0x1], 1 }

</bundles_post_ra>
